<compile_context>
chip_gen: v6e
topology: v6e:2x2x1
jax: 0.10.0
libtpu: 0.0.40
codegen_flags: <defaults>
</compile_context>

<pallas_src>
import functools

import jax
import jax.numpy as jnp
from jax import lax
from jax.experimental import pallas as pl
from jax.experimental.pallas import tpu as pltpu

LANE = 128


def _round_up(n: int, m: int) -> int:
    return (n + m - 1) // m * m


def _vmem_estimate(th, W, Cin_p, Cmid_p, Cout_p, cbytes, obytes):
    """Rough per-grid-step VMEM working-set estimate (bytes)."""
    x_blk = (th + 4) * (W + 2) * Cin_p * cbytes * 2        # double-buffered input
    o_blk = th * W * Cout_p * obytes * 2                   # double-buffered output
    w_blk = 9 * (Cin_p * Cmid_p + Cmid_p * Cout_p) * cbytes
    b_blk = (Cmid_p + Cout_p) * 4
    scratch = (th + 2) * (W + 2) * Cmid_p * cbytes          # y1 staging
    patches1 = (th + 2) * W * 9 * Cin_p * cbytes            # im2col conv #1
    y1 = (th + 2) * W * Cmid_p * 4                          # f32 accum conv #1
    patches2 = th * W * 9 * Cmid_p * cbytes                 # im2col conv #2
    y2 = th * W * Cout_p * 4                                # f32 accum conv #2
    return x_blk + o_blk + w_blk + b_blk + scratch + patches1 + y1 + patches2 + y2


def _choose_tile_h(H, W, Cin_p, Cmid_p, Cout_p, cbytes, obytes,
                   budget=20 * 1024 * 1024):
    """Largest divisor of H whose per-step working set fits the VMEM budget."""
    divisors = sorted((d for d in range(1, H + 1) if H % d == 0), reverse=True)
    fitting = [d for d in divisors
               if _vmem_estimate(d, W, Cin_p, Cmid_p, Cout_p, cbytes, obytes) <= budget]
    if not fitting:
        return 1
    th = fitting[0]
    # Prefer >= 2 row tiles on non-tiny images so the single "parallel" grid
    # axis has spatial work to shard across TensorCores even at batch 1.
    if th == H and H >= 16:
        smaller = [d for d in fitting if d < H]
        if smaller:
            th = smaller[0]
    return th


def _double_conv_kernel(x_ref, w1_ref, b1_ref, w2_ref, b2_ref, o_ref, y1_ref,
                        *, n_row_tiles: int):
    # x_ref : (1, TH+4, W+2, Cin_p)   row tile of the padded input (2-row halo)
    # w1_ref: (9*Cin_p,  Cmid_p)      dense im2col weight slab, conv #1
    # b1_ref: (1, Cmid_p)             f32 bias
    # w2_ref: (9*Cmid_p, Cout_p)      dense im2col weight slab, conv #2
    # b2_ref: (1, Cout_p)             f32 bias
    # o_ref : (1, TH, W, Cout_p)
    # y1_ref: VMEM scratch (TH+2, W+2, Cmid_p) -- conv1 output + conv2 pad/halo
    TH = o_ref.shape[1]
    W = o_ref.shape[2]
    Cmid_p = y1_ref.shape[2]
    Cout_p = o_ref.shape[3]

    t = pl.program_id(0) % n_row_tiles          # row-tile index within the image

    x = x_ref[0]                                # (TH+4, W+2, Cin_p)

    # ---- conv #1: single im2col matmul over all 9 taps (K = 9*Cin_p) -------
    # y1 is produced on TH+2 rows: the output tile plus conv #2's 1-row halo.
    taps1 = [x[kh:kh + TH + 2, kw:kw + W, :]
             for kh in range(3) for kw in range(3)]
    patches1 = jnp.concatenate(taps1, axis=-1).reshape((TH + 2) * W, -1)
    y1 = jnp.dot(patches1, w1_ref[...], preferred_element_type=jnp.float32)
    y1 = jnp.maximum(y1 + b1_ref[...], 0.0)     # ReLU #1, f32

    # Stage y1 in the VMEM scratch: interior columns get the activations, the
    # 1-pixel border is conv #2's zero padding.  Border zeroing is done every
    # step (scratch is per-core; "parallel" steps must be independent).
    y1_ref[:, 1:W + 1, :] = y1.reshape(TH + 2, W, Cmid_p).astype(y1_ref.dtype)
    zero_col = jnp.zeros((TH + 2, 1, Cmid_p), y1_ref.dtype)
    y1_ref[:, 0:1, :] = zero_col
    y1_ref[:, W + 1:W + 2, :] = zero_col

    zero_row = jnp.zeros((1, W + 2, Cmid_p), y1_ref.dtype)

    @pl.when(t == 0)                            # tile touches the image top
    def _():
        y1_ref[0:1, :, :] = zero_row

    @pl.when(t == n_row_tiles - 1)              # tile touches the image bottom
    def _():
        y1_ref[TH + 1:TH + 2, :, :] = zero_row

    # ---- conv #2: single im2col matmul over all 9 taps (K = 9*Cmid_p) ------
    y1p = y1_ref[...]                           # (TH+2, W+2, Cmid_p)
    taps2 = [y1p[kh:kh + TH, kw:kw + W, :]
             for kh in range(3) for kw in range(3)]
    patches2 = jnp.concatenate(taps2, axis=-1).reshape(TH * W, -1)
    y2 = jnp.dot(patches2, w2_ref[...], preferred_element_type=jnp.float32)
    y2 = jnp.maximum(y2 + b2_ref[...], 0.0)     # ReLU #2

    o_ref[0] = y2.reshape(TH, W, Cout_p).astype(o_ref.dtype)


def double_convolution(x_nchw, w1, b1, w2, b2, *, tile_h=None, compute_dtype=None):
    """Fused Conv3x3+ReLU -> Conv3x3+ReLU (stride=1, padding=1).

    x_nchw: (B, Cin, H, W); w1: (3,3,Cin,Cmid) HWIO; b1: (Cmid,);
    w2: (3,3,Cmid,Cout) HWIO; b2: (Cout,).  Returns (B, Cout, H, W).
    """
    B, Cin, H, W = x_nchw.shape
    Cmid = w1.shape[3]
    Cout = w2.shape[3]
    out_dtype = x_nchw.dtype
    if compute_dtype is None:
        compute_dtype = x_nchw.dtype    # pass jnp.bfloat16 on v6e/v7x for 2x MXU

    Cin_p = _round_up(Cin, LANE)
    Cmid_p = _round_up(Cmid, LANE)
    Cout_p = _round_up(Cout, LANE)

    cbytes = jnp.dtype(compute_dtype).itemsize
    obytes = jnp.dtype(out_dtype).itemsize

    if tile_h is None:
        tile_h = _choose_tile_h(H, W, Cin_p, Cmid_p, Cout_p, cbytes, obytes)
    assert H % tile_h == 0, "tile_h must divide H"
    n_row_tiles = H // tile_h

    # NCHW -> NHWC, lane-pad channels to a multiple of 128, zero-pad spatially:
    # rows by 2 (conv1 padding + conv2 halo), cols by 1 (conv1 padding).
    x = jnp.transpose(x_nchw, (0, 2, 3, 1)).astype(compute_dtype)
    x = jnp.pad(x, ((0, 0), (2, 2), (1, 1), (0, Cin_p - Cin)))

    # Materialize overlapping row tiles (2-row halo each side) so the Pallas
    # grid uses plain non-overlapping blocks.
    tiles = jnp.stack(
        [x[:, t * tile_h:t * tile_h + tile_h + 4] for t in range(n_row_tiles)],
        axis=1)
    tiles = tiles.reshape(B * n_row_tiles, tile_h + 4, W + 2, Cin_p)

    # Weights -> dense, lane-padded 2-D im2col slabs; biases lane-padded (f32).
    w1_p = jnp.zeros((3, 3, Cin_p, Cmid_p), compute_dtype)
    w1_p = w1_p.at[:, :, :Cin, :Cmid].set(w1.astype(compute_dtype))
    w2_p = jnp.zeros((3, 3, Cmid_p, Cout_p), compute_dtype)
    w2_p = w2_p.at[:, :, :Cmid, :Cout].set(w2.astype(compute_dtype))
    w1_slab = w1_p.reshape(9 * Cin_p, Cmid_p)
    w2_slab = w2_p.reshape(9 * Cmid_p, Cout_p)
    b1_p = jnp.zeros((1, Cmid_p), jnp.float32).at[0, :Cmid].set(b1.astype(jnp.float32))
    b2_p = jnp.zeros((1, Cout_p), jnp.float32).at[0, :Cout].set(b2.astype(jnp.float32))

    kernel = functools.partial(_double_conv_kernel, n_row_tiles=n_row_tiles)

    # Advisory cost hint for XLA's scheduler around the custom call.
    flops = 2 * B * H * W * 9 * (Cin_p * Cmid_p + Cmid_p * Cout_p)
    bytes_accessed = int(
        B * n_row_tiles * (tile_h + 4) * (W + 2) * Cin_p * cbytes
        + 9 * (Cin_p * Cmid_p + Cmid_p * Cout_p) * cbytes
        + B * H * W * Cout_p * obytes)
    cost = pl.CostEstimate(flops=int(flops), transcendentals=0,
                           bytes_accessed=bytes_accessed)

    out_tiles = pl.pallas_call(
        kernel,
        out_shape=jax.ShapeDtypeStruct((B * n_row_tiles, tile_h, W, Cout_p),
                                       out_dtype),
        grid_spec=pltpu.PrefetchScalarGridSpec(
            num_scalar_prefetch=0,
            grid=(B * n_row_tiles,),
            in_specs=[
                pl.BlockSpec((1, tile_h + 4, W + 2, Cin_p), lambda i: (i, 0, 0, 0)),
                pl.BlockSpec((9 * Cin_p, Cmid_p), lambda i: (0, 0)),
                pl.BlockSpec((1, Cmid_p), lambda i: (0, 0)),
                pl.BlockSpec((9 * Cmid_p, Cout_p), lambda i: (0, 0)),
                pl.BlockSpec((1, Cout_p), lambda i: (0, 0)),
            ],
            out_specs=pl.BlockSpec((1, tile_h, W, Cout_p), lambda i: (i, 0, 0, 0)),
            scratch_shapes=[
                pltpu.VMEM((tile_h + 2, W + 2, Cmid_p), compute_dtype),
            ],
        ),
        compiler_params=pltpu.CompilerParams(
            # Single grid axis = batch x row-tiles, fully independent -> lets
            # megacore (v7x) shard spatially even at batch 1.
            dimension_semantics=("parallel",)),
        cost_estimate=cost,
    )(tiles, w1_slab, b1_p, w2_slab, b2_p)

    out = out_tiles.reshape(B, H, W, Cout_p)[..., :Cout].astype(out_dtype)
    return jnp.transpose(out, (0, 3, 1, 2))


def _reference(x_nchw, w1, b1, w2, b2):
    """Pure-JAX reference (lax conv) for correctness checking."""
    x = jnp.transpose(x_nchw, (0, 2, 3, 1))
    dn = ("NHWC", "HWIO", "NHWC")
    y = lax.conv_general_dilated(x, w1, (1, 1), ((1, 1), (1, 1)),
                                 dimension_numbers=dn) + b1
    y = jnp.maximum(y, 0.0)
    y = lax.conv_general_dilated(y, w2, (1, 1), ((1, 1), (1, 1)),
                                 dimension_numbers=dn) + b2
    y = jnp.maximum(y, 0.0)
    return jnp.transpose(y, (0, 3, 1, 2))


if __name__ == "__main__":
    B, Cin, Cout, H, W = 2, 4, 8, 16, 16

    key = jax.random.PRNGKey(0)
    kx, kw1, kb1, kw2, kb2 = jax.random.split(key, 5)

    x = jax.random.normal(kx, (B, Cin, H, W), jnp.float32)
    # Deterministic synthetic parameters (HWIO layout), scaled like Conv2d init.
    w1 = jax.random.normal(kw1, (3, 3, Cin, Cout), jnp.float32) * 0.1
    b1 = jax.random.normal(kb1, (Cout,), jnp.float32) * 0.1
    w2 = jax.random.normal(kw2, (3, 3, Cout, Cout), jnp.float32) * 0.1
    b2 = jax.random.normal(kb2, (Cout,), jnp.float32) * 0.1

    out = jax.block_until_ready(double_convolution(x, w1, b1, w2, b2))
    ref = jax.block_until_ready(_reference(x, w1, b1, w2, b2))

    assert out.shape == (B, Cout, H, W)
    assert jnp.allclose(out, ref, atol=1e-4, rtol=1e-4)

    print("KERNEL_OK")
</pallas_src>

<mosaic_0001>
module attributes {stable_mosaic.version = 11 : i64} {
  func.func @_double_conv_kernel(%arg0: i32, %arg1: memref<1x12x18x128xf32, #tpu.memory_space<vmem>>, %arg2: memref<1152x128xf32, #tpu.memory_space<vmem>>, %arg3: memref<1x128xf32, #tpu.memory_space<vmem>>, %arg4: memref<1152x128xf32, #tpu.memory_space<vmem>>, %arg5: memref<1x128xf32, #tpu.memory_space<vmem>>, %arg6: memref<1x8x16x128xf32, #tpu.memory_space<vmem>>, %arg7: memref<10x18x128xf32, #tpu.memory_space<vmem>>) attributes {dimension_semantics = [#tpu.dimension_semantics<parallel>], iteration_bounds = array<i64: 4>, scalar_prefetch = 0 : i64, scratch_operands = 1 : i64, tpu.core_type = #tpu.core_type<tc>, window_params = [{transform_indices = @transform_0, window_bounds = array<i64: 1, 12, 18, 128>}, {pipeline_mode = #tpu.pipeline_mode<synchronous>, transform_indices = @transform_1, window_bounds = array<i64: 1152, 128>}, {pipeline_mode = #tpu.pipeline_mode<synchronous>, transform_indices = @transform_2, window_bounds = array<i64: 1, 128>}, {pipeline_mode = #tpu.pipeline_mode<synchronous>, transform_indices = @transform_3, window_bounds = array<i64: 1152, 128>}, {pipeline_mode = #tpu.pipeline_mode<synchronous>, transform_indices = @transform_4, window_bounds = array<i64: 1, 128>}, {transform_indices = @transform_5, window_bounds = array<i64: 1, 8, 16, 128>}]} {
    %c2_i32 = arith.constant 2 : i32
    %c0_i32 = arith.constant 0 : i32
    %0 = arith.cmpi eq, %c2_i32, %c0_i32 : i32
    %c1_i32 = arith.constant 1 : i32
    %1 = arith.select %0, %c1_i32, %c2_i32 : i32
    %2 = arith.remsi %arg0, %1 : i32
    %c0_i32_0 = arith.constant 0 : i32
    %3 = arith.cmpi ne, %2, %c0_i32_0 : i32
    %c0_i32_1 = arith.constant 0 : i32
    %4 = arith.cmpi slt, %2, %c0_i32_1 : i32
    %c0_i32_2 = arith.constant 0 : i32
    %5 = arith.cmpi slt, %1, %c0_i32_2 : i32
    %6 = arith.xori %4, %5 : i1
    %7 = arith.andi %6, %3 : i1
    %8 = arith.addi %2, %1 : i32
    %9 = arith.select %7, %8, %2 : i32
    %c0 = arith.constant 0 : index
    %c0_3 = arith.constant 0 : index
    %c0_4 = arith.constant 0 : index
    %c0_5 = arith.constant 0 : index
    %10 = vector.load %arg1[%c0, %c0_3, %c0_4, %c0_5] : memref<1x12x18x128xf32, #tpu.memory_space<vmem>>, vector<1x12x18x128xf32>
    %11 = vector.shape_cast %10 : vector<1x12x18x128xf32> to vector<12x18x128xf32>
    %12 = vector.extract_strided_slice %11 {offsets = [0, 0, 0], sizes = [10, 16, 128], strides = [1, 1, 1]} : vector<12x18x128xf32> to vector<10x16x128xf32>
    %13 = vector.extract_strided_slice %11 {offsets = [0, 1, 0], sizes = [10, 16, 128], strides = [1, 1, 1]} : vector<12x18x128xf32> to vector<10x16x128xf32>
    %14 = vector.extract_strided_slice %11 {offsets = [0, 2, 0], sizes = [10, 16, 128], strides = [1, 1, 1]} : vector<12x18x128xf32> to vector<10x16x128xf32>
    %15 = vector.extract_strided_slice %11 {offsets = [1, 0, 0], sizes = [10, 16, 128], strides = [1, 1, 1]} : vector<12x18x128xf32> to vector<10x16x128xf32>
    %16 = vector.extract_strided_slice %11 {offsets = [1, 1, 0], sizes = [10, 16, 128], strides = [1, 1, 1]} : vector<12x18x128xf32> to vector<10x16x128xf32>
    %17 = vector.extract_strided_slice %11 {offsets = [1, 2, 0], sizes = [10, 16, 128], strides = [1, 1, 1]} : vector<12x18x128xf32> to vector<10x16x128xf32>
    %18 = vector.extract_strided_slice %11 {offsets = [2, 0, 0], sizes = [10, 16, 128], strides = [1, 1, 1]} : vector<12x18x128xf32> to vector<10x16x128xf32>
    %19 = vector.extract_strided_slice %11 {offsets = [2, 1, 0], sizes = [10, 16, 128], strides = [1, 1, 1]} : vector<12x18x128xf32> to vector<10x16x128xf32>
    %20 = vector.extract_strided_slice %11 {offsets = [2, 2, 0], sizes = [10, 16, 128], strides = [1, 1, 1]} : vector<12x18x128xf32> to vector<10x16x128xf32>
    %21 = tpu.concatenate %12, %13, %14, %15, %16, %17, %18, %19, %20 in 2 : vector<10x16x128xf32>, vector<10x16x128xf32>, vector<10x16x128xf32>, vector<10x16x128xf32>, vector<10x16x128xf32>, vector<10x16x128xf32>, vector<10x16x128xf32>, vector<10x16x128xf32>, vector<10x16x128xf32> -> vector<10x16x1152xf32>
    %22 = vector.shape_cast %21 : vector<10x16x1152xf32> to vector<160x1152xf32>
    %c0_6 = arith.constant 0 : index
    %c0_7 = arith.constant 0 : index
    %23 = vector.load %arg2[%c0_6, %c0_7] : memref<1152x128xf32, #tpu.memory_space<vmem>>, vector<1152x128xf32>
    %cst = arith.constant dense<0.000000e+00> : vector<160x128xf32>
    %24 = tpu.matmul %22, %23, %cst {dimension_numbers = #tpu.dot_dimension_numbers<[1], [0], [0], [1], [0, 0, 1, 1], [], []>} : vector<160x1152xf32>, vector<1152x128xf32>, vector<160x128xf32> -> vector<160x128xf32>
    %c0_8 = arith.constant 0 : index
    %c0_9 = arith.constant 0 : index
    %25 = vector.load %arg3[%c0_8, %c0_9] : memref<1x128xf32, #tpu.memory_space<vmem>>, vector<1x128xf32>
    %26 = vector.broadcast %25 : vector<1x128xf32> to vector<160x128xf32>
    %27 = arith.addf %24, %26 : vector<160x128xf32>
    %cst_10 = arith.constant 0.000000e+00 : f32
    %28 = vector.broadcast %cst_10 : f32 to vector<160x128xf32>
    %29 = arith.maximumf %27, %28 : vector<160x128xf32>
    %30 = vector.shape_cast %29 : vector<160x128xf32> to vector<10x16x128xf32>
    %c0_11 = arith.constant 0 : index
    %c1 = arith.constant 1 : index
    %c0_12 = arith.constant 0 : index
    %31 = vector.load %arg7[%c0_11, %c1, %c0_12] : memref<10x18x128xf32, #tpu.memory_space<vmem>>, vector<10x16x128xf32>
    tpu.vector_store %arg7[%c0_11, %c1, %c0_12], %30 {strides = array<i32>} : memref<10x18x128xf32, #tpu.memory_space<vmem>>, vector<10x16x128xf32>,
    %cst_13 = arith.constant 0.000000e+00 : f32
    %32 = vector.broadcast %cst_13 : f32 to vector<10x1x128xf32>
    %c0_14 = arith.constant 0 : index
    %c0_15 = arith.constant 0 : index
    %c0_16 = arith.constant 0 : index
    %33 = vector.load %arg7[%c0_14, %c0_15, %c0_16] : memref<10x18x128xf32, #tpu.memory_space<vmem>>, vector<10x1x128xf32>
    tpu.vector_store %arg7[%c0_14, %c0_15, %c0_16], %32 {strides = array<i32>} : memref<10x18x128xf32, #tpu.memory_space<vmem>>, vector<10x1x128xf32>,
    %c0_17 = arith.constant 0 : index
    %c17 = arith.constant 17 : index
    %c0_18 = arith.constant 0 : index
    %34 = vector.load %arg7[%c0_17, %c17, %c0_18] : memref<10x18x128xf32, #tpu.memory_space<vmem>>, vector<10x1x128xf32>
    tpu.vector_store %arg7[%c0_17, %c17, %c0_18], %32 {strides = array<i32>} : memref<10x18x128xf32, #tpu.memory_space<vmem>>, vector<10x1x128xf32>,
    %cst_19 = arith.constant 0.000000e+00 : f32
    %35 = vector.broadcast %cst_19 : f32 to vector<1x18x128xf32>
    %c0_i32_20 = arith.constant 0 : i32
    %36 = arith.cmpi eq, %9, %c0_i32_20 : i32
    %37 = arith.extui %36 : i1 to i32
    %c0_i32_21 = arith.constant 0 : i32
    %38 = arith.cmpi ne, %37, %c0_i32_21 : i32
    scf.if %38 {
      %c0_37 = arith.constant 0 : index
      %c0_38 = arith.constant 0 : index
      %c0_39 = arith.constant 0 : index
      %65 = vector.load %arg7[%c0_37, %c0_38, %c0_39] : memref<10x18x128xf32, #tpu.memory_space<vmem>>, vector<1x18x128xf32>
      tpu.vector_store %arg7[%c0_37, %c0_38, %c0_39], %35 {strides = array<i32>} : memref<10x18x128xf32, #tpu.memory_space<vmem>>, vector<1x18x128xf32>,
    } else {
    }
    %c1_i32_22 = arith.constant 1 : i32
    %39 = arith.cmpi eq, %9, %c1_i32_22 : i32
    %40 = arith.extui %39 : i1 to i32
    %c0_i32_23 = arith.constant 0 : i32
    %41 = arith.cmpi ne, %40, %c0_i32_23 : i32
    scf.if %41 {
      %c9 = arith.constant 9 : index
      %c0_37 = arith.constant 0 : index
      %c0_38 = arith.constant 0 : index
      %65 = vector.load %arg7[%c9, %c0_37, %c0_38] : memref<10x18x128xf32, #tpu.memory_space<vmem>>, vector<1x18x128xf32>
      tpu.vector_store %arg7[%c9, %c0_37, %c0_38], %35 {strides = array<i32>} : memref<10x18x128xf32, #tpu.memory_space<vmem>>, vector<1x18x128xf32>,
    } else {
    }
    %c0_24 = arith.constant 0 : index
    %c0_25 = arith.constant 0 : index
    %c0_26 = arith.constant 0 : index
    %42 = vector.load %arg7[%c0_24, %c0_25, %c0_26] : memref<10x18x128xf32, #tpu.memory_space<vmem>>, vector<10x18x128xf32>
    %43 = vector.extract_strided_slice %42 {offsets = [0, 0, 0], sizes = [8, 16, 128], strides = [1, 1, 1]} : vector<10x18x128xf32> to vector<8x16x128xf32>
    %44 = vector.extract_strided_slice %42 {offsets = [0, 1, 0], sizes = [8, 16, 128], strides = [1, 1, 1]} : vector<10x18x128xf32> to vector<8x16x128xf32>
    %45 = vector.extract_strided_slice %42 {offsets = [0, 2, 0], sizes = [8, 16, 128], strides = [1, 1, 1]} : vector<10x18x128xf32> to vector<8x16x128xf32>
    %46 = vector.extract_strided_slice %42 {offsets = [1, 0, 0], sizes = [8, 16, 128], strides = [1, 1, 1]} : vector<10x18x128xf32> to vector<8x16x128xf32>
    %47 = vector.extract_strided_slice %42 {offsets = [1, 1, 0], sizes = [8, 16, 128], strides = [1, 1, 1]} : vector<10x18x128xf32> to vector<8x16x128xf32>
    %48 = vector.extract_strided_slice %42 {offsets = [1, 2, 0], sizes = [8, 16, 128], strides = [1, 1, 1]} : vector<10x18x128xf32> to vector<8x16x128xf32>
    %49 = vector.extract_strided_slice %42 {offsets = [2, 0, 0], sizes = [8, 16, 128], strides = [1, 1, 1]} : vector<10x18x128xf32> to vector<8x16x128xf32>
    %50 = vector.extract_strided_slice %42 {offsets = [2, 1, 0], sizes = [8, 16, 128], strides = [1, 1, 1]} : vector<10x18x128xf32> to vector<8x16x128xf32>
    %51 = vector.extract_strided_slice %42 {offsets = [2, 2, 0], sizes = [8, 16, 128], strides = [1, 1, 1]} : vector<10x18x128xf32> to vector<8x16x128xf32>
    %52 = tpu.concatenate %43, %44, %45, %46, %47, %48, %49, %50, %51 in 2 : vector<8x16x128xf32>, vector<8x16x128xf32>, vector<8x16x128xf32>, vector<8x16x128xf32>, vector<8x16x128xf32>, vector<8x16x128xf32>, vector<8x16x128xf32>, vector<8x16x128xf32>, vector<8x16x128xf32> -> vector<8x16x1152xf32>
    %53 = vector.shape_cast %52 : vector<8x16x1152xf32> to vector<128x1152xf32>
    %c0_27 = arith.constant 0 : index
    %c0_28 = arith.constant 0 : index
    %54 = vector.load %arg4[%c0_27, %c0_28] : memref<1152x128xf32, #tpu.memory_space<vmem>>, vector<1152x128xf32>
    %cst_29 = arith.constant dense<0.000000e+00> : vector<128x128xf32>
    %55 = tpu.matmul %53, %54, %cst_29 {dimension_numbers = #tpu.dot_dimension_numbers<[1], [0], [0], [1], [0, 0, 1, 1], [], []>} : vector<128x1152xf32>, vector<1152x128xf32>, vector<128x128xf32> -> vector<128x128xf32>
    %c0_30 = arith.constant 0 : index
    %c0_31 = arith.constant 0 : index
    %56 = vector.load %arg5[%c0_30, %c0_31] : memref<1x128xf32, #tpu.memory_space<vmem>>, vector<1x128xf32>
    %57 = vector.broadcast %56 : vector<1x128xf32> to vector<128x128xf32>
    %58 = arith.addf %55, %57 : vector<128x128xf32>
    %cst_32 = arith.constant 0.000000e+00 : f32
    %59 = vector.broadcast %cst_32 : f32 to vector<128x128xf32>
    %60 = arith.maximumf %58, %59 : vector<128x128xf32>
    %61 = vector.shape_cast %60 : vector<128x128xf32> to vector<8x16x128xf32>
    %c0_33 = arith.constant 0 : index
    %c0_34 = arith.constant 0 : index
    %c0_35 = arith.constant 0 : index
    %c0_36 = arith.constant 0 : index
    %62 = vector.load %arg6[%c0_33, %c0_34, %c0_35, %c0_36] : memref<1x8x16x128xf32, #tpu.memory_space<vmem>>, vector<1x8x16x128xf32>
    %63 = vector.shape_cast %62 : vector<1x8x16x128xf32> to vector<8x16x128xf32>
    %64 = vector.shape_cast %61 : vector<8x16x128xf32> to vector<1x8x16x128xf32>
    tpu.vector_store %arg6[%c0_33, %c0_34, %c0_35, %c0_36], %64 {strides = array<i32>} : memref<1x8x16x128xf32, #tpu.memory_space<vmem>>, vector<1x8x16x128xf32>,
    return
  }
  func.func @transform_0(%arg0: i32) -> (i32, i32, i32, i32) {
    %c0_i32 = arith.constant 0 : i32
    %c0_i32_0 = arith.constant 0 : i32
    %c0_i32_1 = arith.constant 0 : i32
    %c0_i32_2 = arith.constant 0 : i32
    return %arg0, %c0_i32, %c0_i32_0, %c0_i32_1 : i32, i32, i32, i32
  }
  func.func @transform_1(%arg0: i32) -> (i32, i32) {
    %c0_i32 = arith.constant 0 : i32
    %c0_i32_0 = arith.constant 0 : i32
    %c0_i32_1 = arith.constant 0 : i32
    return %c0_i32, %c0_i32_0 : i32, i32
  }
  func.func @transform_2(%arg0: i32) -> (i32, i32) {
    %c0_i32 = arith.constant 0 : i32
    %c0_i32_0 = arith.constant 0 : i32
    %c0_i32_1 = arith.constant 0 : i32
    return %c0_i32, %c0_i32_0 : i32, i32
  }
  func.func @transform_3(%arg0: i32) -> (i32, i32) {
    %c0_i32 = arith.constant 0 : i32
    %c0_i32_0 = arith.constant 0 : i32
    %c0_i32_1 = arith.constant 0 : i32
    return %c0_i32, %c0_i32_0 : i32, i32
  }
  func.func @transform_4(%arg0: i32) -> (i32, i32) {
    %c0_i32 = arith.constant 0 : i32
    %c0_i32_0 = arith.constant 0 : i32
    %c0_i32_1 = arith.constant 0 : i32
    return %c0_i32, %c0_i32_0 : i32, i32
  }
  func.func @transform_5(%arg0: i32) -> (i32, i32, i32, i32) {
    %c0_i32 = arith.constant 0 : i32
    %c0_i32_0 = arith.constant 0 : i32
    %c0_i32_1 = arith.constant 0 : i32
    %c0_i32_2 = arith.constant 0 : i32
    return %arg0, %c0_i32, %c0_i32_0, %c0_i32_1 : i32, i32, i32, i32
  }
}

</mosaic_0001>

<bundles_post_ra>
// kernel: tpu_custom_call.1
= control target key start
LH: loop header
LB: loop body
LE: loop exit
PB: predicated region body
PF: predicated region fallthrough
CT: control target
= control target key end

     0   :  { %10 = vsyncpa [#allocation4], 0  ;;  %s5256_s0 = inlined_call_operand.vmem [shape: f32[4,12,18,128], index: 0, kind: input, shape index: {}]   ;;  %s5257_s1 = inlined_call_operand.vmem [shape: f32[1152,128], index: 1, kind: input, shape index: {}]   ;;  %s5258_s2 = inlined_call_operand.vmem [shape: f32[1,128], index: 2, kind: input, shape index: {}]   ;;  %s5259_s3 = inlined_call_operand.hbm [shape: f32[1152,128], index: 3, kind: input, shape index: {}]   ;;  %s5260_s4 = inlined_call_operand.vmem [shape: f32[1,128], index: 4, kind: input, shape index: {}]   ;;  %s5261_s5 = inlined_call_operand.hbm [shape: f32[4,8,16,128], index: 5, kind: output, shape index: {}]  }
   0x1   :  { %11 = vsyncpa [#allocation5], 0 }
   0x2   :  { %13 = vsyncpa [#allocation5 + $0x1], 0  ;;  %s3455_s18 = smov 0   ;;  %s3457_s19 = smov 0  }
   0x3   :  { %s3459_s20 = smov 0   ;;  %s3461_s21 = smov 0  }
   0x4 LB: > { %s3476_s22 = sadd.s32 4294967295, %s3414_s21   ;;  %s2739_s23 = sadd.s32 4294967294, %s3414_s21   ;;  %s3414_s21 = sphi %s3461_s21, %s5316_s21   ;;  %s3410_s20 = sphi %s3459_s20, %s5315_s20   ;;  %s3406_s19 = sphi %s3457_s19, %s5314_s19   ;;  %s3402_s18 = sphi %s3455_s18, %s5313_s18  }
   0x5   : > { %s3480_s24 = sadd.s32 1, %s3414_s21   ;;  %s136_s25 = sadd.s32 1, %s3410_s20 }
   0x6   : > { %s133_s26 = ssub.s32 %s3414_s21, %s3480_s24  ;;  %p146_p0 = scmp.ne.s32.totalorder %s3410_s20, %s3406_s19 }
   0x7   : > { %p134_p1 = scmp.eq.s32.totalorder %s133_s26, 0  ;;  %p147_p2 = scmp.eq.s32.totalorder %s3476_s22, 3 }
   0x8   : > { %p152_p3 = scmp.ne.s32.totalorder %s3406_s19, %s3402_s18  ;;  %p153_p4 = scmp.eq.s32.totalorder %s2739_s23, 3 }
   0x9   : > { %s3491_s27 = scalar_select %p134_p1, %s3410_s20, %s136_s25  }
   0xa   : > { %p3493_p5 = por %p147_p2, %p146_p0  ;;  %p3497_p6 = por %p153_p4, %p152_p3 }
   0xb   : > { %p2740_p7 = scmp.ge.s32.totalorder %s3414_s21, 1  ;;  %p160_p8 = scmp.lt.s32.totalorder %s3414_s21, 5 }
   0xc   : > { %s5264_s29 = scalar_select %p3497_p6, 1, 0 }
   0xd   : > { %p3281_p9 = scmp.eq.s32.totalorder %s3476_s22, 0  ;;  %p3504_p10 = pnand %p2740_p7, %p160_p8 }
   0xe   : > { %s3416_s6 = smov [#allocation3]  }
   0xf   : > { %s178_s7 = sshll.u32 %s3416_s6, 4  ;;  %p3273_p11 = pneg %p3504_p10  ;;  %s179_s7 = int_to_ptr.vmem [resolvable:$true] %s178_s7 }
  0x10   : > { %s3335_s8 = scalar_lea.vmem %s179_s7, 18432  ;;  %p3343_p3 = scmp.lt.s32.totalorder %s179_s7, %s179_s7 }
  0x11   : > { %p3274_p12 = pnand %p3281_p9, %p3273_p11  ;;  %p3336_p0 = scmp.ne.s32.totalorder %s179_s7, %s3335_s8 }
  0x12   : > { %p3344_p4 = scmp.lt.s32.totalorder %s3335_s8, %s3335_s8 }
  0x13   : > { %p3326_p13 = pneg %p3274_p12 }
  0x14   : > { %p3345_p6 = por %p3344_p4, %p3343_p3 }
  0x15   : > { %p3338_p1 = pnand %p3336_p0, %p3326_p13 }
  0x17   : > { %p3339_p2 = pneg %p3338_p1 }
  0x19   : > { %p3346_p7 = pnand %p3345_p6, %p3339_p2 }
  0x1b   : > { %3349 = shalt.err (!%p3346_p7)
}
  0x1c   : > { %s3417_s9 = smov 128   ;;  %s3418_s10 = smov 8  }
  0x1d   : > { %3276 = dma.hbm_to_vmem [thread:$0]  (!%p3274_p12), %s5259_s3, 18432, %s179_s7, [#allocation4], %s3417_s9, %s3417_s9, %s3418_s10  }
  0x1e   : > { %205 = sbr.rel (%p3504_p10) target bundleno = 938 (0x3aa), region = 40 }
  0x23   : > { %3393 = dma.done.wait (%p3281_p9), [#allocation4], 18432  }
  0x24   : > { %3395 = vsyncadd (%p3281_p9), [#allocation4], 4294948864  ;;  %s230_s13 = sand.u32 1, %s3406_s19   ;;  %p238_p6 = scmp.lt.s32.totalorder %s3476_s22, 0  ;;  %v3419_v0 = vmov 0.0   ;;  %v507_v1 = vld [vmem:[%s5257_s1 + $0x78] sm:$0xff] }
  0x25   : > { %1508 = vst [vmem:[#allocation2] sm:$0x1] %v3419_v0  ;;  %1509 = vst [vmem:[#allocation2 + $0x18] sm:$0x1] %v3419_v0  ;;  %s3545_s14 = sshll.u32 %s230_s13, 7  ;;  %s239_s15 = ssub.s32 0, %s3476_s22  ;;  %643 = vmatprep.subr.mxu0 %v3419_v0  ;;  %808 = vmatprep.subr.mxu1 %v3419_v0 }
  0x26   : > { %1510 = vst [vmem:[#allocation2 + $0x30] sm:$0x1] %v3419_v0  ;;  %1511 = vst [vmem:[#allocation2 + $0x48] sm:$0x1] %v3419_v0  ;;  %s2747_s16 = smin.u32 %s3476_s22, %s239_s15  ;;  %v506_v2 = vld [vmem:[%s5257_s1 + $0x70] sm:$0xff]  ;;  %v539_v3 = vld [vmem:[%s5257_s1 + $0x178] sm:$0xff]  ;;  %644 = vmatpush1.msra.mxu0 %v507_v1 }
  0x27   : > { %1512 = vst [vmem:[#allocation2 + $0x60] sm:$0x1] %v3419_v0  ;;  %1513 = vst [vmem:[#allocation2 + $0x78] sm:$0x1] %v3419_v0  ;;  %s241_s17 = sand.u32 1, %s2747_s16   ;;  %809 = vmatpush1.msra.mxu1 %v539_v3  ;;  %v538_v4 = vld [vmem:[%s5257_s1 + $0x170] sm:$0xff]  ;;  %645 = vmatprep.subr.mxu0 %v3419_v0 }
  0x28   : > { %1514 = vst [vmem:[#allocation2 + $0x90] sm:$0x1] %v3419_v0  ;;  %1515 = vst [vmem:[#allocation2 + $0xa8] sm:$0x1] %v3419_v0  ;;  %s242_s23 = ssub.s32 0, %s241_s17  ;;  %810 = vmatprep.subr.mxu1 %v3419_v0  ;;  %v505_v5 = vld [vmem:[%s5257_s1 + $0x68] sm:$0xff]  ;;  %646 = vmatpush1.msra.mxu0 %v506_v2 }
  0x29   : > { %1516 = vst [vmem:[#allocation2 + $0xc0] sm:$0x1] %v3419_v0  ;;  %1517 = vst [vmem:[#allocation2 + $0xd8] sm:$0x1] %v3419_v0  ;;  %s5318_s23 = smov (!%p238_p6, %s242_s23), %s241_s17  ;;  %v537_v6 = vld [vmem:[%s5257_s1 + $0x168] sm:$0xff]  ;;  %811 = vmatpush1.msra.mxu1 %v538_v4  ;;  %647 = vmatprep.subr.mxu0 %v3419_v0  ;;  %v504_v7 = vld [vmem:[%s5257_s1 + $0x60] sm:$0xff] }
  0x2a   : > { %1518 = vst [vmem:[#allocation2 + $0x11] sm:$0x1] %v3419_v0  ;;  %1519 = vst [vmem:[#allocation2 + $0x29] sm:$0x1] %v3419_v0  ;;  %p2749_p8 = scmp.lt.s32.totalorder %s5318_s23, 0  ;;  %s248_s25 = sadd.s32 2, %s5318_s23  ;;  %812 = vmatprep.subr.mxu1 %v3419_v0  ;;  %648 = vmatpush1.msra.mxu0 %v505_v5 }
  0x2b   : > { %1520 = vst [vmem:[#allocation2 + $0x41] sm:$0x1] %v3419_v0  ;;  %1521 = vst [vmem:[#allocation2 + $0x59] sm:$0x1] %v3419_v0  ;;  %v536_v8 = vld [vmem:[%s5257_s1 + $0x160] sm:$0xff]  ;;  %813 = vmatpush1.msra.mxu1 %v537_v6  ;;  %649 = vmatprep.subr.mxu0 %v3419_v0  ;;  %v503_v9 = vld [vmem:[%s5257_s1 + $0x58] sm:$0xff] }
  0x2c   : > { %1522 = vst [vmem:[#allocation2 + $0x71] sm:$0x1] %v3419_v0  ;;  %1523 = vst [vmem:[#allocation2 + $0x89] sm:$0x1] %v3419_v0  ;;  %s5320_s25 = smov (!%p2749_p8, %s248_s25), %s5318_s23  ;;  %814 = vmatprep.subr.mxu1 %v3419_v0  ;;  %v535_v10 = vld [vmem:[%s5257_s1 + $0x158] sm:$0xff]  ;;  %650 = vmatpush1.msra.mxu0 %v504_v7  ;;  %v502_v11 = vld [vmem:[%s5257_s1 + $0x50] sm:$0xff] }
  0x2d   : > { %1524 = vst [vmem:[#allocation2 + $0xa1] sm:$0x1] %v3419_v0  ;;  %1525 = vst [vmem:[#allocation2 + $0xb9] sm:$0x1] %v3419_v0  ;;  %815 = vmatpush1.msra.mxu1 %v536_v8  ;;  %651 = vmatprep.subr.mxu0 %v3419_v0  ;;  %v534_v12 = vld [vmem:[%s5257_s1 + $0x150] sm:$0xff]  ;;  %v501_v13 = vld [vmem:[%s5257_s1 + $0x48] sm:$0xff] }
  0x2e   : > { %1526 = vst [vmem:[#allocation2 + $0xd1] sm:$0x1] %v3419_v0  ;;  %1527 = vst [vmem:[#allocation2 + $0xe9] sm:$0x1] %v3419_v0  ;;  %816 = vmatprep.subr.mxu1 %v3419_v0  ;;  %652 = vmatpush1.msra.mxu0 %v503_v9  ;;  %v533_v14 = vld [vmem:[%s5257_s1 + $0x148] sm:$0xff]  ;;  %v500_v15 = vld [vmem:[%s5257_s1 + $0x40] sm:$0xff] }
  0x2f   : > { %817 = vmatpush1.msra.mxu1 %v535_v10  ;;  %653 = vmatprep.subr.mxu0 %v3419_v0  ;;  %v532_v16 = vld [vmem:[%s5257_s1 + $0x140] sm:$0xff]  ;;  %v499_v17 = vld [vmem:[%s5257_s1 + $0x38] sm:$0xff]  ;;  %v498_v19 = vld [vmem:[%s5257_s1 + $0x30] sm:$0xff]  ;;  %p233_p9 = scmp.lt.s32.totalorder %s3476_s22, 3  ;;  %vm316_vm0 = vcmask 1046528   ;;  %vm387_vm1 = vcmask 1045504  }
  0x30   : > { %818 = vmatprep.subr.mxu1 %v3419_v0  ;;  %654 = vmatpush1.msra.mxu0 %v502_v11  ;;  %v531_v18 = vld [vmem:[%s5257_s1 + $0x138] sm:$0xff]  ;;  %v530_v20 = vld [vmem:[%s5257_s1 + $0x130] sm:$0xff]  ;;  %v497_v21 = vld [vmem:[%s5257_s1 + $0x28] sm:$0xff]  ;;  %s4722_s17 = scalar_lea.vmem [#allocation6], %s3545_s14  ;;  %p2751_p10 = scmp.ne.s32.totalorder %s5320_s25, 0 }
  0x31   : > { %819 = vmatpush1.msra.mxu1 %v534_v12  ;;  %655 = vmatprep.subr.mxu0 %v3419_v0  ;;  %v529_v22 = vld [vmem:[%s5257_s1 + $0x128] sm:$0xff]  ;;  %v496_v23 = vld [vmem:[%s5257_s1 + $0x20] sm:$0xff]  ;;  %v495_v25 = vld [vmem:[%s5257_s1 + $0x18] sm:$0xff]  ;;  %s234_s16 = scalar_select %p233_p9, %s3476_s22, 3 }
  0x32   : > { %820 = vmatprep.subr.mxu1 %v3419_v0  ;;  %656 = vmatpush1.msra.mxu0 %v501_v13  ;;  %v528_v24 = vld [vmem:[%s5257_s1 + $0x120] sm:$0xff]  ;;  %v527_v26 = vld [vmem:[%s5257_s1 + $0x118] sm:$0xff]  ;;  %v494_v27 = vld [vmem:[%s5257_s1 + $0x10] sm:$0xff] }
  0x33   : > { %821 = vmatpush1.msra.mxu1 %v533_v14  ;;  %657 = vmatprep.subr.mxu0 %v3419_v0  ;;  %v526_v28 = vld [vmem:[%s5257_s1 + $0x110] sm:$0xff]  ;;  %v493_v29 = vld [vmem:[%s5257_s1 + $0x8] sm:$0xff]  ;;  %v492_v31 = vld [vmem:[%s5257_s1] sm:$0xff]  ;;  %s3266_s10 = smul.u32 288, %s234_s16 }
  0x34   : > { %822 = vmatprep.subr.mxu1 %v3419_v0  ;;  %658 = vmatpush1.msra.mxu0 %v500_v15  ;;  %v525_v30 = vld [vmem:[%s5257_s1 + $0x108] sm:$0xff]  ;;  %v524_v32 = vld [vmem:[%s5257_s1 + $0x100] sm:$0xff]  ;;  %v523_v33 = vld [vmem:[%s5257_s1 + $0xf8] sm:$0xff] }
  0x35   : > { %823 = vmatpush1.msra.mxu1 %v532_v16  ;;  %659 = vmatprep.subr.mxu0 %v3419_v0  ;;  %v555_v34 = vld [vmem:[%s5257_s1 + $0x1f8] sm:$0xff]  ;;  %v522_v35 = vld [vmem:[%s5257_s1 + $0xf0] sm:$0xff]  ;;  %v521_v37 = vld [vmem:[%s5257_s1 + $0xe8] sm:$0xff]  ;;  %s3764_s8 = scalar_lea.vmem %s5256_s0, %s3266_s10 }
  0x36   : > { %824 = vmatprep.subr.mxu1 %v3419_v0  ;;  %660 = vmatpush1.msra.mxu0 %v499_v17  ;;  %v554_v36 = vld [vmem:[%s5257_s1 + $0x1f0] sm:$0xff]  ;;  %v553_v38 = vld [vmem:[%s5257_s1 + $0x1e8] sm:$0xff]  ;;  %v520_v39 = vld [vmem:[%s5257_s1 + $0xe0] sm:$0xff] }
  0x37   : > { %825 = vmatpush1.msra.mxu1 %v531_v18  ;;  %661 = vmatprep.subr.mxu0 %v3419_v0  ;;  %v552_v40 = vld [vmem:[%s5257_s1 + $0x1e0] sm:$0xff]  ;;  %v519_v41 = vld [vmem:[%s5257_s1 + $0xd8] sm:$0xff]  ;;  %v518_v43 = vld [vmem:[%s5257_s1 + $0xd0] sm:$0xff] }
  0x38   : > { %826 = vmatprep.subr.mxu1 %v3419_v0  ;;  %662 = vmatpush1.msra.mxu0 %v498_v19  ;;  %v551_v42 = vld [vmem:[%s5257_s1 + $0x1d8] sm:$0xff]  ;;  %v550_v44 = vld [vmem:[%s5257_s1 + $0x1d0] sm:$0xff]  ;;  %v517_v45 = vld [vmem:[%s5257_s1 + $0xc8] sm:$0xff] }
  0x39   : > { %827 = vmatpush1.msra.mxu1 %v530_v20  ;;  %663 = vmatprep.subr.mxu0 %v3419_v0  ;;  %v549_v46 = vld [vmem:[%s5257_s1 + $0x1c8] sm:$0xff]  ;;  %v516_v47 = vld [vmem:[%s5257_s1 + $0xc0] sm:$0xff]  ;;  %v515_v49 = vld [vmem:[%s5257_s1 + $0xb8] sm:$0xff] }
  0x3a   : > { %828 = vmatprep.subr.mxu1 %v3419_v0  ;;  %664 = vmatpush1.msra.mxu0 %v497_v21  ;;  %v548_v48 = vld [vmem:[%s5257_s1 + $0x1c0] sm:$0xff]  ;;  %v547_v50 = vld [vmem:[%s5257_s1 + $0x1b8] sm:$0xff]  ;;  %v514_v51 = vld [vmem:[%s5257_s1 + $0xb0] sm:$0xff] }
  0x3b   : > { %829 = vmatpush1.msra.mxu1 %v529_v22  ;;  %665 = vmatprep.subr.mxu0 %v3419_v0  ;;  %v546_v52 = vld [vmem:[%s5257_s1 + $0x1b0] sm:$0xff]  ;;  %v513_v53 = vld [vmem:[%s5257_s1 + $0xa8] sm:$0xff]  ;;  %v250_v55 = vld [vmem:[%s3764_s8] sm:$0xff] }
  0x3c   : > { %830 = vmatprep.subr.mxu1 %v3419_v0  ;;  %666 = vmatpush1.msra.mxu0 %v496_v23  ;;  %v545_v54 = vld [vmem:[%s5257_s1 + $0x1a8] sm:$0xff]  ;;  %v512_v57 = vld [vmem:[%s5257_s1 + $0xa0] sm:$0xff]  ;;  %v511_v59 = vld [vmem:[%s5257_s1 + $0x98] sm:$0xff]  ;;  %v317_v61 = vrot.slane %v250_v55, 1  ;;  %v388_v6 = vrot.slane %v250_v55, 2 }
  0x3d   : > { %831 = vmatpush1.msra.mxu1 %v528_v24  ;;  %667 = vmatprep.subr.mxu0 %v3419_v0  ;;  %v3776_v56 = vld [vmem:[%s3764_s8 + $0x8] sm:$0xff]  ;;  %v544_v58 = vld [vmem:[%s5257_s1 + $0x1a0] sm:$0xff]  ;;  %v543_v60 = vld [vmem:[%s5257_s1 + $0x198] sm:$0xff] }
  0x3e   : > { %832 = vmatprep.subr.mxu1 %v3419_v0  ;;  %668 = vmatpush1.msra.mxu0 %v495_v25  ;;  %v318_v62 = vrot.slane %v3776_v56, 1  ;;  %v510_v63 = vld [vmem:[%s5257_s1 + $0x90] sm:$0xff]  ;;  %v509_v3 = vld [vmem:[%s5257_s1 + $0x88] sm:$0xff]  ;;  %v389_v7 = vrot.slane %v3776_v56, 2  ;;  %v3815_v8 = vld [vmem:[%s3764_s8 + $0x20] sm:$0xff] }
  0x3f   : > { %833 = vmatpush1.msra.mxu1 %v527_v26  ;;  %669 = vmatprep.subr.mxu0 %v3419_v0  ;;  %v542_v1 = vld [vmem:[%s5257_s1 + $0x190] sm:$0xff]  ;;  %v541_v5 = vld [vmem:[%s5257_s1 + $0x188] sm:$0xff]  ;;  %v508_v9 = vld [vmem:[%s5257_s1 + $0x80] sm:$0xff]  ;;  %v323_v14 = vrot.slane %v3815_v8, 1  ;;  %v394_v25 = vrot.slane %v3815_v8, 2 }
  0x40   : > { %834 = vmatprep.subr.mxu1 %v3419_v0  ;;  %670 = vmatpush1.msra.mxu0 %v494_v27  ;;  %v252_v2 = vld [vmem:[%s3764_s8 + $0x10] sm:$0x3]  ;;  %v319_v4 = vsel %vm316_vm0, %v317_v61, %v318_v62  ;;  %v253_v11 = vld [vmem:[%s3764_s8 + $0x18] sm:$0xff]  ;;  %v540_v12 = vld [vmem:[%s5257_s1 + $0x180] sm:$0xff]  ;;  %v390_v16 = vsel %vm387_vm1, %v388_v6, %v389_v7 }
  0x41   : > { %835 = vmatpush1.msra.mxu1 %v526_v28  ;;  %671 = vmatprep.subr.mxu0 %v3419_v0  ;;  %v320_v10 = vrot.slane %v252_v2, 1  ;;  %v322_v13 = vrot.slane %v253_v11, 1  ;;  %v571_v15 = vld [vmem:[%s5257_s1 + $0x278] sm:$0xff]  ;;  %v391_v17 = vrot.slane %v252_v2, 2  ;;  %v255_v18 = vld [vmem:[%s3764_s8 + $0x28] sm:$0x3] }
  0x42   : > { %836 = vmatprep.subr.mxu1 %v3419_v0  ;;  %672 = vmatpush1.msra.mxu0 %v493_v29  ;;  %v570_v20 = vld [vmem:[%s5257_s1 + $0x270] sm:$0xff]  ;;  %v325_v22 = vrot.slane %v255_v18, 1  ;;  %v393_v24 = vrot.slane %v253_v11, 2  ;;  %v3846_v26 = vld [vmem:[%s3764_s8 + $0x38] sm:$0xff]  ;;  %v569_v27 = vld [vmem:[%s5257_s1 + $0x268] sm:$0xff] }
  0x43   : > { %837 = vmatpush1.msra.mxu1 %v525_v30  ;;  %673 = vmatprep.subr.mxu0 %v3419_v0  ;;  %v321_v19 = vsel %vm316_vm0, %v318_v62, %v320_v10  ;;  %v3840_v21 = vsel %vm316_vm0, %v322_v13, %v323_v14  ;;  %v392_v23 = vsel %vm387_vm1, %v389_v7, %v391_v17  ;;  %v3854_v28 = vld [vmem:[%s3764_s8 + $0x30] sm:$0xff]  ;;  %v568_v29 = vld [vmem:[%s5257_s1 + $0x260] sm:$0xff]  ;;  %v599_v6 = vld [vmem:[%s5257_s1 + $0x358] sm:$0xff] }
  0x44   : > { %838 = vmatprep.subr.mxu1 %v3419_v0  ;;  %674 = vmatpush1.msra.mxu0 %v492_v31  ;;  %v3862_v30 = vsel %vm316_vm0, %v323_v14, %v325_v22  ;;  %v327_v31 = vrot.slane %v3854_v28, 1  ;;  %v562_v62 = vld [vmem:[%s5257_s1 + $0x230] sm:$0xff]  ;;  %v560_v10 = vld [vmem:[%s5257_s1 + $0x220] sm:$0xff] }
  0x45   : > { %839 = vmatpush1.msra.mxu1 %v524_v32  ;;  %675 = vmatprep.subr.mxu0 %v3419_v0  ;;  %v328_v32 = vrot.slane %v3846_v26, 1  ;;  %v596_v22 = vld [vmem:[%s5257_s1 + $0x340] sm:$0xff] }
  0x46   : > { %840 = vmatprep.subr.mxu1 %v3419_v0  ;;  %676 = vmatpush2.msra.mxu0 %v523_v33  ;;  %v3868_v33 = vsel %vm387_vm1, %v393_v24, %v394_v25  ;;  %v558_v24 = vld [vmem:[%s5257_s1 + $0x210] sm:$0xff] }
  0x47   : > { %841 = vmatpush2.msra.mxu1 %v555_v34  ;;  %677 = vmatprep.subr.mxu0 %v3419_v0  ;;  %v396_v34 = vrot.slane %v255_v18, 2  ;;  %v597_v18 = vld [vmem:[%s5257_s1 + $0x348] sm:$0xff] }
  0x48   : > { %842 = vmatprep.subr.mxu1 %v3419_v0  ;;  %678 = vmatpush2.msra.mxu0 %v522_v35  ;;  %v258_v35 = vld [vmem:[%s3764_s8 + $0x40] sm:$0x3] }
  0x49   : > { %843 = vmatpush2.msra.mxu1 %v554_v36  ;;  %679 = vmatprep.subr.mxu0 %v3419_v0  ;;  %v567_v36 = vld [vmem:[%s5257_s1 + $0x258] sm:$0xff] }
  0x4a   : > { %844 = vmatprep.subr.mxu1 %v3419_v0  ;;  %680 = vmatpush2.msra.mxu0 %v521_v37  ;;  %v566_v37 = vld [vmem:[%s5257_s1 + $0x250] sm:$0xff] }
  0x4b   : > { %845 = vmatpush2.msra.mxu1 %v553_v38  ;;  %681 = vmatprep.subr.mxu0 %v3419_v0  ;;  %v3882_v38 = vsel %vm316_vm0, %v327_v31, %v328_v32 }
  0x4c   : > { %846 = vmatprep.subr.mxu1 %v3419_v0  ;;  %682 = vmatpush2.msra.mxu0 %v520_v39  ;;  %v330_v39 = vrot.slane %v258_v35, 1 }
  0x4d   : > { %847 = vmatpush2.msra.mxu1 %v552_v40  ;;  %683 = vmatprep.subr.mxu0 %v3419_v0  ;;  %v3886_v40 = vsel %vm387_vm1, %v394_v25, %v396_v34  ;;  %v4026_v25 = vld [vmem:[%s3764_s8 + $0x80] sm:$0xff] }
  0x4e   : > { %848 = vmatprep.subr.mxu1 %v3419_v0  ;;  %684 = vmatpush2.msra.mxu0 %v519_v41  ;;  %v398_v41 = vrot.slane %v3854_v28, 2  ;;  %v343_v34 = vrot.slane %v4026_v25, 1 }
  0x4f   : > { %849 = vmatpush2.msra.mxu1 %v551_v42  ;;  %685 = vmatprep.subr.mxu0 %v3419_v0  ;;  %v399_v42 = vrot.slane %v3846_v26, 2 }
  0x50   : > { %850 = vmatprep.subr.mxu1 %v3419_v0  ;;  %686 = vmatpush2.msra.mxu0 %v518_v43  ;;  %v565_v43 = vld [vmem:[%s5257_s1 + $0x248] sm:$0xff] }
  0x51   : > { %851 = vmatpush2.msra.mxu1 %v550_v44  ;;  %687 = vmatprep.subr.mxu0 %v3419_v0  ;;  %v3896_v44 = vld [vmem:[%s3764_s8 + $0x48] sm:$0xff] }
  0x52   : > { %852 = vmatprep.subr.mxu1 %v3419_v0  ;;  %688 = vmatpush2.msra.mxu0 %v517_v45  ;;  %v3899_v45 = vld [vmem:[%s3764_s8 + $0x50] sm:$0xff] }
  0x53   : > { %853 = vmatpush2.msra.mxu1 %v549_v46  ;;  %689 = vmatprep.subr.mxu0 %v3419_v0  ;;  %v3905_v46 = vsel %vm316_vm0, %v328_v32, %v330_v39 }
  0x54   : > { %854 = vmatprep.subr.mxu1 %v3419_v0  ;;  %690 = vmatpush2.msra.mxu0 %v516_v47  ;;  %v3909_v47 = vsel %vm387_vm1, %v398_v41, %v399_v42 }
  0x55   : > { %855 = vmatpush2.msra.mxu1 %v548_v48  ;;  %691 = vmatprep.subr.mxu0 %v3419_v0  ;;  %v564_v48 = vld [vmem:[%s5257_s1 + $0x240] sm:$0xff] }
  0x56   : > { %856 = vmatprep.subr.mxu1 %v3419_v0  ;;  %692 = vmatpush2.msra.mxu0 %v515_v49  ;;  %v332_v49 = vrot.slane %v3896_v44, 1 }
  0x57   : > { %857 = vmatpush2.msra.mxu1 %v547_v50  ;;  %693 = vmatprep.subr.mxu0 %v3419_v0  ;;  %v333_v50 = vrot.slane %v3899_v45, 1 }
  0x58   : > { %858 = vmatprep.subr.mxu1 %v3419_v0  ;;  %694 = vmatpush2.msra.mxu0 %v514_v51  ;;  %v603_v51 = vld [vmem:[%s5257_s1 + $0x378] sm:$0xff] }
  0x59   : > { %859 = vmatpush2.msra.mxu1 %v546_v52  ;;  %695 = vmatprep.subr.mxu0 %v3419_v0  ;;  %v401_v52 = vrot.slane %v258_v35, 2  ;;  %v557_v35 = vld [vmem:[%s5257_s1 + $0x208] sm:$0xff] }
  0x5a   : > { %860 = vmatprep.subr.mxu1 %v3419_v0  ;;  %696 = vmatpush2.msra.mxu0 %v513_v53  ;;  %v563_v53 = vld [vmem:[%s5257_s1 + $0x238] sm:$0xff] }
  0x5b   : > { %861 = vmatpush2.msra.mxu1 %v545_v54  ;;  %697 = vmatprep.subr.mxu0 %v3419_v0  ;;  %v602_v54 = vld [vmem:[%s5257_s1 + $0x370] sm:$0xff] }
  0x5c   : > { %862 = vmatprep.subr.mxu1 %v3419_v0  ;;  %698 = vmatpush2.msra.mxu0 %v512_v57  ;;  %v3938_v57 = vsel %vm387_vm1, %v399_v42, %v401_v52  ;;  %v556_v42 = vld [vmem:[%s5257_s1 + $0x200] sm:$0xff]  ;;  %v587_v52 = vld [vmem:[%s5257_s1 + $0x2f8] sm:$0xff] }
  0x5d   : > { %863 = vmatpush2.msra.mxu1 %v544_v58  ;;  %699 = vmatprep.subr.mxu0 %v3419_v0  ;;  %v601_v58 = vld [vmem:[%s5257_s1 + $0x368] sm:$0xff] }
  0x5e   : > { %864 = vmatprep.subr.mxu1 %v3419_v0  ;;  %700 = vmatpush2.msra.mxu0 %v511_v59  ;;  %v403_v59 = vrot.slane %v3896_v44, 2 }
  0x5f   : > { %865 = vmatpush2.msra.mxu1 %v543_v60  ;;  %701 = vmatprep.subr.mxu0 %v3419_v0  ;;  %v404_v60 = vrot.slane %v3899_v45, 2 }
  0x60   : > { %866 = vmatprep.subr.mxu1 %v3419_v0  ;;  %702 = vmatpush2.msra.mxu0 %v510_v63  ;;  %v3953_v63 = vld [vmem:[%s3764_s8 + $0x60] sm:$0xff] }
  0x61   : > { %867 = vmatpush2.msra.mxu1 %v542_v1  ;;  %703 = vmatprep.subr.mxu0 %v3419_v0  ;;  %v600_v1 = vld [vmem:[%s5257_s1 + $0x360] sm:$0xff]  ;;  %v3962_v2 = vsel %vm387_vm1, %v403_v59, %v404_v60  ;;  %v591_v59 = vld [vmem:[%s5257_s1 + $0x318] sm:$0xff] }
  0x62   : > { %868 = vmatprep.subr.mxu1 %v3419_v0  ;;  %704 = vmatpush2.msra.mxu0 %v509_v3  ;;  %v561_v3 = vld [vmem:[%s5257_s1 + $0x228] sm:$0xff] }
  0x63   : > { %707 = vmatprep.mubr.f32.mxu0 %v319_v4  ;;  %705 = vmatprep.subr.mxu0 %v3419_v0  ;;  %v3968_v4 = vld [vmem:[%s3764_s8 + $0x68] sm:$0xff] }
  0x64   : > { %869 = vmatpush2.msra.mxu1 %v541_v5  ;;  %706 = vmatpush2.msra.mxu0 %v508_v9  ;;  %v338_v9 = vrot.slane %v3968_v4, 1  ;;  %v409_v17 = vrot.slane %v3968_v4, 2 }
  0x65   : > { %870 = vmatprep.subr.mxu1 %v3419_v0  ;;  %708 = vmatmul.mubr.f32.vlgmr.msra.gmra.mxu0 %v250_v55  ;;  %v3932_v55 = vsel %vm316_vm0, %v332_v49, %v333_v50 }
  0x66   : > { %973 = vmatprep.subr.mxu0 %v3419_v0  ;;  %871 = vmatpush2.msra.mxu1 %v540_v12  ;;  %v264_v12 = vld [vmem:[%s3764_s8 + $0x70] sm:$0x3] }
  0x67   : > { %872 = vmatprep.mubr.f32.mxu1 %v253_v11  ;;  %974 = vmatpush1.msra.mxu0 %v571_v15  ;;  %v559_v15 = vld [vmem:[%s5257_s1 + $0x218] sm:$0xff]  ;;  %v411_v31 = vrot.slane %v264_v12, 2 }
  0x68   : > { %873 = vmatmul.mubr.f32.vlgmr.msra.gmra.mxu1 %v390_v16  ;;  %712 = vmatprep.mubr.f32.mxu0 %v321_v19  ;;  %v408_v16 = vrot.slane %v3953_v63, 2  ;;  %v340_v19 = vrot.slane %v264_v12, 1 }
  0x69   : > { %975 = vmatprep.subr.mxu0 %v3419_v0  ;;  %713 = vmatmul.mubr.f32.gmra.mxu0 %v3776_v56  ;;  %v261_v56 = vld [vmem:[%s3764_s8 + $0x58] sm:$0x3]  ;;  %v4053_v39 = vsel %vm387_vm1, %v409_v17, %v411_v31 }
  0x6a   : > { %877 = vmatprep.mubr.f32.mxu1 %v3815_v8  ;;  %976 = vmatpush1.msra.mxu0 %v570_v20  ;;  %v335_v61 = vrot.slane %v261_v56, 1  ;;  %v406_v7 = vrot.slane %v261_v56, 2  ;;  %v4012_v20 = vld [vmem:[%s3764_s8 + $0x78] sm:$0xff] }
  0x6b   : > { %717 = vmatprep.mubr.f32.mxu0 %v3840_v21  ;;  %977 = vmatprep.subr.mxu0 %v3419_v0  ;;  %v342_v32 = vrot.slane %v4012_v20, 1  ;;  %v413_v49 = vrot.slane %v4012_v20, 2  ;;  %v4085_v56 = vld [vmem:[%s3764_s8 + $0x98] sm:$0xff] }
  0x6c   : > { %878 = vmatmul.mubr.f32.gmra.mxu1 %v392_v23  ;;  %978 = vmatpush1.msra.mxu0 %v569_v27  ;;  %v3972_v5 = vsel %vm316_vm0, %v333_v50, %v335_v61  ;;  %v3994_v13 = vsel %vm387_vm1, %v404_v60, %v406_v7  ;;  %v4020_v23 = vsel %vm387_vm1, %v408_v16, %v409_v17  ;;  %v414_v50 = vrot.slane %v4026_v25, 2  ;;  %v585_v7 = vld [vmem:[%s5257_s1 + $0x2e8] sm:$0xff]  ;;  %v584_v17 = vld [vmem:[%s5257_s1 + $0x2e0] sm:$0xff] }
  0x6d   : > { %882 = vmatprep.mubr.f32.mxu1 %v3854_v28  ;;  %718 = vmatmul.mubr.f32.gmra.mxu0 %v253_v11  ;;  %v598_v11 = vld [vmem:[%s5257_s1 + $0x350] sm:$0xff]  ;;  %v4031_v27 = vsel %vm316_vm0, %v338_v9, %v340_v19  ;;  %v4057_v41 = vsel %vm316_vm0, %v342_v32, %v343_v34  ;;  %v419_v12 = vrot.slane %v4085_v56, 2  ;;  %v4131_v16 = vld [vmem:[%s3764_s8 + $0xa8] sm:$0xff]  ;;  %v619_v32 = vld [vmem:[%s5257_s1 + $0x3f8] sm:$0xff] }
  0x6e   : > { %979 = vmatprep.subr.mxu0 %v3419_v0  ;;  %722 = vmatprep.mubr.f32.mxu0 %v3862_v30  ;;  %v4141_v19 = vld [vmem:[%s3764_s8 + $0xb0] sm:$0xff] }
  0x6f   : > { %980 = vmatpush1.msra.mxu0 %v568_v29  ;;  %1138 = vmatprep.subr.mxu1 %v3419_v0  ;;  %v595_v29 = vld [vmem:[%s5257_s1 + $0x338] sm:$0xff] }
  0x70   : > { %883 = vmatmul.mubr.f32.gmra.mxu1 %v3868_v33  ;;  %981 = vmatprep.subr.mxu0 %v3419_v0 }
  0x71   : > { %982 = vmatpush1.msra.mxu0 %v567_v36  ;;  %887 = vmatprep.mubr.f32.mxu1 %v3846_v26  ;;  %v267_v36 = vld [vmem:[%s3764_s8 + $0x88] sm:$0x3] }
  0x72   : > { %723 = vmatmul.mubr.f32.gmra.mxu0 %v3815_v8  ;;  %983 = vmatprep.subr.mxu0 %v3419_v0  ;;  %v337_v8 = vrot.slane %v3953_v63, 1  ;;  %v416_v60 = vrot.slane %v267_v36, 2 }
  0x73   : > { %984 = vmatpush1.msra.mxu0 %v566_v37  ;;  %727 = vmatprep.mubr.f32.mxu0 %v3882_v38  ;;  %v594_v37 = vld [vmem:[%s5257_s1 + $0x330] sm:$0xff] }
  0x74   : > { %888 = vmatmul.mubr.f32.gmra.mxu1 %v3886_v40  ;;  %985 = vmatprep.subr.mxu0 %v3419_v0  ;;  %v3998_v14 = vsel %vm316_vm0, %v337_v8, %v338_v9  ;;  %v270_v8 = vld [vmem:[%s3764_s8 + $0xa0] sm:$0x3] }
  0x75   : > { %986 = vmatpush1.msra.mxu0 %v565_v43  ;;  %892 = vmatprep.mubr.f32.mxu1 %v3896_v44  ;;  %v345_v43 = vrot.slane %v267_v36, 1  ;;  %v421_v31 = vrot.slane %v270_v8, 2  ;;  %v618_v36 = vld [vmem:[%s5257_s1 + $0x3f0] sm:$0xff] }
  0x76   : > { %728 = vmatmul.mubr.f32.gmra.mxu0 %v3854_v28  ;;  %987 = vmatprep.subr.mxu0 %v3419_v0 }
  0x77   : > { %732 = vmatprep.mubr.f32.mxu0 %v3905_v46  ;;  %988 = vmatpush1.msra.mxu0 %v564_v48  ;;  %v593_v48 = vld [vmem:[%s5257_s1 + $0x328] sm:$0xff] }
  0x78   : > { %893 = vmatmul.mubr.f32.gmra.mxu1 %v3909_v47  ;;  %989 = vmatprep.subr.mxu0 %v3419_v0 }
  0x79   : > { %1139 = vmatpush1.msra.mxu1 %v603_v51  ;;  %897 = vmatprep.mubr.f32.mxu1 %v3899_v45  ;;  %v4072_v51 = vld [vmem:[%s3764_s8 + $0x90] sm:$0xff] }
  0x7a   : > { %733 = vmatmul.mubr.f32.gmra.mxu0 %v3846_v26  ;;  %1140 = vmatprep.subr.mxu1 %v3419_v0  ;;  %v347_v61 = vrot.slane %v4072_v51, 1 }
  0x7b   : > { %990 = vmatpush1.msra.mxu0 %v563_v53  ;;  %1141 = vmatpush1.msra.mxu1 %v602_v54  ;;  %v592_v53 = vld [vmem:[%s5257_s1 + $0x320] sm:$0xff]  ;;  %v4082_v54 = vsel %vm316_vm0, %v343_v34, %v345_v43  ;;  %v352_v34 = vrot.slane %v4131_v16, 1  ;;  %v273_v43 = vld [vmem:[%s3764_s8 + $0xb8] sm:$0x3] }
  0x7c   : > { %737 = vmatprep.mubr.f32.mxu0 %v3932_v55  ;;  %898 = vmatmul.mubr.f32.gmra.mxu1 %v3938_v57 }
  0x7d   : > { %1142 = vmatprep.subr.mxu1 %v3419_v0  ;;  %991 = vmatprep.subr.mxu0 %v3419_v0 }
  0x7e   : > { %1143 = vmatpush1.msra.mxu1 %v601_v58  ;;  %738 = vmatmul.mubr.f32.gmra.mxu0 %v3896_v44  ;;  %v4090_v58 = vsel %vm387_vm1, %v413_v49, %v414_v50  ;;  %v617_v49 = vld [vmem:[%s5257_s1 + $0x3e8] sm:$0xff] }
  0x7f   : > { %1144 = vmatprep.subr.mxu1 %v3419_v0  ;;  %992 = vmatpush1.msra.mxu0 %v562_v62  ;;  %v348_v62 = vrot.slane %v4085_v56, 1 }
  0x80   : > { %902 = vmatprep.mubr.f32.mxu1 %v3953_v63  ;;  %993 = vmatprep.subr.mxu0 %v3419_v0 }
  0x81   : > { %1145 = vmatpush1.msra.mxu1 %v600_v1  ;;  %994 = vmatpush1.msra.mxu0 %v561_v3  ;;  %v586_v1 = vld [vmem:[%s5257_s1 + $0x2f0] sm:$0xff]  ;;  %v4119_v9 = vsel %vm316_vm0, %v347_v61, %v348_v62  ;;  %v4196_v61 = vld [vmem:[%s3764_s8 + $0xc8] sm:$0xff] }
  0x82   : > { %903 = vmatmul.mubr.f32.gmra.mxu1 %v3962_v2  ;;  %1146 = vmatprep.subr.mxu1 %v3419_v0  ;;  %v590_v3 = vld [vmem:[%s5257_s1 + $0x310] sm:$0xff] }
  0x83   : > { %742 = vmatprep.mubr.f32.mxu0 %v3972_v5  ;;  %1147 = vmatpush1.msra.mxu1 %v599_v6  ;;  %v4111_v6 = vsel %vm387_vm1, %v414_v50, %v416_v60  ;;  %v423_v50 = vrot.slane %v4131_v16, 2  ;;  %v4193_v60 = vld [vmem:[%s3764_s8 + $0xc0] sm:$0xff] }
  0x84   : > { %743 = vmatmul.mubr.f32.gmra.mxu0 %v3899_v45  ;;  %995 = vmatprep.subr.mxu0 %v3419_v0 }
  0x85   : > { %1148 = vmatprep.subr.mxu1 %v3419_v0  ;;  %907 = vmatprep.mubr.f32.mxu1 %v3968_v4 }
  0x86   : > { %996 = vmatpush1.msra.mxu0 %v560_v10  ;;  %1149 = vmatpush1.msra.mxu1 %v598_v11  ;;  %v589_v10 = vld [vmem:[%s5257_s1 + $0x308] sm:$0xff]  ;;  %v418_v11 = vrot.slane %v4072_v51, 2 }
  0x87   : > { %997 = vmatprep.subr.mxu0 %v3419_v0  ;;  %908 = vmatmul.mubr.f32.gmra.mxu1 %v3994_v13 }
  0x88   : > { %1150 = vmatprep.subr.mxu1 %v3419_v0  ;;  %747 = vmatprep.mubr.f32.mxu0 %v3998_v14 }
  0x89   : > { %998 = vmatpush1.msra.mxu0 %v559_v15  ;;  %1151 = vmatpush1.msra.mxu1 %v597_v18  ;;  %v350_v15 = vrot.slane %v270_v8, 1  ;;  %v588_v18 = vld [vmem:[%s5257_s1 + $0x300] sm:$0xff]  ;;  %v357_v8 = vrot.slane %v4193_v60, 1 }
  0x8a   : > { %748 = vmatmul.mubr.f32.gmra.mxu0 %v3953_v63  ;;  %1152 = vmatprep.subr.mxu1 %v3419_v0 }
  0x8b   : > { %912 = vmatprep.mubr.f32.mxu1 %v4012_v20  ;;  %999 = vmatprep.subr.mxu0 %v3419_v0 }
  0x8c   : > { %1153 = vmatpush1.msra.mxu1 %v596_v22  ;;  %1000 = vmatpush1.msra.mxu0 %v558_v24  ;;  %v4146_v22 = vsel %vm387_vm1, %v418_v11, %v419_v12  ;;  %v4150_v24 = vsel %vm316_vm0, %v348_v62, %v350_v15  ;;  %v616_v62 = vld [vmem:[%s5257_s1 + $0x3e0] sm:$0xff]  ;;  %v615_v11 = vld [vmem:[%s5257_s1 + $0x3d8] sm:$0xff] }
  0x8d   : > { %913 = vmatmul.mubr.f32.gmra.mxu1 %v4020_v23  ;;  %1154 = vmatprep.subr.mxu1 %v3419_v0  ;;  %v579_v15 = vld [vmem:[%s5257_s1 + $0x2b8] sm:$0xff] }
  0x8e   : > { %752 = vmatprep.mubr.f32.mxu0 %v4031_v27  ;;  %1001 = vmatprep.subr.mxu0 %v3419_v0 }
  0x8f   : > { %1155 = vmatpush1.msra.mxu1 %v595_v29  ;;  %753 = vmatmul.mubr.f32.gmra.mxu0 %v3968_v4  ;;  %v583_v29 = vld [vmem:[%s5257_s1 + $0x2d8] sm:$0xff] }
  0x90   : > { %1156 = vmatprep.subr.mxu1 %v3419_v0  ;;  %1002 = vmatpush1.msra.mxu0 %v557_v35  ;;  %v353_v35 = vrot.slane %v4141_v19, 1 }
  0x91   : > { %917 = vmatprep.mubr.f32.mxu1 %v4026_v25  ;;  %1157 = vmatpush1.msra.mxu1 %v594_v37  ;;  %v4169_v37 = vsel %vm387_vm1, %v419_v12, %v421_v31  ;;  %v426_v12 = vrot.slane %v273_v43, 2 }
  0x92   : > { %1003 = vmatprep.subr.mxu0 %v3419_v0  ;;  %918 = vmatmul.mubr.f32.gmra.mxu1 %v4053_v39 }
  0x93   : > { %1158 = vmatprep.subr.mxu1 %v3419_v0  ;;  %757 = vmatprep.mubr.f32.mxu0 %v4057_v41 }
  0x94   : > { %1004 = vmatpush1.msra.mxu0 %v556_v42  ;;  %1159 = vmatpush1.msra.mxu1 %v593_v48  ;;  %v582_v42 = vld [vmem:[%s5257_s1 + $0x2d0] sm:$0xff]  ;;  %v4178_v48 = vsel %vm316_vm0, %v352_v34, %v353_v35  ;;  %v428_v34 = vrot.slane %v4193_v60, 2 }
  0x95   : > { %758 = vmatmul.mubr.f32.gmra.mxu0 %v4012_v20  ;;  %1005 = vmatprep.subr.mxu0 %v3419_v0 }
  0x96   : > { %1160 = vmatprep.subr.mxu1 %v3419_v0  ;;  %922 = vmatprep.mubr.f32.mxu1 %v4072_v51 }
  0x97   : > { %1006 = vmatpush2.msra.mxu0 %v587_v52  ;;  %1161 = vmatpush1.msra.mxu1 %v592_v53  ;;  %v424_v52 = vrot.slane %v4141_v19, 2  ;;  %v355_v53 = vrot.slane %v273_v43, 1  ;;  %v4252_v43 = vld [vmem:[%s3764_s8 + $0xd8] sm:$0xff] }
  0x98   : > { %762 = vmatprep.mubr.f32.mxu0 %v4082_v54  ;;  %923 = vmatmul.mubr.f32.gmra.mxu1 %v4090_v58 }
  0x99   : > { %1162 = vmatprep.subr.mxu1 %v3419_v0  ;;  %1007 = vmatprep.subr.mxu0 %v3419_v0  ;;  %v4237_v31 = vsel %vm387_vm1, %v424_v52, %v426_v12  ;;  %v610_v12 = vld [vmem:[%s5257_s1 + $0x3b0] sm:$0xff] }
  0x9a   : > { %1163 = vmatpush1.msra.mxu1 %v591_v59  ;;  %763 = vmatmul.mubr.f32.gmra.mxu0 %v4026_v25  ;;  %v581_v59 = vld [vmem:[%s5257_s1 + $0x2c8] sm:$0xff] }
  0x9b   : > { %1164 = vmatprep.subr.mxu1 %v3419_v0  ;;  %1008 = vmatpush2.msra.mxu0 %v586_v1  ;;  %v4205_v1 = vsel %vm387_vm1, %v423_v50, %v424_v52  ;;  %v577_v52 = vld [vmem:[%s5257_s1 + $0x2a8] sm:$0xff] }
  0x9c   : > { %927 = vmatprep.mubr.f32.mxu1 %v4085_v56  ;;  %1009 = vmatprep.subr.mxu0 %v3419_v0 }
  0x9d   : > { %1165 = vmatpush1.msra.mxu1 %v590_v3  ;;  %1010 = vmatpush2.msra.mxu0 %v585_v7  ;;  %v4209_v3 = vsel %vm316_vm0, %v353_v35, %v355_v53  ;;  %v580_v7 = vld [vmem:[%s5257_s1 + $0x2c0] sm:$0xff]  ;;  %v429_v35 = vrot.slane %v4196_v61, 2 }
  0x9e   : > { %928 = vmatmul.mubr.f32.gmra.mxu1 %v4111_v6  ;;  %1166 = vmatprep.subr.mxu1 %v3419_v0  ;;  %v4267_v53 = vld [vmem:[%s3764_s8 + $0xe0] sm:$0xff] }
  0x9f   : > { %767 = vmatprep.mubr.f32.mxu0 %v4119_v9  ;;  %1167 = vmatpush1.msra.mxu1 %v589_v10  ;;  %v358_v10 = vrot.slane %v4196_v61, 1  ;;  %v4261_v50 = vsel %vm387_vm1, %v428_v34, %v429_v35  ;;  %v433_v34 = vrot.slane %v4252_v43, 2 }
  0xa0   : > { %768 = vmatmul.mubr.f32.gmra.mxu0 %v4072_v51  ;;  %1011 = vmatprep.subr.mxu0 %v3419_v0 }
  0xa1   : > { %1168 = vmatprep.subr.mxu1 %v3419_v0  ;;  %932 = vmatprep.mubr.f32.mxu1 %v4131_v16 }
  0xa2   : > { %1012 = vmatpush2.msra.mxu0 %v584_v17  ;;  %1169 = vmatpush1.msra.mxu1 %v588_v18  ;;  %v614_v17 = vld [vmem:[%s5257_s1 + $0x3d0] sm:$0xff]  ;;  %v4231_v18 = vsel %vm316_vm0, %v357_v8, %v358_v10  ;;  %v362_v8 = vrot.slane %v4252_v43, 1 }
  0xa3   : > { %1013 = vmatprep.subr.mxu0 %v3419_v0  ;;  %933 = vmatmul.mubr.f32.gmra.mxu1 %v4146_v22 }
  0xa4   : > { %1170 = vmatprep.subr.mxu1 %v3419_v0  ;;  %772 = vmatprep.mubr.f32.mxu0 %v4150_v24 }
  0xa5   : > { %1014 = vmatpush2.msra.mxu0 %v583_v29  ;;  %1171 = vmatpush2.msra.mxu1 %v619_v32  ;;  %v276_v29 = vld [vmem:[%s3764_s8 + $0xd0] sm:$0x3]  ;;  %v613_v32 = vld [vmem:[%s5257_s1 + $0x3c8] sm:$0xff] }
  0xa6   : > { %773 = vmatmul.mubr.f32.gmra.mxu0 %v4085_v56  ;;  %1172 = vmatprep.subr.mxu1 %v3419_v0 }
  0xa7   : > { %937 = vmatprep.mubr.f32.mxu1 %v4141_v19  ;;  %1015 = vmatprep.subr.mxu0 %v3419_v0 }
  0xa8   : > { %1173 = vmatpush2.msra.mxu1 %v618_v36  ;;  %1016 = vmatpush2.msra.mxu0 %v582_v42  ;;  %v360_v36 = vrot.slane %v276_v29, 1  ;;  %v578_v42 = vld [vmem:[%s5257_s1 + $0x2b0] sm:$0xff] }
  0xa9   : > { %938 = vmatmul.mubr.f32.gmra.mxu1 %v4169_v37  ;;  %1174 = vmatprep.subr.mxu1 %v3419_v0 }
  0xaa   : > { %777 = vmatprep.mubr.f32.mxu0 %v4178_v48  ;;  %1017 = vmatprep.subr.mxu0 %v3419_v0 }
  0xab   : > { %1175 = vmatpush2.msra.mxu1 %v617_v49  ;;  %778 = vmatmul.mubr.f32.gmra.mxu0 %v4131_v16  ;;  %v612_v49 = vld [vmem:[%s5257_s1 + $0x3c0] sm:$0xff] }
  0xac   : > { %1176 = vmatprep.subr.mxu1 %v3419_v0  ;;  %1018 = vmatpush2.msra.mxu0 %v581_v59  ;;  %v4271_v59 = vsel %vm316_vm0, %v358_v10, %v360_v36  ;;  %v576_v10 = vld [vmem:[%s5257_s1 + $0x2a0] sm:$0xff]  ;;  %v434_v36 = vrot.slane %v4267_v53, 2 }
  0xad   : > { %942 = vmatprep.mubr.f32.mxu1 %v4193_v60  ;;  %1177 = vmatpush2.msra.mxu1 %v616_v62  ;;  %v611_v62 = vld [vmem:[%s5257_s1 + $0x3b8] sm:$0xff] }
  0xae   : > { %1019 = vmatprep.subr.mxu0 %v3419_v0  ;;  %943 = vmatmul.mubr.f32.gmra.mxu1 %v4205_v1 }
  0xaf   : > { %1178 = vmatprep.subr.mxu1 %v3419_v0  ;;  %782 = vmatprep.mubr.f32.mxu0 %v4209_v3 }
  0xb0   : > { %1020 = vmatpush2.msra.mxu0 %v580_v7  ;;  %1179 = vmatpush2.msra.mxu1 %v615_v11  ;;  %v431_v7 = vrot.slane %v276_v29, 2  ;;  %v363_v11 = vrot.slane %v4267_v53, 1 }
  0xb1   : > { %783 = vmatmul.mubr.f32.gmra.mxu0 %v4141_v19  ;;  %1021 = vmatprep.subr.mxu0 %v3419_v0 }
  0xb2   : > { %1180 = vmatprep.subr.mxu1 %v3419_v0  ;;  %947 = vmatprep.mubr.f32.mxu1 %v4196_v61  ;;  %v4297_v29 = vsel %vm316_vm0, %v362_v8, %v363_v11 }
  0xb3   : > { %1022 = vmatpush2.msra.mxu0 %v579_v15  ;;  %1181 = vmatpush2.msra.mxu1 %v614_v17  ;;  %v279_v15 = vld [vmem:[%s3764_s8 + $0xe8] sm:$0x3]  ;;  %v4293_v17 = vsel %vm387_vm1, %v429_v35, %v431_v7  ;;  %v574_v7 = vld [vmem:[%s5257_s1 + $0x290] sm:$0xff] }
  0xb4   : > { %787 = vmatprep.mubr.f32.mxu0 %v4231_v18  ;;  %948 = vmatmul.mubr.f32.gmra.mxu1 %v4237_v31  ;;  %v609_v35 = vld [vmem:[%s5257_s1 + $0x3a8] sm:$0xff] }
  0xb5   : > { %1182 = vmatprep.subr.mxu1 %v3419_v0  ;;  %1023 = vmatprep.subr.mxu0 %v3419_v0 }
  0xb6   : > { %1183 = vmatpush2.msra.mxu1 %v613_v32  ;;  %788 = vmatmul.mubr.f32.gmra.mxu0 %v4193_v60  ;;  %v575_v32 = vld [vmem:[%s5257_s1 + $0x298] sm:$0xff] }
  0xb7   : > { %1184 = vmatprep.subr.mxu1 %v3419_v0  ;;  %1024 = vmatpush2.msra.mxu0 %v578_v42  ;;  %v365_v42 = vrot.slane %v279_v15, 1 }
  0xb8   : > { %952 = vmatprep.mubr.f32.mxu1 %v4252_v43  ;;  %1025 = vmatprep.subr.mxu0 %v3419_v0 }
  0xb9   : > { %1185 = vmatpush2.msra.mxu1 %v612_v49  ;;  %1026 = vmatpush2.msra.mxu0 %v577_v52  ;;  %v4311_v49 = vld [vmem:[%s3764_s8 + $0xf0] sm:$0xff]  ;;  %v608_v52 = vld [vmem:[%s5257_s1 + $0x3a0] sm:$0xff]  ;;  %v4327_v8 = vsel %vm316_vm0, %v363_v11, %v365_v42  ;;  %v573_v11 = vld [vmem:[%s5257_s1 + $0x288] sm:$0xff] }
  0xba   : > { %953 = vmatmul.mubr.f32.gmra.mxu1 %v4261_v50  ;;  %1186 = vmatprep.subr.mxu1 %v3419_v0  ;;  %v605_v42 = vld [vmem:[%s5257_s1 + $0x388] sm:$0xff] }
  0xbb   : > { %792 = vmatprep.mubr.f32.mxu0 %v4271_v59  ;;  %1187 = vmatpush2.msra.mxu1 %v611_v62  ;;  %v4319_v62 = vsel %vm387_vm1, %v433_v34, %v434_v36 }
  0xbc   : > { %793 = vmatmul.mubr.f32.gmra.mxu0 %v4196_v61  ;;  %1027 = vmatprep.subr.mxu0 %v3419_v0 }
  0xbd   : > { %1188 = vmatprep.subr.mxu1 %v3419_v0  ;;  %957 = vmatprep.mubr.f32.mxu1 %v4267_v53 }
  0xbe   : > { %1028 = vmatpush2.msra.mxu0 %v576_v10  ;;  %1189 = vmatpush2.msra.mxu1 %v610_v12  ;;  %v607_v10 = vld [vmem:[%s5257_s1 + $0x398] sm:$0xff]  ;;  %v436_v12 = vrot.slane %v279_v15, 2  ;;  %v606_v15 = vld [vmem:[%s5257_s1 + $0x390] sm:$0xff] }
  0xbf   : > { %1029 = vmatprep.subr.mxu0 %v3419_v0  ;;  %958 = vmatmul.mubr.f32.gmra.mxu1 %v4293_v17 }
  0xc0   : > { %1190 = vmatprep.subr.mxu1 %v3419_v0  ;;  %797 = vmatprep.mubr.f32.mxu0 %v4297_v29  ;;  %v4349_v34 = vsel %vm387_vm1, %v434_v36, %v436_v12  ;;  %v635_v36 = vld [vmem:[%s5257_s1 + $0x478] sm:$0xff] }
  0xc1   : > { %1030 = vmatpush2.msra.mxu0 %v575_v32  ;;  %1191 = vmatpush2.msra.mxu1 %v609_v35  ;;  %v4340_v32 = vld [vmem:[%s3764_s8 + $0xf8] sm:$0xff]  ;;  %v572_v35 = vld [vmem:[%s5257_s1 + $0x280] sm:$0xff] }
  0xc2   : > { %798 = vmatmul.mubr.f32.gmra.mxu0 %v4252_v43  ;;  %1192 = vmatprep.subr.mxu1 %v3419_v0 }
  0xc3   : > { %962 = vmatprep.mubr.f32.mxu1 %v4311_v49  ;;  %1031 = vmatprep.subr.mxu0 %v3419_v0 }
  0xc4   : > { %1193 = vmatpush2.msra.mxu1 %v608_v52  ;;  %1032 = vmatpush2.msra.mxu0 %v574_v7  ;;  %v604_v52 = vld [vmem:[%s5257_s1 + $0x380] sm:$0xff]  ;;  %v634_v7 = vld [vmem:[%s5257_s1 + $0x470] sm:$0xff] }
  0xc5   : > { %963 = vmatmul.mubr.f32.gmra.mxu1 %v4319_v62  ;;  %1194 = vmatprep.subr.mxu1 %v3419_v0 }
  0xc6   : > { %802 = vmatprep.mubr.f32.mxu0 %v4327_v8  ;;  %1033 = vmatprep.subr.mxu0 %v3419_v0 }
  0xc7   : > { %1195 = vmatpush2.msra.mxu1 %v607_v10  ;;  %803 = vmatmul.mubr.f32.gmra.mxu0 %v4267_v53 }
  0xc8   : > { %1196 = vmatprep.subr.mxu1 %v3419_v0  ;;  %1034 = vmatpush2.msra.mxu0 %v573_v11 }
  0xc9   : > { %967 = vmatprep.mubr.f32.mxu1 %v4340_v32  ;;  %1197 = vmatpush2.msra.mxu1 %v606_v15 }
  0xca   : > { %1035 = vmatprep.subr.mxu0 %v3419_v0  ;;  %968 = vmatmul.mubr.f32.gmra.mxu1 %v4349_v34 }
  0xcb   : > { %1198 = vmatprep.subr.mxu1 %v3419_v0  ;;  %1036 = vmatpush2.msra.mxu0 %v572_v35 }
  0xcc   : > { %1037 = vmatprep.mubr.f32.mxu0 %v3868_v33  ;;  %1199 = vmatpush2.msra.mxu1 %v605_v42  ;;  %v628_v33 = vld [vmem:[%s5257_s1 + $0x440] sm:$0xff] }
  0xcd   : > { %1038 = vmatmul.mubr.f32.vlgmr.msra.gmra.mxu0 %v3840_v21  ;;  %1200 = vmatprep.subr.mxu1 %v3419_v0  ;;  %v633_v21 = vld [vmem:[%s5257_s1 + $0x468] sm:$0xff]  ;;  %v632_v0 = vld [vmem:[%s5257_s1 + $0x460] sm:$0xff] }
  0xce   : > { %3148 = vmatprep.subr.mxu0 %v635_v36  ;;  %1201 = vmatpush2.msra.mxu1 %v604_v52 }
  0xcf   : > { %1202 = vmatprep.mubr.f32.mxu1 %v3882_v38  ;;  %3149 = vmatpush3.msra.mxu0 %v635_v36 }
  0xd0   : > { %1203 = vmatmul.mubr.f32.vlgmr.msra.gmra.mxu1 %v3854_v28  ;;  %1042 = vmatprep.mubr.f32.mxu0 %v3886_v40  ;;  %v631_v28 = vld [vmem:[%s5257_s1 + $0x458] sm:$0xff]  ;;  %v626_v40 = vld [vmem:[%s5257_s1 + $0x430] sm:$0xff] }
  0xd1   : > { %1207 = vmatprep.mubr.f32.mxu1 %v3905_v46  ;;  %1043 = vmatmul.mubr.f32.gmra.mxu0 %v3862_v30  ;;  %v630_v30 = vld [vmem:[%s5257_s1 + $0x450] sm:$0xff] }
  0xd2   : > { %3150 = vmatprep.subr.mxu0 %v634_v7  ;;  %1047 = vmatprep.mubr.f32.mxu0 %v3909_v47 }
  0xd3   : > { %3151 = vmatpush3.msra.mxu0 %v634_v7 }
  0xd4   : > { %1208 = vmatmul.mubr.f32.gmra.mxu1 %v3846_v26  ;;  %3152 = vmatprep.subr.mxu0 %v633_v21  ;;  %v629_v26 = vld [vmem:[%s5257_s1 + $0x448] sm:$0xff] }
  0xd5   : > { %1212 = vmatprep.mubr.f32.mxu1 %v3932_v55  ;;  %3153 = vmatpush3.msra.mxu0 %v633_v21 }
  0xd6   : > { %1048 = vmatmul.mubr.f32.gmra.mxu0 %v3882_v38  ;;  %3154 = vmatprep.subr.mxu0 %v632_v0  ;;  %v627_v38 = vld [vmem:[%s5257_s1 + $0x438] sm:$0xff] }
  0xd7   : > { %1052 = vmatprep.mubr.f32.mxu0 %v3938_v57  ;;  %3155 = vmatpush3.msra.mxu0 %v632_v0 }
  0xd8   : > { %1213 = vmatmul.mubr.f32.gmra.mxu1 %v3896_v44  ;;  %3156 = vmatprep.subr.mxu0 %v631_v28  ;;  %v625_v44 = vld [vmem:[%s5257_s1 + $0x428] sm:$0xff] }
  0xd9   : > { %1217 = vmatprep.mubr.f32.mxu1 %v3972_v5  ;;  %3157 = vmatpush3.msra.mxu0 %v631_v28 }
  0xda   : > { %1053 = vmatmul.mubr.f32.gmra.mxu0 %v3905_v46  ;;  %3158 = vmatprep.subr.mxu0 %v630_v30  ;;  %v623_v46 = vld [vmem:[%s5257_s1 + $0x418] sm:$0xff] }
  0xdb   : > { %1057 = vmatprep.mubr.f32.mxu0 %v3962_v2  ;;  %3159 = vmatpush3.msra.mxu0 %v630_v30 }
  0xdc   : > { %1218 = vmatmul.mubr.f32.gmra.mxu1 %v3899_v45  ;;  %3160 = vmatprep.subr.mxu0 %v629_v26  ;;  %v624_v45 = vld [vmem:[%s5257_s1 + $0x420] sm:$0xff] }
  0xdd   : > { %1222 = vmatprep.mubr.f32.mxu1 %v3998_v14  ;;  %3161 = vmatpush3.msra.mxu0 %v629_v26 }
  0xde   : > { %1058 = vmatmul.mubr.f32.gmra.mxu0 %v3932_v55  ;;  %3162 = vmatprep.subr.mxu0 %v628_v33  ;;  %v622_v55 = vld [vmem:[%s5257_s1 + $0x410] sm:$0xff] }
  0xdf   : > { %1062 = vmatprep.mubr.f32.mxu0 %v3994_v13  ;;  %3163 = vmatpush3.msra.mxu0 %v628_v33 }
  0xe0   : > { %1223 = vmatmul.mubr.f32.gmra.mxu1 %v3953_v63  ;;  %3164 = vmatprep.subr.mxu0 %v627_v38  ;;  %v621_v63 = vld [vmem:[%s5257_s1 + $0x408] sm:$0xff] }
  0xe1   : > { %1227 = vmatprep.mubr.f32.mxu1 %v4031_v27  ;;  %3165 = vmatpush3.msra.mxu0 %v627_v38 }
  0xe2   : > { %1063 = vmatmul.mubr.f32.gmra.mxu0 %v3972_v5  ;;  %3166 = vmatprep.subr.mxu0 %v626_v40  ;;  %v461_v5 = vrot.slane %v4311_v49, 1 }
  0xe3   : > { %1067 = vmatprep.mubr.f32.mxu0 %v4020_v23  ;;  %3167 = vmatpush3.msra.mxu0 %v626_v40 }
  0xe4   : > { %1228 = vmatmul.mubr.f32.gmra.mxu1 %v3968_v4  ;;  %3168 = vmatprep.subr.mxu0 %v625_v44  ;;  %v620_v4 = vld [vmem:[%s5257_s1 + $0x400] sm:$0xff] }
  0xe5   : > { %1232 = vmatprep.mubr.f32.mxu1 %v4057_v41  ;;  %3169 = vmatpush3.msra.mxu0 %v625_v44 }
  0xe6   : > { %1068 = vmatmul.mubr.f32.gmra.mxu0 %v3998_v14  ;;  %3170 = vmatprep.subr.mxu0 %v624_v45  ;;  %v462_v14 = vrot.slane %v4340_v32, 1 }
  0xe7   : > { %1072 = vmatprep.mubr.f32.mxu0 %v4053_v39  ;;  %3171 = vmatpush3.msra.mxu0 %v624_v45 }
  0xe8   : > { %1233 = vmatmul.mubr.f32.gmra.mxu1 %v4012_v20  ;;  %3172 = vmatprep.subr.mxu0 %v623_v46  ;;  %v282_v20 = vld [vmem:[%s3764_s8 + $0x100] sm:$0x3] }
  0xe9   : > { %1237 = vmatprep.mubr.f32.mxu1 %v4082_v54  ;;  %3173 = vmatpush3.msra.mxu0 %v623_v46 }
  0xea   : > { %1073 = vmatmul.mubr.f32.gmra.mxu0 %v4031_v27  ;;  %3174 = vmatprep.subr.mxu0 %v622_v55  ;;  %v464_v27 = vrot.slane %v282_v20, 1 }
  0xeb   : > { %1077 = vmatprep.mubr.f32.mxu0 %v4090_v58  ;;  %3175 = vmatpush3.msra.mxu0 %v622_v55 }
  0xec   : > { %1238 = vmatmul.mubr.f32.gmra.mxu1 %v4026_v25  ;;  %3176 = vmatprep.subr.mxu0 %v621_v63  ;;  %v463_v25 = vsel %vm316_vm0, %v461_v5, %v462_v14 }
  0xed   : > { %1242 = vmatprep.mubr.f32.mxu1 %v4119_v9  ;;  %3177 = vmatpush3.msra.mxu0 %v621_v63 }
  0xee   : > { %1078 = vmatmul.mubr.f32.gmra.mxu0 %v4057_v41  ;;  %3178 = vmatprep.subr.mxu0 %v620_v4  ;;  %v4482_v41 = vld [vmem:[%s3764_s8 + $0x108] sm:$0xff] }
  0xef   : > { %1082 = vmatprep.mubr.f32.mxu0 %v4111_v6  ;;  %3179 = vmatpush3.msra.mxu0 %v620_v4 }
  0xf0   : > { %1243 = vmatmul.mubr.f32.gmra.mxu1 %v4072_v51  ;;  %v4485_v51 = vld [vmem:[%s3764_s8 + $0x110] sm:$0xff] }
  0xf1   : > { %1247 = vmatprep.mubr.f32.mxu1 %v4150_v24  ;;  %v486_v0 = vrot.slane %v4485_v51, 2 }
  0xf2   : > { %1083 = vmatmul.mubr.f32.gmra.mxu0 %v4082_v54  ;;  %v468_v54 = vrot.slane %v4311_v49, 2 }
  0xf3   : > { %1087 = vmatprep.mubr.f32.mxu0 %v4146_v22 }
  0xf4   : > { %1248 = vmatmul.mubr.f32.gmra.mxu1 %v4085_v56  ;;  %v469_v56 = vrot.slane %v4340_v32, 2 }
  0xf5   : > { %1252 = vmatprep.mubr.f32.mxu1 %v4178_v48 }
  0xf6   : > { %1088 = vmatmul.mubr.f32.gmra.mxu0 %v4119_v9  ;;  %v465_v9 = vsel %vm316_vm0, %v462_v14, %v464_v27 }
  0xf7   : > { %1092 = vmatprep.mubr.f32.mxu0 %v4169_v37 }
  0xf8   : > { %1253 = vmatmul.mubr.f32.gmra.mxu1 %v4131_v16  ;;  %v478_v16 = vrot.slane %v4482_v41, 1 }
  0xf9   : > { %1257 = vmatprep.mubr.f32.mxu1 %v4209_v3 }
  0xfa   : > { %1093 = vmatmul.mubr.f32.gmra.mxu0 %v4150_v24  ;;  %v4496_v24 = vld [vmem:[%s3764_s8 + $0x118] sm:$0x3] }
  0xfb   : > { %1097 = vmatprep.mubr.f32.mxu0 %v4205_v1 }
  0xfc   : > { %1258 = vmatmul.mubr.f32.gmra.mxu1 %v4141_v19  ;;  %v479_v19 = vrot.slane %v4485_v51, 1 }
  0xfd   : > { %1262 = vmatprep.mubr.f32.mxu1 %v4231_v18 }
  0xfe   : > { %1098 = vmatmul.mubr.f32.gmra.mxu0 %v4178_v48  ;;  %v4500_v48 = vsel %vm387_vm1, %v468_v54, %v469_v56 }
  0xff   : > { %1102 = vmatprep.mubr.f32.mxu0 %v4237_v31 }
 0x100   : > { %1263 = vmatmul.mubr.f32.gmra.mxu1 %v4193_v60  ;;  %v471_v60 = vrot.slane %v282_v20, 2 }
 0x101   : > { %1267 = vmatprep.mubr.f32.mxu1 %v4271_v59 }
 0x102   : > { %1103 = vmatmul.mubr.f32.gmra.mxu0 %v4209_v3  ;;  %v481_v3 = vrot.slane %v4496_v24, 1 }
 0x103   : > { %1107 = vmatprep.mubr.f32.mxu0 %v4261_v50 }
 0x104   : > { %1268 = vmatmul.mubr.f32.gmra.mxu1 %v4196_v61  ;;  %v480_v61 = vsel %vm316_vm0, %v478_v16, %v479_v19 }
 0x105   : > { %1272 = vmatprep.mubr.f32.mxu1 %v4297_v29 }
 0x106   : > { %1108 = vmatmul.mubr.f32.gmra.mxu0 %v4231_v18  ;;  %v4508_v18 = vsel %vm387_vm1, %v469_v56, %v471_v60 }
 0x107   : > { %1112 = vmatprep.mubr.f32.mxu0 %v4293_v17 }
 0x108   : > { %1273 = vmatmul.mubr.f32.gmra.mxu1 %v4252_v43  ;;  %v482_v43 = vsel %vm316_vm0, %v479_v19, %v481_v3 }
 0x109   : > { %1277 = vmatprep.mubr.f32.mxu1 %v4327_v8 }
 0x10a   : > { %1113 = vmatmul.mubr.f32.gmra.mxu0 %v4271_v59 }
 0x10b   : > { %1117 = vmatprep.mubr.f32.mxu0 %v4319_v62 }
 0x10c   : > { %1278 = vmatmul.mubr.f32.gmra.mxu1 %v4267_v53  ;;  %v4522_v53 = vld [vmem:[%s5258_s2] ss:$0 sm:$0xff] }
 0x10d   : > { %1282 = vmatprep.mubr.f32.mxu1 %v463_v25 }
 0x10e   : > { %1118 = vmatmul.mubr.f32.gmra.mxu0 %v4297_v29 }
 0x10f   : > { %1122 = vmatprep.mubr.f32.mxu0 %v4349_v34 }
 0x110   : > { %1283 = vmatmul.mubr.f32.gmra.mxu1 %v4311_v49 }
 0x111   : > { %1287 = vmatprep.mubr.f32.mxu1 %v465_v9 }
 0x112   : > { %1123 = vmatmul.mubr.f32.gmra.mxu0 %v4327_v8 }
 0x113   : > { %1127 = vmatprep.mubr.f32.mxu0 %v4500_v48 }
 0x114   : > { %1288 = vmatmul.mubr.f32.gmra.mxu1 %v4340_v32 }
 0x115   : > { %1292 = vmatprep.mubr.f32.mxu1 %v480_v61 }
 0x116   : > { %1128 = vmatmul.mubr.f32.gmra.mxu0 %v463_v25 }
 0x117   : > { %1132 = vmatprep.mubr.f32.mxu0 %v4508_v18 }
 0x118   : > { %1293 = vmatmul.mubr.f32.gmra.mxu1 %v4482_v41 }
 0x119   : > { %1297 = vmatprep.mubr.f32.mxu1 %v482_v43 }
 0x11a   : > { %1133 = vmatmul.mubr.f32.gmra.mxu0 %v465_v9 }
 0x11b   : > { %3180 = vmatprep.mubr.f32.mxu0 %v3909_v47 }
 0x11c   : > { %1298 = vmatmul.mubr.f32.gmra.mxu1 %v4485_v51 }
 0x11e   : > { %3181 = vmatmul.mubr.f32.vlgmr.msra.gmra.mxu0 %v3938_v57 }
 0x11f   : > { %3183 = vmatprep.mubr.f32.mxu0 %v3962_v2 }
 0x122   : > { %3184 = vmatmul.mubr.f32.gmra.mxu0 %v3994_v13 }
 0x123   : > { %3186 = vmatprep.mubr.f32.mxu0 %v4020_v23 }
 0x125   : > { %v709_v59 = vpop.f32.mrf.mxu0 }
 0x126   : > { %3187 = vmatmul.mubr.f32.gmra.mxu0 %v4053_v39  ;;  %v710_v47 = vadd.f32 %v4522_v53, %v709_v59 }
 0x127   : > { %3189 = vmatprep.mubr.f32.mxu0 %v4090_v58  ;;  %v711_v29 = vpop.f32.mrf.mxu0 }
 0x128   : > { %v874_v57 = vpop.f32.mrf.mxu1 }
 0x129   : > { %v4527_v49 = vadd.f32 %v874_v57, %v710_v47  ;;  %v714_v2 = vpop.f32.mrf.mxu0 }
 0x12a   : > { %3190 = vmatmul.mubr.f32.gmra.mxu0 %v4111_v6  ;;  %v876_v13 = vpop.f32.mrf.mxu1  ;;  %v715_v23 = vadd.f32 %v4522_v53, %v714_v2 }
 0x12b   : > { %3192 = vmatprep.mubr.f32.mxu0 %v4146_v22  ;;  %v716_v8 = vpop.f32.mrf.mxu0 }
 0x12c   : > { %v879_v10 = vpop.f32.mrf.mxu1 }
 0x12d   : > { %v4532_v39 = vadd.f32 %v879_v10, %v715_v23  ;;  %v719_v58 = vpop.f32.mrf.mxu0 }
 0x12e   : > { %3193 = vmatmul.mubr.f32.gmra.mxu0 %v4169_v37  ;;  %v881_v12 = vpop.f32.mrf.mxu1  ;;  %v720_v11 = vadd.f32 %v4522_v53, %v719_v58 }
 0x12f   : > { %3195 = vmatprep.mubr.f32.mxu0 %v4205_v1  ;;  %v721_v32 = vpop.f32.mrf.mxu0 }
 0x130   : > { %v884_v6 = vpop.f32.mrf.mxu1 }
 0x131   : > { %v4537_v15 = vadd.f32 %v884_v6, %v720_v11 }
 0x132   : > { %3196 = vmatmul.mubr.f32.gmra.mxu0 %v4237_v31  ;;  %v724_v22 = vpop.f32.mrf.mxu0  ;;  %v886_v35 = vpop.f32.mrf.mxu1  ;;  %v485_v31 = vrot.slane %v4482_v41, 2 }
 0x133   : > { %3198 = vmatprep.mubr.f32.mxu0 %v4261_v50  ;;  %v725_v42 = vadd.f32 %v4522_v53, %v724_v22 }
 0x134   : > { %v726_v36 = vpop.f32.mrf.mxu0  ;;  %v889_v37 = vpop.f32.mrf.mxu1  ;;  %v487_v38 = vsel %vm387_vm1, %v485_v31, %v486_v0 }
 0x135   : > { %v4542_v52 = vadd.f32 %v889_v37, %v725_v42 }
 0x136   : > { %3199 = vmatmul.mubr.f32.gmra.mxu0 %v4293_v17  ;;  %v729_v1 = vpop.f32.mrf.mxu0  ;;  %v891_v7 = vpop.f32.mrf.mxu1  ;;  %v488_v17 = vrot.slane %v4496_v24, 2 }
 0x137   : > { %3201 = vmatprep.mubr.f32.mxu0 %v4319_v62  ;;  %v730_v21 = vadd.f32 %v4522_v53, %v729_v1 }
 0x138   : > { %v731_v28 = vpop.f32.mrf.mxu0  ;;  %v894_v50 = vpop.f32.mrf.mxu1  ;;  %v489_v46 = vsel %vm387_vm1, %v486_v0, %v488_v17 }
 0x139   : > { %v4549_v30 = vadd.f32 %v894_v50, %v730_v21 }
 0x13a   : > { %3202 = vmatmul.mubr.f32.gmra.mxu0 %v4349_v34  ;;  %v734_v26 = vpop.f32.mrf.mxu0  ;;  %v896_v33 = vpop.f32.mrf.mxu1 }
 0x13b   : > { %3204 = vmatprep.mubr.f32.mxu0 %v4500_v48  ;;  %v735_v62 = vadd.f32 %v4522_v53, %v734_v26 }
 0x13c   : > { %v736_v40 = vpop.f32.mrf.mxu0  ;;  %v899_v44 = vpop.f32.mrf.mxu1 }
 0x13d   : > { %v4557_v45 = vadd.f32 %v899_v44, %v735_v62 }
 0x13e   : > { %3205 = vmatmul.mubr.f32.gmra.mxu0 %v4508_v18  ;;  %v739_v34 = vpop.f32.mrf.mxu0  ;;  %v901_v55 = vpop.f32.mrf.mxu1 }
 0x13f   : > { %3207 = vmatprep.mubr.f32.mxu0 %v487_v38  ;;  %v740_v63 = vadd.f32 %v4522_v53, %v739_v34 }
 0x140   : > { %v741_v4 = vpop.f32.mrf.mxu0 }
 0x142   : > { %3208 = vmatmul.mubr.f32.gmra.mxu0 %v489_v46  ;;  %v904_v5 = vpop.f32.mrf.mxu1 }
 0x143   : > { %v4561_v14 = vadd.f32 %v904_v5, %v740_v63 }
 0x144   : > { %v744_v20 = vpop.f32.mrf.mxu0  ;;  %v906_v25 = vpop.f32.mrf.mxu1 }
 0x145   : > { %v745_v27 = vadd.f32 %v4522_v53, %v744_v20 }
 0x146   : > { %v746_v41 = vpop.f32.mrf.mxu0 }
 0x147   : > { %v909_v51 = vpop.f32.mrf.mxu1 }
 0x148   : > { %v4564_v54 = vadd.f32 %v909_v51, %v745_v27 }
 0x149   : > { %v911_v9 = vpop.f32.mrf.mxu1 }
 0x14a   : > { %v749_v56 = vpop.f32.mrf.mxu0 }
 0x14b   : > { %v750_v16 = vadd.f32 %v4522_v53, %v749_v56 }
 0x14c   : > { %v751_v19 = vpop.f32.mrf.mxu0 }
 0x14d   : > { %v914_v24 = vpop.f32.mrf.mxu1 }
 0x14e   : > { %v4567_v48 = vadd.f32 %v914_v24, %v750_v16 }
 0x14f   : > { %v916_v60 = vpop.f32.mrf.mxu1  ;;  %v754_v61 = vpop.f32.mrf.mxu0 }
 0x150   : > { %v755_v3 = vadd.f32 %v4522_v53, %v754_v61 }
 0x151   : > { %v756_v18 = vpop.f32.mrf.mxu0 }
 0x152   : > { %v919_v43 = vpop.f32.mrf.mxu1 }
 0x153   : > { %v4570_v59 = vadd.f32 %v919_v43, %v755_v3 }
 0x154   : > { %v921_v29 = vpop.f32.mrf.mxu1 }
 0x155   : > { %v759_v47 = vpop.f32.mrf.mxu0 }
 0x156   : > { %v760_v57 = vadd.f32 %v4522_v53, %v759_v47 }
 0x157   : > { %v761_v2 = vpop.f32.mrf.mxu0 }
 0x158   : > { %v924_v13 = vpop.f32.mrf.mxu1 }
 0x159   : > { %v4573_v23 = vadd.f32 %v924_v13, %v760_v57 }
 0x15a   : > { %v764_v8 = vpop.f32.mrf.mxu0  ;;  %v926_v10 = vpop.f32.mrf.mxu1 }
 0x15b   : > { %v765_v58 = vadd.f32 %v4522_v53, %v764_v8 }
 0x15c   : > { %v766_v12 = vpop.f32.mrf.mxu0 }
 0x15e   : > { %v929_v11 = vpop.f32.mrf.mxu1 }
 0x15f   : > { %v4576_v32 = vadd.f32 %v929_v11, %v765_v58 }
 0x160   : > { %v769_v6 = vpop.f32.mrf.mxu0  ;;  %v931_v22 = vpop.f32.mrf.mxu1 }
 0x161   : > { %v770_v35 = vadd.f32 %v4522_v53, %v769_v6 }
 0x162   : > { %v771_v42 = vpop.f32.mrf.mxu0 }
 0x163   : > { %v934_v36 = vpop.f32.mrf.mxu1 }
 0x164   : > { %v4579_v37 = vadd.f32 %v934_v36, %v770_v35 }
 0x165   : > { %v936_v7 = vpop.f32.mrf.mxu1 }
 0x166   : > { %v774_v1 = vpop.f32.mrf.mxu0 }
 0x167   : > { %v775_v21 = vadd.f32 %v4522_v53, %v774_v1 }
 0x168   : > { %v776_v31 = vpop.f32.mrf.mxu0 }
 0x169   : > { %v939_v0 = vpop.f32.mrf.mxu1 }
 0x16a   : > { %v4582_v28 = vadd.f32 %v939_v0, %v775_v21 }
 0x16b   : > { %v941_v50 = vpop.f32.mrf.mxu1  ;;  %v779_v26 = vpop.f32.mrf.mxu0 }
 0x16c   : > { %v780_v33 = vadd.f32 %v4522_v53, %v779_v26 }
 0x16d   : > { %v781_v17 = vpop.f32.mrf.mxu0 }
 0x16e   : > { %v944_v62 = vpop.f32.mrf.mxu1 }
 0x16f   : > { %v4585_v38 = vadd.f32 %v944_v62, %v780_v33 }
 0x170   : > { %v946_v44 = vpop.f32.mrf.mxu1 }
 0x171   : > { %v784_v40 = vpop.f32.mrf.mxu0 }
 0x172   : > { %v785_v46 = vadd.f32 %v4522_v53, %v784_v40 }
 0x173   : > { %v786_v34 = vpop.f32.mrf.mxu0 }
 0x174   : > { %v949_v55 = vpop.f32.mrf.mxu1 }
 0x175   : > { %v4588_v63 = vadd.f32 %v949_v55, %v785_v46 }
 0x176   : > { %v789_v4 = vpop.f32.mrf.mxu0  ;;  %v951_v5 = vpop.f32.mrf.mxu1 }
 0x177   : > { %v790_v20 = vadd.f32 %v4522_v53, %v789_v4 }
 0x178   : > { %v791_v25 = vpop.f32.mrf.mxu0 }
 0x17a   : > { %v954_v27 = vpop.f32.mrf.mxu1 }
 0x17b   : > { %v4591_v41 = vadd.f32 %v954_v27, %v790_v20 }
 0x17c   : > { %v794_v51 = vpop.f32.mrf.mxu0  ;;  %v956_v56 = vpop.f32.mrf.mxu1 }
 0x17d   : > { %v795_v9 = vadd.f32 %v4522_v53, %v794_v51 }
 0x17e   : > { %v796_v16 = vpop.f32.mrf.mxu0 }
 0x17f   : > { %v959_v19 = vpop.f32.mrf.mxu1 }
 0x180   : > { %v4594_v24 = vadd.f32 %v959_v19, %v795_v9 }
 0x181   : > { %v961_v61 = vpop.f32.mrf.mxu1 }
 0x182   : > { %v799_v60 = vpop.f32.mrf.mxu0 }
 0x183   : > { %v800_v3 = vadd.f32 %v4522_v53, %v799_v60 }
 0x184   : > { %v801_v18 = vpop.f32.mrf.mxu0 }
 0x185   : > { %v964_v43 = vpop.f32.mrf.mxu1 }
 0x186   : > { %v4597_v47 = vadd.f32 %v964_v43, %v800_v3 }
 0x187   : > { %v966_v29 = vpop.f32.mrf.mxu1  ;;  %v804_v57 = vpop.f32.mrf.mxu0 }
 0x188   : > { %v805_v2 = vadd.f32 %v4522_v53, %v804_v57 }
 0x189   : > { %v806_v13 = vpop.f32.mrf.mxu0 }
 0x18a   : > { %v969_v8 = vpop.f32.mrf.mxu1 }
 0x18b   : > { %v4600_v10 = vadd.f32 %v969_v8, %v805_v2 }
 0x18c   : > { %v971_v58 = vpop.f32.mrf.mxu1 }
 0x18d   : > { %v1039_v12 = vpop.f32.mrf.mxu0 }
 0x18e   : > { %v1040_v11 = vadd.f32 %v1039_v12, %v4527_v49 }
 0x18f   : > { %v1041_v6 = vpop.f32.mrf.mxu0 }
 0x190   : > { %v1204_v22 = vpop.f32.mrf.mxu1 }
 0x191   : > { %v4603_v35 = vadd.f32 %v1204_v22, %v1040_v11  ;;  %v1044_v42 = vpop.f32.mrf.mxu0 }
 0x192   : > { %v1206_v36 = vpop.f32.mrf.mxu1  ;;  %v1045_v1 = vadd.f32 %v1044_v42, %v4532_v39 }
 0x193   : > { %v1046_v7 = vpop.f32.mrf.mxu0 }
 0x194   : > { %v1209_v21 = vpop.f32.mrf.mxu1 }
 0x195   : > { %v4606_v31 = vadd.f32 %v1209_v21, %v1045_v1 }
 0x196   : > { %v1049_v53 = vpop.f32.mrf.mxu0  ;;  %v1211_v0 = vpop.f32.mrf.mxu1 }
 0x197   : > { %v1050_v50 = vadd.f32 %v1049_v53, %v4537_v15 }
 0x198   : > { %v1051_v26 = vpop.f32.mrf.mxu0  ;;  %v1214_v33 = vpop.f32.mrf.mxu1 }
 0x199   : > { %v4609_v17 = vadd.f32 %v1214_v33, %v1050_v50 }
 0x19a   : > { %v1054_v49 = vpop.f32.mrf.mxu0  ;;  %v1216_v62 = vpop.f32.mrf.mxu1 }
 0x19b   : > { %v1055_v40 = vadd.f32 %v1054_v49, %v4542_v52 }
 0x19c   : > { %v1056_v44 = vpop.f32.mrf.mxu0  ;;  %v1219_v46 = vpop.f32.mrf.mxu1 }
 0x19d   : > { %v4612_v34 = vadd.f32 %v1219_v46, %v1055_v40 }
 0x19e   : > { %v1059_v39 = vpop.f32.mrf.mxu0  ;;  %v1221_v55 = vpop.f32.mrf.mxu1 }
 0x19f   : > { %v1060_v4 = vadd.f32 %v1059_v39, %v4549_v30 }
 0x1a0   : > { %v1061_v5 = vpop.f32.mrf.mxu0  ;;  %v1224_v20 = vpop.f32.mrf.mxu1 }
 0x1a1   : > { %v4615_v25 = vadd.f32 %v1224_v20, %v1060_v4 }
 0x1a2   : > { %v1064_v15 = vpop.f32.mrf.mxu0  ;;  %v1226_v27 = vpop.f32.mrf.mxu1 }
 0x1a3   : > { %v1065_v51 = vadd.f32 %v1064_v15, %v4557_v45 }
 0x1a4   : > { %v1066_v56 = vpop.f32.mrf.mxu0  ;;  %v1229_v9 = vpop.f32.mrf.mxu1 }
 0x1a5   : > { %v4618_v16 = vadd.f32 %v1229_v9, %v1065_v51 }
 0x1a6   : > { %v1069_v52 = vpop.f32.mrf.mxu0  ;;  %v1231_v19 = vpop.f32.mrf.mxu1 }
 0x1a7   : > { %v1070_v60 = vadd.f32 %v1069_v52, %v4561_v14 }
 0x1a8   : > { %v1071_v61 = vpop.f32.mrf.mxu0  ;;  %v1234_v3 = vpop.f32.mrf.mxu1 }
 0x1a9   : > { %v4621_v18 = vadd.f32 %v1234_v3, %v1070_v60 }
 0x1aa   : > { %v4623_v30 = vpop.f32.mrf.mxu0  ;;  %v1236_v43 = vpop.f32.mrf.mxu1 }
 0x1ac   : > { %v1076_v29 = vpop.f32.mrf.mxu0  ;;  %v4625_v57 = vpop.f32.mrf.mxu1 }
 0x1ae   : > { %v4627_v2 = vpop.f32.mrf.mxu0  ;;  %v1241_v45 = vpop.f32.mrf.mxu1 }
 0x1b0   : > { %v1081_v13 = vpop.f32.mrf.mxu0  ;;  %v4629_v8 = vpop.f32.mrf.mxu1 }
 0x1b2   : > { %v4631_v58 = vpop.f32.mrf.mxu0  ;;  %v1246_v12 = vpop.f32.mrf.mxu1 }
 0x1b4   : > { %v1086_v14 = vpop.f32.mrf.mxu0  ;;  %v4633_v11 = vpop.f32.mrf.mxu1 }
 0x1b6   : > { %v4635_v6 = vpop.f32.mrf.mxu0  ;;  %v1251_v22 = vpop.f32.mrf.mxu1 }
 0x1b8   : > { %v1091_v42 = vpop.f32.mrf.mxu0  ;;  %v4637_v36 = vpop.f32.mrf.mxu1 }
 0x1ba   : > { %v4639_v1 = vpop.f32.mrf.mxu0  ;;  %v1256_v7 = vpop.f32.mrf.mxu1 }
 0x1bc   : > { %v1096_v21 = vpop.f32.mrf.mxu0  ;;  %v4641_v53 = vpop.f32.mrf.mxu1 }
 0x1be   : > { %v4643_v0 = vpop.f32.mrf.mxu0  ;;  %v1261_v50 = vpop.f32.mrf.mxu1 }
 0x1c0   : > { %v1101_v26 = vpop.f32.mrf.mxu0  ;;  %v4645_v33 = vpop.f32.mrf.mxu1 }
 0x1c2   : > { %v4647_v49 = vpop.f32.mrf.mxu0  ;;  %v1266_v62 = vpop.f32.mrf.mxu1 }
 0x1c4   : > { %v1106_v40 = vpop.f32.mrf.mxu0  ;;  %v4649_v44 = vpop.f32.mrf.mxu1 }
 0x1c6   : > { %v4651_v46 = vpop.f32.mrf.mxu0  ;;  %v1271_v39 = vpop.f32.mrf.mxu1 }
 0x1c8   : > { %v1111_v55 = vpop.f32.mrf.mxu0  ;;  %v4653_v4 = vpop.f32.mrf.mxu1 }
 0x1ca   : > { %v4655_v5 = vpop.f32.mrf.mxu0  ;;  %v1276_v20 = vpop.f32.mrf.mxu1 }
 0x1cc   : > { %v1116_v15 = vpop.f32.mrf.mxu0  ;;  %v4657_v27 = vpop.f32.mrf.mxu1 }
 0x1ce   : > { %v4659_v51 = vpop.f32.mrf.mxu0  ;;  %v1281_v56 = vpop.f32.mrf.mxu1 }
 0x1cf   : > { %v1075_v56 = vadd.f32 %v4623_v30, %v4564_v54  ;;  %v1080_v30 = vadd.f32 %v4627_v2, %v4567_v48 }
 0x1d0   : > { %v1121_v9 = vpop.f32.mrf.mxu0  ;;  %v4661_v52 = vpop.f32.mrf.mxu1 }
 0x1d2   : > { %v4663_v19 = vpop.f32.mrf.mxu0  ;;  %v1286_v60 = vpop.f32.mrf.mxu1 }
 0x1d4   : > { %v1126_v61 = vpop.f32.mrf.mxu0  ;;  %v4665_v3 = vpop.f32.mrf.mxu1 }
 0x1d6   : > { %v4667_v43 = vpop.f32.mrf.mxu0  ;;  %v1291_v29 = vpop.f32.mrf.mxu1 }
 0x1d8   : > { %v1131_v45 = vpop.f32.mrf.mxu0  ;;  %v4669_v13 = vpop.f32.mrf.mxu1 }
 0x1da   : > { %v4671_v12 = vpop.f32.mrf.mxu0  ;;  %v1296_v14 = vpop.f32.mrf.mxu1 }
 0x1db   : > { %v1085_v14 = vadd.f32 %v4631_v58, %v4570_v59 }
 0x1dc   : > { %v1136_v22 = vpop.f32.mrf.mxu0  ;;  %v4673_v42 = vpop.f32.mrf.mxu1 }
 0x1de   : > { %v3182_v7 = vpop.f32.mrf.mxu0  ;;  %v1301_v21 = vpop.f32.mrf.mxu1 }
 0x1df   : > { %v1375_v50 = vadd.f32 %v3182_v7, %v4606_v31 }
 0x1e0   : > { %v1369_v26 = vpop.f32.mrf.mxu0 }
 0x1e1   : > { %v1469_v62 = vmax.f32 %v1375_v50, 0.0  ;;  %v1370_v40 = vadd.f32 %v1369_v26, %v4603_v35  ;;  %v1240_v35 = vadd.f32 %v4625_v57, %v1075_v56  ;;  %v1095_v57 = vadd.f32 %v4639_v1, %v4576_v32 }
 0x1e2   : > { %v3185_v39 = vpop.f32.mrf.mxu0  ;;  %v1090_v26 = vadd.f32 %v4635_v6, %v4573_v23 }
 0x1e3   : > { %1489 = vst [vmem:[#allocation2 + $0x9] sm:$0xff] %v1469_v62  ;;  %v1468_v55 = vmax.f32 %v1370_v40, 0.0  ;;  %v1385_v20 = vadd.f32 %v3185_v39, %v4612_v34  ;;  %v1260_v40 = vadd.f32 %v4641_v53, %v1095_v57  ;;  %v1115_v53 = vadd.f32 %v4655_v5, %v4588_v63 }
 0x1e4   : > { %v1379_v15 = vpop.f32.mrf.mxu0 }
 0x1e5   : > { %1488 = vst [vmem:[#allocation2 + $0x1] sm:$0xff] %v1468_v55  ;;  %v1471_v9 = vmax.f32 %v1385_v20, 0.0  ;;  %v1380_v60 = vadd.f32 %v1379_v15, %v4609_v17 }
 0x1e6   : > { %v3188_v61 = vpop.f32.mrf.mxu0 }
 0x1e7   : > { %1491 = vst [vmem:[#allocation2 + $0x21] sm:$0xff] %v1471_v9  ;;  %v1470_v31 = vmax.f32 %v1380_v60, 0.0  ;;  %v1395_v29 = vadd.f32 %v3188_v61, %v4618_v16  ;;  %v1250_v16 = vadd.f32 %v4633_v11, %v1085_v14  ;;  %v1105_v11 = vadd.f32 %v4647_v49, %v4582_v28 }
 0x1e8   : > { %v1389_v45 = vpop.f32.mrf.mxu0  ;;  %v1280_v60 = vadd.f32 %v4657_v27, %v1115_v53  ;;  %v1135_v27 = vadd.f32 %v4671_v12, %v4600_v10 }
 0x1e9   : > { %1490 = vst [vmem:[#allocation2 + $0x19] sm:$0xff] %v1470_v31  ;;  %v1473_v34 = vmax.f32 %v1395_v29, 0.0  ;;  %v1390_v22 = vadd.f32 %v1389_v45, %v4615_v25  ;;  %v1245_v25 = vadd.f32 %v4629_v8, %v1080_v30  ;;  %v1100_v8 = vadd.f32 %v4643_v0, %v4579_v37 }
 0x1ea   : > { %v3191_v54 = vpop.f32.mrf.mxu0  ;;  %v1270_v20 = vadd.f32 %v4649_v44, %v1105_v11  ;;  %v1125_v44 = vadd.f32 %v4663_v19, %v4594_v24 }
 0x1eb   : > { %1493 = vst [vmem:[#allocation2 + $0x39] sm:$0xff] %v1473_v34  ;;  %v1472_v17 = vmax.f32 %v1390_v22, 0.0  ;;  %v1405_v7 = vadd.f32 %v3191_v54, %v1240_v35  ;;  %v1265_v56 = vadd.f32 %v4645_v33, %v1100_v8  ;;  %v1120_v33 = vadd.f32 %v4659_v51, %v4591_v41 }
 0x1ec   : > { %v1399_v21 = vpop.f32.mrf.mxu0  ;;  %v1290_v45 = vadd.f32 %v4665_v3, %v1125_v44  ;;  %v1300_v22 = vadd.f32 %v4673_v42, %v1135_v27 }
 0x1ed   : > { %1492 = vst [vmem:[#allocation2 + $0x31] sm:$0xff] %v1472_v17  ;;  %v1475_v50 = vmax.f32 %v1405_v7, 0.0  ;;  %v1400_v59 = vadd.f32 %v1399_v21, %v4621_v18  ;;  %v1255_v18 = vadd.f32 %v4637_v36, %v1090_v26  ;;  %v1110_v36 = vadd.f32 %v4651_v46, %v4585_v38 }
 0x1ee   : > { %v3194_v58 = vpop.f32.mrf.mxu0  ;;  %v1285_v14 = vadd.f32 %v4661_v52, %v1120_v33 }
 0x1ef   : > { %1495 = vst [vmem:[#allocation2 + $0x51] sm:$0xff] %v1475_v50  ;;  %v1474_v48 = vmax.f32 %v1400_v59, 0.0  ;;  %v1415_v2 = vadd.f32 %v3194_v58, %v1250_v16  ;;  %v1275_v31 = vadd.f32 %v4653_v4, %v1110_v36  ;;  %v1130_v4 = vadd.f32 %v4667_v43, %v4597_v47 }
 0x1f0   : > { %v1409_v62 = vpop.f32.mrf.mxu0 }
 0x1f1   : > { %1494 = vst [vmem:[#allocation2 + $0x49] sm:$0xff] %v1474_v48  ;;  %v1477_v32 = vmax.f32 %v1415_v2, 0.0  ;;  %v1410_v1 = vadd.f32 %v1409_v62, %v1245_v25  ;;  %v1295_v12 = vadd.f32 %v4669_v13, %v1130_v4 }
 0x1f2   : > { %v3197_v39 = vpop.f32.mrf.mxu0 }
 0x1f3   : > { %1497 = vst [vmem:[#allocation2 + $0x69] sm:$0xff] %v1477_v32  ;;  %v1476_v23 = vmax.f32 %v1410_v1, 0.0  ;;  %v1425_v6 = vadd.f32 %v3197_v39, %v1260_v40 }
 0x1f4   : > { %v1419_v55 = vpop.f32.mrf.mxu0 }
 0x1f5   : > { %1496 = vst [vmem:[#allocation2 + $0x61] sm:$0xff] %v1476_v23  ;;  %v1479_v28 = vmax.f32 %v1425_v6, 0.0  ;;  %v1420_v49 = vadd.f32 %v1419_v55, %v1255_v18 }
 0x1f6   : > { %v3200_v15 = vpop.f32.mrf.mxu0 }
 0x1f7   : > { %1499 = vst [vmem:[#allocation2 + $0x81] sm:$0xff] %v1479_v28  ;;  %v1478_v37 = vmax.f32 %v1420_v49, 0.0  ;;  %v1435_v0 = vadd.f32 %v3200_v15, %v1270_v20 }
 0x1f8   : > { %v1429_v9 = vpop.f32.mrf.mxu0 }
 0x1f9   : > { %1498 = vst [vmem:[#allocation2 + $0x79] sm:$0xff] %v1478_v37  ;;  %v1481_v63 = vmax.f32 %v1435_v0, 0.0  ;;  %v1430_v5 = vadd.f32 %v1429_v9, %v1265_v56 }
 0x1fa   : > { %v3203_v61 = vpop.f32.mrf.mxu0 }
 0x1fb   : > { %1501 = vst [vmem:[#allocation2 + $0x99] sm:$0xff] %v1481_v63  ;;  %v1480_v38 = vmax.f32 %v1430_v5, 0.0  ;;  %v1445_v46 = vadd.f32 %v3203_v61, %v1280_v60 }
 0x1fc   : > { %v1439_v29 = vpop.f32.mrf.mxu0 }
 0x1fd   : > { %1500 = vst [vmem:[#allocation2 + $0x91] sm:$0xff] %v1480_v38  ;;  %v1483_v24 = vmax.f32 %v1445_v46, 0.0  ;;  %v1440_v19 = vadd.f32 %v1439_v29, %v1275_v31 }
 0x1fe   : > { %v3206_v35 = vpop.f32.mrf.mxu0 }
 0x1ff   : > { %1503 = vst [vmem:[#allocation2 + $0xb1] sm:$0xff] %v1483_v24  ;;  %v1482_v41 = vmax.f32 %v1440_v19, 0.0  ;;  %v1455_v51 = vadd.f32 %v3206_v35, %v1290_v45 }
 0x200   : > { %v1449_v34 = vpop.f32.mrf.mxu0 }
 0x201   : > { %1502 = vst [vmem:[#allocation2 + $0xa9] sm:$0xff] %v1482_v41  ;;  %v1485_v3 = vmax.f32 %v1455_v51, 0.0  ;;  %v1450_v54 = vadd.f32 %v1449_v34, %v1285_v14 }
 0x202   : > { %v3209_v10 = vpop.f32.mrf.mxu0 }
 0x203   : > { %1505 = vst [vmem:[#allocation2 + $0xc9] sm:$0xff] %v1485_v3  ;;  %v1484_v30 = vmax.f32 %v1450_v54, 0.0  ;;  %v1465_v17 = vadd.f32 %v3209_v10, %v1300_v22 }
 0x204   : > { %v1459_v52 = vpop.f32.mrf.mxu0 }
 0x205   : > { %1504 = vst [vmem:[#allocation2 + $0xc1] sm:$0xff] %v1484_v30  ;;  %v1487_v7 = vmax.f32 %v1465_v17, 0.0  ;;  %v1460_v47 = vadd.f32 %v1459_v52, %v1295_v12  ;;  %1531 = sbr.rel (%p2751_p10) target bundleno = 525 (0x20d), region = 48 }
 0x207   : > { %1507 = vst [vmem:[#allocation2 + $0xe1] sm:$0xff] %v1487_v7  ;;  %v1486_v43 = vmax.f32 %v1460_v47, 0.0 }
 0x209   : > { %1506 = vst [vmem:[#allocation2 + $0xd9] sm:$0xff] %v1486_v43 }
 0x20a   : > { %v3420_v42 = vmov 0.0  }
 0x20b   : > { %1532 = vst [vmem:[#allocation2] sm:$0xff] %v3420_v42  ;;  %1533 = vst [vmem:[#allocation2 + $0x8] sm:$0xff] %v3420_v42 }
 0x20c   : > { %1534 = vst [vmem:[#allocation2 + $0x10] sm:$0x3] %v3420_v42 }
 0x20d PF: > { %p2752_p11 = scmp.ne.s32.totalorder %s5320_s25, 1 }
 0x20f   : > { %1538 = sbr.rel (%p2752_p11) target bundleno = 535 (0x217), region = 52 }
 0x214   : > { %v3421_v13 = vmov 0.0  }
 0x215   : > { %1540 = vst [vmem:[#allocation2 + $0xd8] sm:$0xff] %v3421_v13  ;;  %1541 = vst [vmem:[#allocation2 + $0xe0] sm:$0xff] %v3421_v13 }
 0x216   : > { %1542 = vst [vmem:[#allocation2 + $0xe8] sm:$0x3] %v3421_v13 }
 0x217 PF: > { %v1774_v21 = vld [vmem:[#allocation3 + $0xf8] sm:$0xff]  ;;  %v1773_v57 = vld [vmem:[#allocation3 + $0xf0] sm:$0xff]  ;;  %v1772_v25 = vld [vmem:[#allocation3 + $0xe8] sm:$0xff]  ;;  %s2759_s16 = sshll.u32 %s3476_s22, 11  ;;  %s2665_s23 = sshll.u32 %s4722_s17, 4  ;;  %s5210_s23 = int_to_ptr.vmem [resolvable:$true] %s2665_s23 }
 0x218   : > { %v1758_v16 = vld [vmem:[#allocation3 + $0x78] sm:$0xff]  ;;  %2796 = vmatprep.subr.mxu1 %v1774_v21  ;;  %v1757_v59 = vld [vmem:[#allocation3 + $0x70] sm:$0xff]  ;;  %v1756_v48 = vld [vmem:[#allocation3 + $0x68] sm:$0xff]  ;;  %s5208_s6 = scalar_lea.hbm %s5261_s5, %s2759_s16  ;;  %s5216_s22 = scalar_lea.sflag [#allocation5], %s230_s13 }
 0x219   : > { %v1806_v50 = vld [vmem:[#allocation3 + $0x1f8] sm:$0xff]  ;;  %2797 = vmatpush3.msra.mxu1 %v1758_v16  ;;  %v1805_v26 = vld [vmem:[#allocation3 + $0x1f0] sm:$0xff]  ;;  %v1804_v62 = vld [vmem:[#allocation3 + $0x1e8] sm:$0xff]  ;;  %s3350_s7 = scalar_lea.vmem %s5210_s23, 2048  ;;  %s3422_s9 = smov [#allocation6]  }
 0x21a   : > { %v1790_v58 = vld [vmem:[#allocation3 + $0x178] sm:$0xff]  ;;  %2876 = vmatprep.subr.mxu0 %v1806_v50  ;;  %2798 = vmatprep.subr.mxu1 %v1773_v57  ;;  %v1789_v2 = vld [vmem:[#allocation3 + $0x170] sm:$0xff]  ;;  %v1771_v40 = vld [vmem:[#allocation3 + $0xe0] sm:$0xff]  ;;  %p3351_p12 = scmp.ne.s32.totalorder %s5210_s23, %s3350_s7  ;;  %s3354_s11 = sshll.u32 %s3422_s9, 4  ;;  %s3355_s11 = int_to_ptr.vmem [resolvable:$false] %s3354_s11 }
 0x21b   : > { %2877 = vmatpush3.msra.mxu0 %v1790_v58  ;;  %2799 = vmatpush3.msra.mxu1 %v1757_v59  ;;  %v1788_v11 = vld [vmem:[#allocation3 + $0x168] sm:$0xff]  ;;  %v1755_v32 = vld [vmem:[#allocation3 + $0x60] sm:$0xff]  ;;  %v1770_v39 = vld [vmem:[#allocation3 + $0xd8] sm:$0xff]  ;;  %s3356_s12 = scalar_lea.vmem %s3355_s11, 4096  ;;  %p3357_p1 = scmp.lt.s32.totalorder %s5210_s23, %s3355_s11 }
 0x21c   : > { %2878 = vmatprep.subr.mxu0 %v1805_v26  ;;  %2800 = vmatprep.subr.mxu1 %v1772_v25  ;;  %v1803_v1 = vld [vmem:[#allocation3 + $0x1e0] sm:$0xff]  ;;  %v1754_v8 = vld [vmem:[#allocation3 + $0x58] sm:$0xff]  ;;  %v1769_v6 = vld [vmem:[#allocation3 + $0xd0] sm:$0xff]  ;;  %p3352_p13 = pnand %p3351_p12, %p3493_p5  ;;  %p3358_p2 = scmp.lt.s32.totalorder %s3356_s12, %s3350_s7 }
 0x21d   : > { %2879 = vmatpush3.msra.mxu0 %v1789_v2  ;;  %2801 = vmatpush3.msra.mxu1 %v1756_v48  ;;  %v1787_v18 = vld [vmem:[#allocation3 + $0x160] sm:$0xff]  ;;  %v1802_v23 = vld [vmem:[#allocation3 + $0x1d8] sm:$0xff]  ;;  %v1753_v20 = vld [vmem:[#allocation3 + $0x50] sm:$0xff] }
 0x21e   : > { %2880 = vmatprep.subr.mxu0 %v1804_v62  ;;  %2802 = vmatprep.subr.mxu1 %v1771_v40  ;;  %v1786_v55 = vld [vmem:[#allocation3 + $0x158] sm:$0xff]  ;;  %v1801_v53 = vld [vmem:[#allocation3 + $0x1d0] sm:$0xff]  ;;  %v1768_v28 = vld [vmem:[#allocation3 + $0xc8] sm:$0xff]  ;;  %p3353_p0 = pneg %p3352_p13  ;;  %p3359_p3 = por %p3358_p2, %p3357_p1 }
 0x21f   : > { %2881 = vmatpush3.msra.mxu0 %v1788_v11  ;;  %2803 = vmatpush3.msra.mxu1 %v1755_v32  ;;  %v1785_v49 = vld [vmem:[#allocation3 + $0x150] sm:$0xff]  ;;  %v1752_v15 = vld [vmem:[#allocation3 + $0x48] sm:$0xff]  ;;  %v1767_v36 = vld [vmem:[#allocation3 + $0xc0] sm:$0xff] }
 0x220   : > { %2882 = vmatprep.subr.mxu0 %v1803_v1  ;;  %2804 = vmatprep.subr.mxu1 %v1770_v39  ;;  %v1800_v56 = vld [vmem:[#allocation3 + $0x1c8] sm:$0xff]  ;;  %v1751_v0 = vld [vmem:[#allocation3 + $0x40] sm:$0xff]  ;;  %v1766_v60 = vld [vmem:[#allocation3 + $0xb8] sm:$0xff]  ;;  %p3360_p4 = pnand %p3359_p3, %p3353_p0 }
 0x221   : > { %2883 = vmatpush3.msra.mxu0 %v1787_v18  ;;  %2805 = vmatpush3.msra.mxu1 %v1754_v8  ;;  %v1784_v37 = vld [vmem:[#allocation3 + $0x148] sm:$0xff]  ;;  %v1799_v9 = vld [vmem:[#allocation3 + $0x1c0] sm:$0xff]  ;;  %v1750_v63 = vld [vmem:[#allocation3 + $0x38] sm:$0xff] }
 0x222   : > { %2884 = vmatprep.subr.mxu0 %v1802_v23  ;;  %2806 = vmatprep.subr.mxu1 %v1769_v6  ;;  %v1783_v44 = vld [vmem:[#allocation3 + $0x140] sm:$0xff]  ;;  %v1798_v5 = vld [vmem:[#allocation3 + $0x1b8] sm:$0xff]  ;;  %v1765_v61 = vld [vmem:[#allocation3 + $0xb0] sm:$0xff] }
 0x223   : > { %2885 = vmatpush3.msra.mxu0 %v1786_v55  ;;  %2807 = vmatpush3.msra.mxu1 %v1753_v20  ;;  %v1782_v31 = vld [vmem:[#allocation3 + $0x138] sm:$0xff]  ;;  %v1749_v33 = vld [vmem:[#allocation3 + $0x30] sm:$0xff]  ;;  %v1764_v46 = vld [vmem:[#allocation3 + $0xa8] sm:$0xff] }
 0x224   : > { %2886 = vmatprep.subr.mxu0 %v1801_v53  ;;  %2808 = vmatprep.subr.mxu1 %v1768_v28  ;;  %v1797_v38 = vld [vmem:[#allocation3 + $0x1b0] sm:$0xff]  ;;  %v1748_v45 = vld [vmem:[#allocation3 + $0x28] sm:$0xff]  ;;  %v1763_v24 = vld [vmem:[#allocation3 + $0xa0] sm:$0xff] }
 0x225   : > { %2887 = vmatpush3.msra.mxu0 %v1785_v49  ;;  %2809 = vmatpush3.msra.mxu1 %v1752_v15  ;;  %v1781_v29 = vld [vmem:[#allocation3 + $0x130] sm:$0xff]  ;;  %v1796_v27 = vld [vmem:[#allocation3 + $0x1a8] sm:$0xff]  ;;  %v1747_v19 = vld [vmem:[#allocation3 + $0x20] sm:$0xff] }
 0x226   : > { %2888 = vmatprep.subr.mxu0 %v1800_v56  ;;  %2810 = vmatprep.subr.mxu1 %v1767_v36  ;;  %v1780_v35 = vld [vmem:[#allocation3 + $0x128] sm:$0xff]  ;;  %v1795_v14 = vld [vmem:[#allocation3 + $0x1a0] sm:$0xff]  ;;  %v1543_v4 = vld [vmem:[#allocation2] sm:$0xff] }
 0x227   : > { %2889 = vmatpush3.msra.mxu0 %v1784_v37  ;;  %2811 = vmatpush3.msra.mxu1 %v1751_v0  ;;  %v4726_v41 = vld [vmem:[#allocation2 + $0x8] sm:$0xff]  ;;  %v1779_v34 = vld [vmem:[#allocation3 + $0x120] sm:$0xff]  ;;  %v1761_v54 = vld [vmem:[#allocation3 + $0x90] sm:$0xff]  ;;  %v1597_v12 = vrot.slane %v1543_v4, 1  ;;  %v1653_v59 = vrot.slane %v1543_v4, 2 }
 0x228   : > { %2890 = vmatprep.subr.mxu0 %v1799_v9  ;;  %2812 = vmatprep.subr.mxu1 %v1766_v60  ;;  %v1762_v51 = vld [vmem:[#allocation3 + $0x98] sm:$0xff]  ;;  %v1598_v30 = vrot.slane %v4726_v41, 1  ;;  %v1745_v17 = vld [vmem:[#allocation3 + $0x10] sm:$0xff]  ;;  %v1760_v7 = vld [vmem:[#allocation3 + $0x88] sm:$0xff]  ;;  %v1654_v58 = vrot.slane %v4726_v41, 2 }
 0x229   : > { %2891 = vmatpush3.msra.mxu0 %v1783_v44  ;;  %2813 = vmatpush3.msra.mxu1 %v1750_v63  ;;  %v1746_v22 = vld [vmem:[#allocation3 + $0x18] sm:$0xff]  ;;  %v1793_v52 = vld [vmem:[#allocation3 + $0x190] sm:$0xff]  ;;  %v1545_v43 = vld [vmem:[#allocation2 + $0x10] sm:$0x3] }
 0x22a   : > { %2892 = vmatprep.subr.mxu0 %v1798_v5  ;;  %2814 = vmatprep.subr.mxu1 %v1765_v61  ;;  %v1794_v3 = vld [vmem:[#allocation3 + $0x198] sm:$0xff]  ;;  %v1777_v47 = vld [vmem:[#allocation3 + $0x110] sm:$0xff]  ;;  %v1744_v42 = vld [vmem:[#allocation3 + $0x8] sm:$0xff]  ;;  %v1599_v16 = vsel %vm316_vm0, %v1597_v12, %v1598_v30  ;;  %v1600_v25 = vrot.slane %v1545_v43, 1  ;;  %v1655_v18 = vsel %vm387_vm1, %v1653_v59, %v1654_v58  ;;  %v1656_v23 = vrot.slane %v1545_v43, 2 }
 0x22b   : > { %2893 = vmatpush3.msra.mxu0 %v1782_v31  ;;  %2815 = vmatpush3.msra.mxu1 %v1749_v33  ;;  %v1778_v10 = vld [vmem:[#allocation3 + $0x118] sm:$0xff]  ;;  %v1792_v13 = vld [vmem:[#allocation3 + $0x188] sm:$0xff]  ;;  %v1759_v21 = vld [vmem:[#allocation3 + $0x80] sm:$0xff] }
 0x22c   : > { %2894 = vmatprep.subr.mxu0 %v1797_v38  ;;  %2816 = vmatprep.subr.mxu1 %v1764_v46  ;;  %v1743_v57 = vld [vmem:[#allocation3] sm:$0xff]  ;;  %v1776_v50 = vld [vmem:[#allocation3 + $0x108] sm:$0xff]  ;;  %v4731_v26 = vld [vmem:[#allocation2 + $0x20] sm:$0xff]  ;;  %v1601_v8 = vsel %vm316_vm0, %v1598_v30, %v1600_v25  ;;  %v1657_v15 = vsel %vm387_vm1, %v1654_v58, %v1656_v23 }
 0x22d   : > { %2895 = vmatpush3.msra.mxu0 %v1781_v29  ;;  %2817 = vmatpush3.msra.mxu1 %v1748_v45  ;;  %v1791_v48 = vld [vmem:[#allocation3 + $0x180] sm:$0xff]  ;;  %v1838_v2 = vld [vmem:[#allocation3 + $0x2f8] sm:$0xff]  ;;  %v1546_v40 = vld [vmem:[#allocation2 + $0x18] sm:$0xff]  ;;  %v1603_v1 = vrot.slane %v4731_v26, 1  ;;  %v1659_v37 = vrot.slane %v4731_v26, 2 }
 0x22e   : > { %2896 = vmatprep.subr.mxu0 %v1796_v27  ;;  %2818 = vmatprep.subr.mxu1 %v1763_v24  ;;  %v1775_v62 = vld [vmem:[#allocation3 + $0x100] sm:$0xff]  ;;  %v1822_v11 = vld [vmem:[#allocation3 + $0x278] sm:$0xff]  ;;  %v1602_v32 = vrot.slane %v1546_v40, 1  ;;  %v1837_v6 = vld [vmem:[#allocation3 + $0x2f0] sm:$0xff]  ;;  %v1658_v36 = vrot.slane %v1546_v40, 2 }
 0x22f   : > { %2897 = vmatpush3.msra.mxu0 %v1780_v35  ;;  %2819 = vmatpush3.msra.mxu1 %v1747_v19  ;;  %v1548_v39 = vld [vmem:[#allocation2 + $0x28] sm:$0x3]  ;;  %v1821_v55 = vld [vmem:[#allocation3 + $0x270] sm:$0xff]  ;;  %v1836_v28 = vld [vmem:[#allocation3 + $0x2e8] sm:$0xff] }
 0x230   : > { %2898 = vmatprep.subr.mxu0 %v1795_v14  ;;  %2820 = vmatprep.subr.mxu1 %v1762_v51  ;;  %v1605_v20 = vrot.slane %v1548_v39, 1  ;;  %v4737_v53 = vsel %vm316_vm0, %v1602_v32, %v1603_v1  ;;  %v4739_v49 = vld [vmem:[#allocation2 + $0x38] sm:$0xff]  ;;  %v4745_v0 = vld [vmem:[#allocation2 + $0x30] sm:$0xff]  ;;  %v1551_v61 = vld [vmem:[#allocation2 + $0x40] sm:$0x3]  ;;  %v4755_v33 = vsel %vm387_vm1, %v1658_v36, %v1659_v37  ;;  %v1661_v38 = vrot.slane %v1548_v39, 2 }
 0x231   : > { %2899 = vmatpush3.msra.mxu0 %v1779_v34  ;;  %2821 = vmatpush3.msra.mxu1 %v1746_v22  ;;  %v1820_v56 = vld [vmem:[#allocation3 + $0x268] sm:$0xff]  ;;  %v1835_v60 = vld [vmem:[#allocation3 + $0x2e0] sm:$0xff]  ;;  %v1607_v44 = vrot.slane %v4745_v0, 1  ;;  %v1608_v63 = vrot.slane %v4739_v49, 1  ;;  %v1870_v31 = vld [vmem:[#allocation3 + $0x3f8] sm:$0xff]  ;;  %v1610_v27 = vrot.slane %v1551_v61, 1 }
 0x232   : > { %2900 = vmatprep.subr.mxu0 %v1794_v3  ;;  %2822 = vmatprep.subr.mxu1 %v1761_v54  ;;  %v4749_v9 = vsel %vm316_vm0, %v1603_v1, %v1605_v20  ;;  %v1819_v5 = vld [vmem:[#allocation3 + $0x260] sm:$0xff]  ;;  %v1834_v46 = vld [vmem:[#allocation3 + $0x2d8] sm:$0xff]  ;;  %v1833_v24 = vld [vmem:[#allocation3 + $0x2d0] sm:$0xff]  ;;  %v4767_v14 = vsel %vm387_vm1, %v1659_v37, %v1661_v38 }
 0x233   : > { %2901 = vmatpush3.msra.mxu0 %v1778_v10  ;;  %2823 = vmatpush3.msra.mxu1 %v1745_v17  ;;  %v4759_v29 = vsel %vm316_vm0, %v1607_v44, %v1608_v63  ;;  %v1818_v45 = vld [vmem:[#allocation3 + $0x258] sm:$0xff]  ;;  %v4762_v19 = vld [vmem:[#allocation2 + $0x50] sm:$0xff]  ;;  %v1817_v51 = vld [vmem:[#allocation3 + $0x250] sm:$0xff]  ;;  %v4775_v22 = vsel %vm316_vm0, %v1608_v63, %v1610_v27 }
 0x234   : > { %2902 = vmatprep.subr.mxu0 %v1793_v52  ;;  %2824 = vmatprep.subr.mxu1 %v1760_v7  ;;  %v1854_v35 = vld [vmem:[#allocation3 + $0x378] sm:$0xff]  ;;  %v1613_v54 = vrot.slane %v4762_v19, 1  ;;  %v1832_v10 = vld [vmem:[#allocation3 + $0x2c8] sm:$0xff]  ;;  %v1869_v17 = vld [vmem:[#allocation3 + $0x3f0] sm:$0xff]  ;;  %v1666_v7 = vrot.slane %v1551_v61, 2  ;;  %v1669_v58 = vrot.slane %v4762_v19, 2 }
 0x235   : > { %2903 = vmatpush3.msra.mxu0 %v1777_v47  ;;  %2825 = vmatpush3.msra.mxu1 %v1744_v42  ;;  %v4772_v34 = vld [vmem:[#allocation2 + $0x48] sm:$0xff]  ;;  %v1816_v12 = vld [vmem:[#allocation3 + $0x248] sm:$0xff]  ;;  %v1831_v47 = vld [vmem:[#allocation3 + $0x2c0] sm:$0xff] }
 0x236   : > { %2904 = vmatprep.subr.mxu0 %v1792_v13  ;;  %2826 = vmatprep.subr.mxu1 %v1759_v21  ;;  %v1612_v3 = vrot.slane %v4772_v34, 1  ;;  %v1554_v30 = vld [vmem:[#allocation2 + $0x58] sm:$0x3]  ;;  %v1815_v13 = vld [vmem:[#allocation3 + $0x240] sm:$0xff]  ;;  %v4790_v21 = vld [vmem:[#allocation2 + $0x68] sm:$0xff]  ;;  %v1668_v59 = vrot.slane %v4772_v34, 2 }
 0x237   : > { %1958 = vmatprep.mubr.f32.mxu1 %v1599_v16  ;;  %2827 = vmatpush3.msra.mxu1 %v1743_v57  ;;  %v1615_v42 = vrot.slane %v1554_v30, 1  ;;  %v1830_v16 = vld [vmem:[#allocation3 + $0x2b8] sm:$0xff]  ;;  %v1853_v57 = vld [vmem:[#allocation3 + $0x370] sm:$0xff]  ;;  %v1868_v32 = vld [vmem:[#allocation3 + $0x3e8] sm:$0xff]  ;;  %v1674_v37 = vrot.slane %v4790_v21, 2 }
 0x238   : > { %2905 = vmatpush3.msra.mxu0 %v1776_v50  ;;  %1959 = vmatmul.mubr.f32.vlgmr.msra.gmra.mxu1 %v1543_v4  ;;  %v1663_v4 = vrot.slane %v4745_v0, 2  ;;  %v4787_v43 = vsel %vm316_vm0, %v1612_v3, %v1613_v54  ;;  %v1814_v25 = vld [vmem:[#allocation3 + $0x238] sm:$0xff]  ;;  %v1813_v1 = vld [vmem:[#allocation3 + $0x230] sm:$0xff]  ;;  %v4811_v39 = vsel %vm387_vm1, %v1668_v59, %v1669_v58  ;;  %v4828_v44 = vld [vmem:[#allocation2 + $0x78] sm:$0xff] }
 0x239   : > { %2906 = vmatprep.subr.mxu0 %v1791_v48  ;;  %2956 = vmatprep.subr.mxu1 %v1838_v2  ;;  %v4803_v48 = vsel %vm316_vm0, %v1613_v54, %v1615_v42  ;;  %v4818_v20 = vld [vmem:[#allocation2 + $0x80] sm:$0xff]  ;;  %v1866_v38 = vld [vmem:[#allocation3 + $0x3d8] sm:$0xff]  ;;  %v4846_v54 = vld [vmem:[#allocation2 + $0x98] sm:$0xff] }
 0x23a   : > { %2907 = vmatpush3.msra.mxu0 %v1775_v62  ;;  %2103 = vmatprep.mubr.f32.mxu0 %v1546_v40  ;;  %v1618_v62 = vrot.slane %v4790_v21, 1  ;;  %v1623_v61 = vrot.slane %v4818_v20, 1  ;;  %v1865_v3 = vld [vmem:[#allocation3 + $0x3d0] sm:$0xff]  ;;  %v1864_v59 = vld [vmem:[#allocation3 + $0x3c8] sm:$0xff] }
 0x23b   : > { %2957 = vmatpush3.msra.mxu1 %v1822_v11  ;;  %2104 = vmatmul.mubr.f32.vlgmr.msra.gmra.mxu0 %v1655_v18  ;;  %v1557_v11 = vld [vmem:[#allocation2 + $0x70] sm:$0x3]  ;;  %v1671_v18 = vrot.slane %v1554_v30, 2  ;;  %v1678_v30 = vrot.slane %v4828_v44, 2 }
 0x23c   : > { %1963 = vmatprep.mubr.f32.mxu1 %v1601_v8  ;;  %2958 = vmatprep.subr.mxu1 %v1837_v6  ;;  %v1828_v8 = vld [vmem:[#allocation3 + $0x2a8] sm:$0xff]  ;;  %v1620_v6 = vrot.slane %v1557_v11, 1 }
 0x23d   : > { %1964 = vmatmul.mubr.f32.gmra.mxu1 %v4726_v41  ;;  %2108 = vmatprep.mubr.f32.mxu0 %v4731_v26  ;;  %v1664_v41 = vrot.slane %v4739_v49, 2 }
 0x23e   : > { %2959 = vmatpush3.msra.mxu1 %v1821_v55  ;;  %1968 = vmatprep.mubr.f32.mxu1 %v4737_v53  ;;  %v1852_v55 = vld [vmem:[#allocation3 + $0x368] sm:$0xff]  ;;  %v4831_v63 = vsel %vm316_vm0, %v1618_v62, %v1620_v6 }
 0x23f   : > { %2960 = vmatprep.subr.mxu1 %v1836_v28  ;;  %2109 = vmatmul.mubr.f32.gmra.mxu0 %v1657_v15  ;;  %v4783_v52 = vsel %vm387_vm1, %v1663_v4, %v1664_v41  ;;  %v4795_v50 = vsel %vm387_vm1, %v1664_v41, %v1666_v7  ;;  %v1867_v28 = vld [vmem:[#allocation3 + $0x3e0] sm:$0xff]  ;;  %v1812_v15 = vld [vmem:[#allocation3 + $0x228] sm:$0xff]  ;;  %v1825_v7 = vld [vmem:[#allocation3 + $0x290] sm:$0xff] }
 0x240   : > { %2961 = vmatpush3.msra.mxu1 %v1820_v56  ;;  %2113 = vmatprep.mubr.f32.mxu0 %v4745_v0  ;;  %v4823_v56 = vsel %vm387_vm1, %v1669_v58, %v1671_v18  ;;  %v1563_v58 = vld [vmem:[#allocation2 + $0xa0] sm:$0x3]  ;;  %v1863_v18 = vld [vmem:[#allocation3 + $0x3c0] sm:$0xff] }
 0x241   : > { %1969 = vmatmul.mubr.f32.gmra.mxu1 %v1546_v40  ;;  %2962 = vmatprep.subr.mxu1 %v1835_v60  ;;  %v1829_v40 = vld [vmem:[#allocation3 + $0x2b0] sm:$0xff]  ;;  %v1827_v60 = vld [vmem:[#allocation3 + $0x2a0] sm:$0xff] }
 0x242   : > { %1973 = vmatprep.mubr.f32.mxu1 %v4749_v9  ;;  %2963 = vmatpush3.msra.mxu1 %v1819_v5  ;;  %v1622_v5 = vrot.slane %v4828_v44, 1 }
 0x243   : > { %3036 = vmatprep.subr.mxu0 %v1870_v31  ;;  %2114 = vmatmul.mubr.f32.gmra.mxu0 %v4755_v33  ;;  %v1851_v31 = vld [vmem:[#allocation3 + $0x360] sm:$0xff] }
 0x244   : > { %2964 = vmatprep.subr.mxu1 %v1834_v46  ;;  %2118 = vmatprep.mubr.f32.mxu0 %v4739_v49  ;;  %v1560_v46 = vld [vmem:[#allocation2 + $0x88] sm:$0x3]  ;;  %v4843_v4 = vsel %vm316_vm0, %v1622_v5, %v1623_v61 }
 0x245   : > { %1974 = vmatmul.mubr.f32.gmra.mxu1 %v4731_v26  ;;  %3037 = vmatpush3.msra.mxu0 %v1854_v35  ;;  %v4800_v26 = vld [vmem:[#allocation2 + $0x60] sm:$0xff]  ;;  %v1826_v35 = vld [vmem:[#allocation3 + $0x298] sm:$0xff]  ;;  %v1625_v41 = vrot.slane %v1560_v46, 1 }
 0x246   : > { %1978 = vmatprep.mubr.f32.mxu1 %v4759_v29  ;;  %2965 = vmatpush3.msra.mxu1 %v1818_v45  ;;  %v1617_v2 = vrot.slane %v4800_v26, 1  ;;  %v1673_v36 = vrot.slane %v4800_v26, 2  ;;  %v1811_v45 = vld [vmem:[#allocation3 + $0x220] sm:$0xff] }
 0x247   : > { %2966 = vmatprep.subr.mxu1 %v1833_v24  ;;  %2119 = vmatmul.mubr.f32.gmra.mxu0 %v4767_v14  ;;  %v1676_v24 = vrot.slane %v1557_v11, 2  ;;  %v4859_v42 = vsel %vm316_vm0, %v1623_v61, %v1625_v41  ;;  %v1862_v61 = vld [vmem:[#allocation3 + $0x3b8] sm:$0xff] }
 0x248   : > { %2967 = vmatpush3.msra.mxu1 %v1817_v51  ;;  %2123 = vmatprep.mubr.f32.mxu0 %v4772_v34  ;;  %v4815_v23 = vsel %vm316_vm0, %v1617_v2, %v1618_v62  ;;  %v4839_v27 = vsel %vm387_vm1, %v1673_v36, %v1674_v37  ;;  %v1850_v51 = vld [vmem:[#allocation3 + $0x358] sm:$0xff]  ;;  %v1681_v62 = vrot.slane %v1560_v46, 2  ;;  %v1823_v36 = vld [vmem:[#allocation3 + $0x280] sm:$0xff] }
 0x249   : > { %1979 = vmatmul.mubr.f32.gmra.mxu1 %v4745_v0  ;;  %2968 = vmatprep.subr.mxu1 %v1832_v10  ;;  %v1810_v10 = vld [vmem:[#allocation3 + $0x218] sm:$0xff]  ;;  %v1807_v46 = vld [vmem:[#allocation3 + $0x200] sm:$0xff] }
 0x24a   : > { %1983 = vmatprep.mubr.f32.mxu1 %v4775_v22  ;;  %2969 = vmatpush3.msra.mxu1 %v1816_v12  ;;  %v4851_v12 = vsel %vm387_vm1, %v1674_v37, %v1676_v24  ;;  %v4884_v37 = vld [vmem:[#allocation2 + $0xa8] sm:$0xff]  ;;  %v1686_v24 = vrot.slane %v1563_v58, 2 }
 0x24b   : > { %3038 = vmatprep.subr.mxu0 %v1869_v17  ;;  %2124 = vmatmul.mubr.f32.gmra.mxu0 %v4783_v52  ;;  %v1679_v17 = vrot.slane %v4818_v20, 2  ;;  %v1886_v41 = vld [vmem:[#allocation3 + $0x478] sm:$0xff] }
 0x24c   : > { %2970 = vmatprep.subr.mxu1 %v1831_v47  ;;  %2128 = vmatprep.mubr.f32.mxu0 %v4762_v19  ;;  %v4856_v47 = vld [vmem:[#allocation2 + $0x90] sm:$0xff] }
 0x24d   : > { %1984 = vmatmul.mubr.f32.gmra.mxu1 %v4739_v49  ;;  %3039 = vmatpush3.msra.mxu0 %v1853_v57  ;;  %v1628_v57 = vrot.slane %v4846_v54, 1  ;;  %v4867_v2 = vsel %vm387_vm1, %v1678_v30, %v1679_v17  ;;  %v4877_v6 = vsel %vm387_vm1, %v1679_v17, %v1681_v62  ;;  %v1843_v62 = vld [vmem:[#allocation3 + $0x320] sm:$0xff] }
 0x24e   : > { %1988 = vmatprep.mubr.f32.mxu1 %v4787_v43  ;;  %2971 = vmatpush3.msra.mxu1 %v1815_v13  ;;  %v1849_v13 = vld [vmem:[#allocation3 + $0x350] sm:$0xff] }
 0x24f   : > { %2972 = vmatprep.subr.mxu1 %v1830_v16  ;;  %2129 = vmatmul.mubr.f32.gmra.mxu0 %v4795_v50  ;;  %v1627_v16 = vrot.slane %v4856_v47, 1 }
 0x250   : > { %2973 = vmatpush3.msra.mxu1 %v1814_v25  ;;  %2133 = vmatprep.mubr.f32.mxu0 %v4800_v26  ;;  %v1809_v25 = vld [vmem:[#allocation3 + $0x210] sm:$0xff] }
 0x251   : > { %1989 = vmatmul.mubr.f32.gmra.mxu1 %v4772_v34  ;;  %2974 = vmatprep.subr.mxu1 %v1829_v40  ;;  %v1824_v40 = vld [vmem:[#allocation3 + $0x288] sm:$0xff]  ;;  %v4871_v11 = vsel %vm316_vm0, %v1627_v16, %v1628_v57  ;;  %v1688_v16 = vrot.slane %v4884_v37, 2 }
 0x252   : > { %1993 = vmatprep.mubr.f32.mxu1 %v4803_v48  ;;  %3040 = vmatprep.subr.mxu0 %v1868_v32  ;;  %v1848_v32 = vld [vmem:[#allocation3 + $0x348] sm:$0xff] }
 0x253   : > { %2975 = vmatpush3.msra.mxu1 %v1813_v1  ;;  %2134 = vmatmul.mubr.f32.gmra.mxu0 %v4811_v39  ;;  %v1630_v1 = vrot.slane %v1563_v58, 1  ;;  %v1859_v58 = vld [vmem:[#allocation3 + $0x3a0] sm:$0xff] }
 0x254   : > { %2976 = vmatprep.subr.mxu1 %v1828_v8  ;;  %2138 = vmatprep.mubr.f32.mxu0 %v4790_v21  ;;  %v1808_v8 = vld [vmem:[#allocation3 + $0x208] sm:$0xff] }
 0x255   : > { %1994 = vmatmul.mubr.f32.gmra.mxu1 %v4762_v19  ;;  %3041 = vmatpush3.msra.mxu0 %v1852_v55  ;;  %v1683_v55 = vrot.slane %v4856_v47, 2  ;;  %v4887_v5 = vsel %vm316_vm0, %v1628_v57, %v1630_v1  ;;  %v1858_v1 = vld [vmem:[#allocation3 + $0x398] sm:$0xff] }
 0x256   : > { %1998 = vmatprep.mubr.f32.mxu1 %v4815_v23  ;;  %3042 = vmatprep.subr.mxu0 %v1867_v28  ;;  %v1684_v28 = vrot.slane %v4846_v54, 2 }
 0x257   : > { %2977 = vmatpush3.msra.mxu1 %v1812_v15  ;;  %2139 = vmatmul.mubr.f32.gmra.mxu0 %v4823_v56  ;;  %v4881_v15 = vld [vmem:[#allocation2 + $0xb0] sm:$0xff] }
 0x258   : > { %2978 = vmatprep.subr.mxu1 %v1827_v60  ;;  %2143 = vmatprep.mubr.f32.mxu0 %v4828_v44  ;;  %v1847_v60 = vld [vmem:[#allocation3 + $0x340] sm:$0xff]  ;;  %v1689_v57 = vrot.slane %v4881_v15, 2 }
 0x259   : > { %1999 = vmatmul.mubr.f32.gmra.mxu1 %v4800_v26  ;;  %3043 = vmatpush3.msra.mxu0 %v1851_v31  ;;  %v1632_v31 = vrot.slane %v4884_v37, 1 }
 0x25a   : > { %2003 = vmatprep.mubr.f32.mxu1 %v4831_v63  ;;  %3044 = vmatprep.subr.mxu0 %v1866_v38  ;;  %v1633_v38 = vrot.slane %v4881_v15, 1 }
 0x25b   : > { %2979 = vmatpush3.msra.mxu1 %v1811_v45  ;;  %2144 = vmatmul.mubr.f32.gmra.mxu0 %v4839_v27  ;;  %v4895_v45 = vsel %vm387_vm1, %v1683_v55, %v1684_v28  ;;  %v1857_v55 = vld [vmem:[#allocation3 + $0x390] sm:$0xff] }
 0x25c   : > { %2980 = vmatprep.subr.mxu1 %v1826_v35  ;;  %2148 = vmatprep.mubr.f32.mxu0 %v4818_v20  ;;  %v1566_v35 = vld [vmem:[#allocation2 + $0xb8] sm:$0x3]  ;;  %v4900_v30 = vsel %vm316_vm0, %v1632_v31, %v1633_v38 }
 0x25d   : > { %2004 = vmatmul.mubr.f32.gmra.mxu1 %v4790_v21  ;;  %3045 = vmatpush3.msra.mxu0 %v1850_v51  ;;  %v1846_v51 = vld [vmem:[#allocation3 + $0x338] sm:$0xff]  ;;  %v1635_v17 = vrot.slane %v1566_v35, 1  ;;  %v1840_v31 = vld [vmem:[#allocation3 + $0x308] sm:$0xff] }
 0x25e   : > { %2008 = vmatprep.mubr.f32.mxu1 %v4843_v4  ;;  %3046 = vmatprep.subr.mxu0 %v1865_v3  ;;  %v1861_v3 = vld [vmem:[#allocation3 + $0x3b0] sm:$0xff] }
 0x25f   : > { %2981 = vmatpush3.msra.mxu1 %v1810_v10  ;;  %2149 = vmatmul.mubr.f32.gmra.mxu0 %v4851_v12  ;;  %v1845_v10 = vld [vmem:[#allocation3 + $0x330] sm:$0xff] }
 0x260   : > { %2982 = vmatprep.subr.mxu1 %v1825_v7  ;;  %2153 = vmatprep.mubr.f32.mxu0 %v4856_v47  ;;  %v4904_v7 = vsel %vm387_vm1, %v1684_v28, %v1686_v24  ;;  %v4922_v28 = vld [vmem:[#allocation2 + $0xc8] sm:$0xff]  ;;  %v1885_v24 = vld [vmem:[#allocation3 + $0x470] sm:$0xff] }
 0x261   : > { %2009 = vmatmul.mubr.f32.gmra.mxu1 %v4828_v44  ;;  %3047 = vmatpush3.msra.mxu0 %v1849_v13  ;;  %v1860_v13 = vld [vmem:[#allocation3 + $0x3a8] sm:$0xff] }
 0x262   : > { %2013 = vmatprep.mubr.f32.mxu1 %v4859_v42  ;;  %3048 = vmatprep.subr.mxu0 %v1864_v59  ;;  %v1844_v59 = vld [vmem:[#allocation3 + $0x328] sm:$0xff] }
 0x263   : > { %2983 = vmatpush3.msra.mxu1 %v1809_v25  ;;  %2154 = vmatmul.mubr.f32.gmra.mxu0 %v4867_v2  ;;  %v4910_v25 = vld [vmem:[#allocation2 + $0xc0] sm:$0xff] }
 0x264   : > { %2984 = vmatprep.subr.mxu1 %v1824_v40  ;;  %2158 = vmatprep.mubr.f32.mxu0 %v4846_v54  ;;  %v4914_v40 = vsel %vm316_vm0, %v1633_v38, %v1635_v17  ;;  %v1855_v38 = vld [vmem:[#allocation3 + $0x380] sm:$0xff] }
 0x265   : > { %2014 = vmatmul.mubr.f32.gmra.mxu1 %v4818_v20  ;;  %3049 = vmatpush3.msra.mxu0 %v1848_v32  ;;  %v4918_v32 = vsel %vm387_vm1, %v1688_v16, %v1689_v57 }
 0x266   : > { %2018 = vmatprep.mubr.f32.mxu1 %v4871_v11  ;;  %3050 = vmatprep.subr.mxu0 %v1863_v18  ;;  %v1691_v18 = vrot.slane %v1566_v35, 2  ;;  %v1884_v35 = vld [vmem:[#allocation3 + $0x468] sm:$0xff] }
 0x267   : > { %2985 = vmatpush3.msra.mxu1 %v1808_v8  ;;  %2159 = vmatmul.mubr.f32.gmra.mxu0 %v4877_v6  ;;  %v1842_v8 = vld [vmem:[#allocation3 + $0x318] sm:$0xff] }
 0x268   : > { %2986 = vmatprep.subr.mxu1 %v1823_v36  ;;  %2163 = vmatprep.mubr.f32.mxu0 %v4884_v37  ;;  %v1841_v36 = vld [vmem:[#allocation3 + $0x310] sm:$0xff] }
 0x269   : > { %2019 = vmatmul.mubr.f32.gmra.mxu1 %v4856_v47  ;;  %3051 = vmatpush3.msra.mxu0 %v1847_v60  ;;  %v4927_v60 = vsel %vm387_vm1, %v1689_v57, %v1691_v18 }
 0x26a   : > { %2023 = vmatprep.mubr.f32.mxu1 %v4887_v5  ;;  %3052 = vmatprep.subr.mxu0 %v1862_v61  ;;  %v1856_v61 = vld [vmem:[#allocation3 + $0x388] sm:$0xff] }
 0x26b   : > { %2987 = vmatpush3.msra.mxu1 %v1807_v46  ;;  %2164 = vmatmul.mubr.f32.gmra.mxu0 %v4895_v45  ;;  %v1839_v46 = vld [vmem:[#allocation3 + $0x300] sm:$0xff] }
 0x26c   : > { %3210 = vmatprep.subr.mxu1 %v1886_v41  ;;  %3053 = vmatpush3.msra.mxu0 %v1846_v51 }
 0x26d   : > { %2024 = vmatmul.mubr.f32.gmra.mxu1 %v4846_v54  ;;  %3054 = vmatprep.subr.mxu0 %v1861_v3  ;;  %v1572_v3 = vld [vmem:[#allocation2 + $0xe8] sm:$0x3] }
 0x26e   : > { %2168 = vmatprep.mubr.f32.mxu0 %v4881_v15  ;;  %3055 = vmatpush3.msra.mxu0 %v1845_v10  ;;  %v1732_v10 = vrot.slane %v1572_v3, 1 }
 0x26f   : > { %2028 = vmatprep.mubr.f32.mxu1 %v4900_v30  ;;  %2169 = vmatmul.mubr.f32.gmra.mxu0 %v4904_v7 }
 0x270   : > { %3056 = vmatprep.subr.mxu0 %v1860_v13  ;;  %2173 = vmatprep.mubr.f32.mxu0 %v4910_v25 }
 0x271   : > { %3057 = vmatpush3.msra.mxu0 %v1844_v59  ;;  %2029 = vmatmul.mubr.f32.gmra.mxu1 %v4884_v37 }
 0x272   : > { %3058 = vmatprep.subr.mxu0 %v1859_v58  ;;  %2033 = vmatprep.mubr.f32.mxu1 %v4914_v40 }
 0x273   : > { %3059 = vmatpush3.msra.mxu0 %v1843_v62 }
 0x274   : > { %2174 = vmatmul.mubr.f32.gmra.mxu0 %v4918_v32  ;;  %3060 = vmatprep.subr.mxu0 %v1858_v1 }
 0x275   : > { %3061 = vmatpush3.msra.mxu0 %v1842_v8  ;;  %2034 = vmatmul.mubr.f32.gmra.mxu1 %v4881_v15 }
 0x276   : > { %3062 = vmatprep.subr.mxu0 %v1857_v55  ;;  %2178 = vmatprep.mubr.f32.mxu0 %v4922_v28 }
 0x277   : > { %3063 = vmatpush3.msra.mxu0 %v1841_v36  ;;  %2248 = vmatprep.mubr.f32.mxu1 %v4755_v33  ;;  %v1879_v33 = vld [vmem:[#allocation3 + $0x440] sm:$0xff] }
 0x278   : > { %2179 = vmatmul.mubr.f32.gmra.mxu0 %v4927_v60  ;;  %3064 = vmatprep.subr.mxu0 %v1856_v61 }
 0x279   : > { %3065 = vmatpush3.msra.mxu0 %v1840_v31  ;;  %2249 = vmatmul.mubr.f32.vlgmr.msra.gmra.mxu1 %v4737_v53  ;;  %v1883_v53 = vld [vmem:[#allocation3 + $0x460] sm:$0xff] }
 0x27a   : > { %3066 = vmatprep.subr.mxu0 %v1855_v38  ;;  %2393 = vmatprep.mubr.f32.mxu0 %v4759_v29 }
 0x27b   : > { %3067 = vmatpush3.msra.mxu0 %v1839_v46  ;;  %3211 = vmatpush3.msra.mxu1 %v1886_v41 }
 0x27c   : > { %2394 = vmatmul.mubr.f32.vlgmr.msra.gmra.mxu0 %v4745_v0  ;;  %2253 = vmatprep.mubr.f32.mxu1 %v4767_v14  ;;  %v1882_v0 = vld [vmem:[#allocation3 + $0x458] sm:$0xff]  ;;  %v1876_v14 = vld [vmem:[#allocation3 + $0x428] sm:$0xff] }
 0x27d   : > { %2254 = vmatmul.mubr.f32.gmra.mxu1 %v4749_v9  ;;  %3212 = vmatprep.subr.mxu1 %v1885_v24  ;;  %v1881_v9 = vld [vmem:[#allocation3 + $0x450] sm:$0xff] }
 0x27e   : > { %2398 = vmatprep.mubr.f32.mxu0 %v4775_v22  ;;  %3213 = vmatpush3.msra.mxu1 %v1885_v24 }
 0x27f   : > { %2258 = vmatprep.mubr.f32.mxu1 %v4783_v52  ;;  %3214 = vmatprep.subr.mxu1 %v1884_v35 }
 0x280   : > { %2399 = vmatmul.mubr.f32.gmra.mxu0 %v4739_v49  ;;  %3215 = vmatpush3.msra.mxu1 %v1884_v35  ;;  %v1880_v49 = vld [vmem:[#allocation3 + $0x448] sm:$0xff] }
 0x281   : > { %2259 = vmatmul.mubr.f32.gmra.mxu1 %v4759_v29  ;;  %2403 = vmatprep.mubr.f32.mxu0 %v4787_v43  ;;  %v1878_v29 = vld [vmem:[#allocation3 + $0x438] sm:$0xff] }
 0x282   : > { %2263 = vmatprep.mubr.f32.mxu1 %v4795_v50  ;;  %3216 = vmatprep.subr.mxu1 %v1883_v53 }
 0x283   : > { %3217 = vmatpush3.msra.mxu1 %v1883_v53 }
 0x284   : > { %2404 = vmatmul.mubr.f32.gmra.mxu0 %v4772_v34  ;;  %3218 = vmatprep.subr.mxu1 %v1882_v0  ;;  %v1875_v34 = vld [vmem:[#allocation3 + $0x420] sm:$0xff] }
 0x285   : > { %2264 = vmatmul.mubr.f32.gmra.mxu1 %v4775_v22  ;;  %2408 = vmatprep.mubr.f32.mxu0 %v4803_v48  ;;  %v1874_v22 = vld [vmem:[#allocation3 + $0x418] sm:$0xff] }
 0x286   : > { %2268 = vmatprep.mubr.f32.mxu1 %v4811_v39  ;;  %3219 = vmatpush3.msra.mxu1 %v1882_v0 }
 0x287   : > { %3220 = vmatprep.subr.mxu1 %v1881_v9 }
 0x288   : > { %2409 = vmatmul.mubr.f32.gmra.mxu0 %v4762_v19  ;;  %3221 = vmatpush3.msra.mxu1 %v1881_v9  ;;  %v1877_v19 = vld [vmem:[#allocation3 + $0x430] sm:$0xff] }
 0x289   : > { %2269 = vmatmul.mubr.f32.gmra.mxu1 %v4787_v43  ;;  %2413 = vmatprep.mubr.f32.mxu0 %v4815_v23  ;;  %v1873_v43 = vld [vmem:[#allocation3 + $0x410] sm:$0xff] }
 0x28a   : > { %2273 = vmatprep.mubr.f32.mxu1 %v4823_v56  ;;  %3222 = vmatprep.subr.mxu1 %v1880_v49 }
 0x28b   : > { %3223 = vmatpush3.msra.mxu1 %v1880_v49 }
 0x28c   : > { %2414 = vmatmul.mubr.f32.gmra.mxu0 %v4800_v26  ;;  %3224 = vmatprep.subr.mxu1 %v1879_v33  ;;  %v1871_v26 = vld [vmem:[#allocation3 + $0x400] sm:$0xff] }
 0x28d   : > { %2274 = vmatmul.mubr.f32.gmra.mxu1 %v4803_v48  ;;  %2418 = vmatprep.mubr.f32.mxu0 %v4831_v63  ;;  %v1712_v48 = vrot.slane %v4910_v25, 1 }
 0x28e   : > { %2278 = vmatprep.mubr.f32.mxu1 %v4839_v27  ;;  %3225 = vmatpush3.msra.mxu1 %v1879_v33 }
 0x28f   : > { %3226 = vmatprep.subr.mxu1 %v1878_v29 }
 0x290   : > { %2419 = vmatmul.mubr.f32.gmra.mxu0 %v4790_v21  ;;  %3227 = vmatpush3.msra.mxu1 %v1878_v29  ;;  %v1872_v21 = vld [vmem:[#allocation3 + $0x408] sm:$0xff] }
 0x291   : > { %2279 = vmatmul.mubr.f32.gmra.mxu1 %v4815_v23  ;;  %2423 = vmatprep.mubr.f32.mxu0 %v4843_v4  ;;  %v1713_v23 = vrot.slane %v4922_v28, 1 }
 0x292   : > { %2283 = vmatprep.mubr.f32.mxu1 %v4851_v12  ;;  %3228 = vmatprep.subr.mxu1 %v1877_v19 }
 0x293   : > { %3229 = vmatpush3.msra.mxu1 %v1877_v19 }
 0x294   : > { %2424 = vmatmul.mubr.f32.gmra.mxu0 %v4828_v44  ;;  %3230 = vmatprep.subr.mxu1 %v1876_v14  ;;  %v1714_v44 = vsel %vm316_vm0, %v1712_v48, %v1713_v23 }
 0x295   : > { %2284 = vmatmul.mubr.f32.gmra.mxu1 %v4831_v63  ;;  %2428 = vmatprep.mubr.f32.mxu0 %v4859_v42 }
 0x296   : > { %2288 = vmatprep.mubr.f32.mxu1 %v4867_v2  ;;  %3231 = vmatpush3.msra.mxu1 %v1876_v14 }
 0x297   : > { %3232 = vmatprep.subr.mxu1 %v1875_v34 }
 0x298   : > { %2429 = vmatmul.mubr.f32.gmra.mxu0 %v4818_v20  ;;  %3233 = vmatpush3.msra.mxu1 %v1875_v34  ;;  %v1569_v20 = vld [vmem:[#allocation2 + $0xd0] sm:$0x3] }
 0x299   : > { %2289 = vmatmul.mubr.f32.gmra.mxu1 %v4843_v4  ;;  %2433 = vmatprep.mubr.f32.mxu0 %v4871_v11  ;;  %v1715_v63 = vrot.slane %v1569_v20, 1  ;;  %v1719_v4 = vrot.slane %v4910_v25, 2  ;;  %v1722_v51 = vrot.slane %v1569_v20, 2 }
 0x29a   : > { %2293 = vmatprep.mubr.f32.mxu1 %v4877_v6  ;;  %3234 = vmatprep.subr.mxu1 %v1874_v22 }
 0x29b   : > { %3235 = vmatpush3.msra.mxu1 %v1874_v22 }
 0x29c   : > { %2434 = vmatmul.mubr.f32.gmra.mxu0 %v4856_v47  ;;  %3236 = vmatprep.subr.mxu1 %v1873_v43  ;;  %v1570_v47 = vld [vmem:[#allocation2 + $0xd8] sm:$0xff] }
 0x29d   : > { %2294 = vmatmul.mubr.f32.gmra.mxu1 %v4859_v42  ;;  %2438 = vmatprep.mubr.f32.mxu0 %v4887_v5  ;;  %v1571_v42 = vld [vmem:[#allocation2 + $0xe0] sm:$0xff] }
 0x29e   : > { %2298 = vmatprep.mubr.f32.mxu1 %v4895_v45  ;;  %3237 = vmatpush3.msra.mxu1 %v1873_v43 }
 0x29f   : > { %3238 = vmatprep.subr.mxu1 %v1872_v21 }
 0x2a0   : > { %2439 = vmatmul.mubr.f32.gmra.mxu0 %v4846_v54  ;;  %3239 = vmatpush3.msra.mxu1 %v1872_v21  ;;  %v1720_v54 = vrot.slane %v4922_v28, 2 }
 0x2a1   : > { %2299 = vmatmul.mubr.f32.gmra.mxu1 %v4871_v11  ;;  %2443 = vmatprep.mubr.f32.mxu0 %v4900_v30  ;;  %v1716_v11 = vsel %vm316_vm0, %v1713_v23, %v1715_v63 }
 0x2a2   : > { %2303 = vmatprep.mubr.f32.mxu1 %v4904_v7  ;;  %3240 = vmatprep.subr.mxu1 %v1871_v26  ;;  %v1721_v41 = vsel %vm387_vm1, %v1719_v4, %v1720_v54 }
 0x2a3   : > { %3241 = vmatpush3.msra.mxu1 %v1871_v26 }
 0x2a4   : > { %2444 = vmatmul.mubr.f32.gmra.mxu0 %v4884_v37  ;;  %v1729_v37 = vrot.slane %v1570_v47, 1 }
 0x2a5   : > { %2304 = vmatmul.mubr.f32.gmra.mxu1 %v4887_v5  ;;  %2448 = vmatprep.mubr.f32.mxu0 %v4914_v40  ;;  %v1730_v5 = vrot.slane %v1571_v42, 1 }
 0x2a6   : > { %2308 = vmatprep.mubr.f32.mxu1 %v4918_v32 }
 0x2a7   : > { %v1733_v17 = vsel %vm316_vm0, %v1730_v5, %v1732_v10 }
 0x2a8   : > { %2449 = vmatmul.mubr.f32.gmra.mxu0 %v4881_v15  ;;  %v1731_v15 = vsel %vm316_vm0, %v1729_v37, %v1730_v5 }
 0x2a9   : > { %2309 = vmatmul.mubr.f32.gmra.mxu1 %v4900_v30  ;;  %2453 = vmatprep.mubr.f32.mxu0 %v1714_v44  ;;  %v1723_v30 = vsel %vm387_vm1, %v1720_v54, %v1722_v51 }
 0x2aa   : > { %2313 = vmatprep.mubr.f32.mxu1 %v4927_v60 }
 0x2ac   : > { %2454 = vmatmul.mubr.f32.gmra.mxu0 %v4910_v25 }
 0x2ad   : > { %2314 = vmatmul.mubr.f32.gmra.mxu1 %v4914_v40  ;;  %2458 = vmatprep.mubr.f32.mxu0 %v1716_v11 }
 0x2ae   : > { %2318 = vmatprep.mubr.f32.mxu1 %v1721_v41 }
 0x2b0   : > { %2459 = vmatmul.mubr.f32.gmra.mxu0 %v4922_v28 }
 0x2b1   : > { %2319 = vmatmul.mubr.f32.gmra.mxu1 %v1714_v44  ;;  %2463 = vmatprep.mubr.f32.mxu0 %v1731_v15 }
 0x2b2   : > { %2323 = vmatprep.mubr.f32.mxu1 %v1723_v30 }
 0x2b4   : > { %2464 = vmatmul.mubr.f32.gmra.mxu0 %v1570_v47 }
 0x2b5   : > { %2324 = vmatmul.mubr.f32.gmra.mxu1 %v1716_v11  ;;  %2468 = vmatprep.mubr.f32.mxu0 %v1733_v17 }
 0x2b6   : > { %3242 = vmatprep.mubr.f32.mxu1 %v4783_v52  ;;  %v1736_v52 = vrot.slane %v1570_v47, 2 }
 0x2b8   : > { %2469 = vmatmul.mubr.f32.gmra.mxu0 %v1571_v42 }
 0x2b9   : > { %3243 = vmatmul.mubr.f32.vlgmr.msra.gmra.mxu1 %v4795_v50  ;;  %v1737_v50 = vrot.slane %v1571_v42, 2 }
 0x2ba   : > { %3245 = vmatprep.mubr.f32.mxu1 %v4811_v39  ;;  %v1739_v39 = vrot.slane %v1572_v3, 2 }
 0x2bd   : > { %3246 = vmatmul.mubr.f32.gmra.mxu1 %v4823_v56  ;;  %v1738_v56 = vsel %vm387_vm1, %v1736_v52, %v1737_v50 }
 0x2be   : > { %3248 = vmatprep.mubr.f32.mxu1 %v4839_v27  ;;  %v1740_v27 = vsel %vm387_vm1, %v1737_v50, %v1739_v39 }
 0x2c1   : > { %3249 = vmatmul.mubr.f32.gmra.mxu1 %v4851_v12 }
 0x2c2   : > { %3251 = vmatprep.mubr.f32.mxu1 %v4867_v2  ;;  %v5012_v2 = vld [vmem:[%s5260_s4] ss:$0 sm:$0xff] }
 0x2c3   : > { %5266 = vst [vmem:[#allocation9_spill] sm:$0xff] %v5012_v2 }
 0x2c5   : > { %3252 = vmatmul.mubr.f32.gmra.mxu1 %v4877_v6 }
 0x2c6   : > { %3254 = vmatprep.mubr.f32.mxu1 %v4895_v45 }
 0x2c9   : > { %3255 = vmatmul.mubr.f32.gmra.mxu1 %v4904_v7 }
 0x2ca   : > { %3257 = vmatprep.mubr.f32.mxu1 %v4918_v32 }
 0x2cd   : > { %3258 = vmatmul.mubr.f32.gmra.mxu1 %v4927_v60 }
 0x2ce   : > { %3260 = vmatprep.mubr.f32.mxu1 %v1721_v41 }
 0x2d1   : > { %3261 = vmatmul.mubr.f32.gmra.mxu1 %v1723_v30 }
 0x2d2   : > { %3263 = vmatprep.mubr.f32.mxu1 %v1738_v56 }
 0x2d5   : > { %3264 = vmatmul.mubr.f32.gmra.mxu1 %v1740_v27 }
 0x2f8   : > { %v2828_v12 = vpop.f32.mrf.mxu1 }
 0x2fa   : > { %v2829_v6 = vpop.f32.mrf.mxu1 }
 0x2fb   : > { %v2830_v45 = vadd.f32 %v2829_v6, %v2828_v12  ;;  %v2908_v7 = vpop.f32.mrf.mxu0 }
 0x2fd   : > { %v2831_v13 = vpop.f32.mrf.mxu1  ;;  %v1961_v16 = vadd.f32 %v2830_v45, %v5012_v2  ;;  %v2909_v57 = vpop.f32.mrf.mxu0 }
 0x2fe   : > { %v2910_v59 = vadd.f32 %v2909_v57, %v2908_v7 }
 0x2ff   : > { %v2832_v58 = vpop.f32.mrf.mxu1  ;;  %v2911_v62 = vpop.f32.mrf.mxu0 }
 0x300   : > { %v2833_v25 = vadd.f32 %v2832_v58, %v2831_v13  ;;  %v5015_v40 = vadd.f32 %v2910_v59, %v1961_v16 }
 0x301   : > { %v2834_v32 = vpop.f32.mrf.mxu1  ;;  %v2912_v18 = vpop.f32.mrf.mxu0 }
 0x302   : > { %v1966_v1 = vadd.f32 %v2833_v25, %v5012_v2  ;;  %v2913_v8 = vadd.f32 %v2912_v18, %v2911_v62 }
 0x303   : > { %v2835_v55 = vpop.f32.mrf.mxu1  ;;  %v2914_v36 = vpop.f32.mrf.mxu0 }
 0x304   : > { %v2836_v28 = vadd.f32 %v2835_v55, %v2834_v32  ;;  %v5018_v60 = vadd.f32 %v2913_v8, %v1966_v1 }
 0x305   : > { %v2837_v61 = vpop.f32.mrf.mxu1  ;;  %v2915_v38 = vpop.f32.mrf.mxu0 }
 0x306   : > { %v1971_v31 = vadd.f32 %v2836_v28, %v5012_v2  ;;  %v2916_v46 = vadd.f32 %v2915_v38, %v2914_v36 }
 0x307   : > { %v2838_v24 = vpop.f32.mrf.mxu1  ;;  %v2917_v53 = vpop.f32.mrf.mxu0 }
 0x308   : > { %v2839_v35 = vadd.f32 %v2838_v24, %v2837_v61  ;;  %v5021_v0 = vadd.f32 %v2916_v46, %v1971_v31 }
 0x309   : > { %v2840_v9 = vpop.f32.mrf.mxu1  ;;  %v2918_v33 = vpop.f32.mrf.mxu0 }
 0x30a   : > { %v1976_v49 = vadd.f32 %v2839_v35, %v5012_v2  ;;  %v2919_v29 = vadd.f32 %v2918_v33, %v2917_v53 }
 0x30b   : > { %v2841_v19 = vpop.f32.mrf.mxu1  ;;  %v2920_v34 = vpop.f32.mrf.mxu0 }
 0x30c   : > { %v2842_v14 = vadd.f32 %v2841_v19, %v2840_v9  ;;  %v5024_v22 = vadd.f32 %v2919_v29, %v1976_v49 }
 0x30d   : > { %v2843_v43 = vpop.f32.mrf.mxu1  ;;  %v2921_v26 = vpop.f32.mrf.mxu0 }
 0x30e   : > { %v1981_v21 = vadd.f32 %v2842_v14, %v5012_v2  ;;  %v2922_v48 = vadd.f32 %v2921_v26, %v2920_v34 }
 0x30f   : > { %v2844_v23 = vpop.f32.mrf.mxu1  ;;  %v2923_v44 = vpop.f32.mrf.mxu0 }
 0x310   : > { %v2845_v20 = vadd.f32 %v2844_v23, %v2843_v43  ;;  %v5027_v63 = vadd.f32 %v2922_v48, %v1981_v21 }
 0x311   : > { %v2846_v4 = vpop.f32.mrf.mxu1  ;;  %v2924_v47 = vpop.f32.mrf.mxu0 }
 0x312   : > { %v1986_v54 = vadd.f32 %v2845_v20, %v5012_v2  ;;  %v2925_v42 = vadd.f32 %v2924_v47, %v2923_v44 }
 0x313   : > { %v2847_v11 = vpop.f32.mrf.mxu1  ;;  %v2926_v5 = vpop.f32.mrf.mxu0 }
 0x314   : > { %v2848_v37 = vadd.f32 %v2847_v11, %v2846_v4  ;;  %v5030_v41 = vadd.f32 %v2925_v42, %v1986_v54 }
 0x315   : > { %v2849_v51 = vpop.f32.mrf.mxu1  ;;  %v2927_v15 = vpop.f32.mrf.mxu0 }
 0x316   : > { %v1991_v3 = vadd.f32 %v2848_v37, %v5012_v2  ;;  %v2928_v10 = vadd.f32 %v2927_v15, %v2926_v5 }
 0x317   : > { %v2850_v30 = vpop.f32.mrf.mxu1  ;;  %v2929_v52 = vpop.f32.mrf.mxu0 }
 0x318   : > { %v2851_v17 = vadd.f32 %v2850_v30, %v2849_v51  ;;  %v5033_v50 = vadd.f32 %v2928_v10, %v1991_v3 }
 0x319   : > { %v2852_v39 = vpop.f32.mrf.mxu1  ;;  %v2930_v27 = vpop.f32.mrf.mxu0 }
 0x31a   : > { %v1996_v56 = vadd.f32 %v2851_v17, %v5012_v2  ;;  %v2931_v12 = vadd.f32 %v2930_v27, %v2929_v52 }
 0x31b   : > { %v2853_v6 = vpop.f32.mrf.mxu1  ;;  %v2932_v7 = vpop.f32.mrf.mxu0 }
 0x31c   : > { %v2854_v45 = vadd.f32 %v2853_v6, %v2852_v39  ;;  %v5036_v13 = vadd.f32 %v2931_v12, %v1996_v56 }
 0x31d   : > { %v2855_v16 = vpop.f32.mrf.mxu1  ;;  %v2933_v59 = vpop.f32.mrf.mxu0 }
 0x31e   : > { %v2001_v57 = vadd.f32 %v2854_v45, %v5012_v2  ;;  %v2934_v58 = vadd.f32 %v2933_v59, %v2932_v7 }
 0x31f   : > { %v2856_v25 = vpop.f32.mrf.mxu1  ;;  %v2935_v32 = vpop.f32.mrf.mxu0 }
 0x320   : > { %v2857_v62 = vadd.f32 %v2856_v25, %v2855_v16  ;;  %v5039_v1 = vadd.f32 %v2934_v58, %v2001_v57 }
 0x321   : > { %v2858_v18 = vpop.f32.mrf.mxu1  ;;  %v2936_v55 = vpop.f32.mrf.mxu0 }
 0x322   : > { %v2006_v8 = vadd.f32 %v2857_v62, %v5012_v2  ;;  %v2937_v28 = vadd.f32 %v2936_v55, %v2935_v32 }
 0x323   : > { %v2859_v36 = vpop.f32.mrf.mxu1  ;;  %v2938_v31 = vpop.f32.mrf.mxu0 }
 0x324   : > { %v2860_v61 = vadd.f32 %v2859_v36, %v2858_v18  ;;  %v5042_v38 = vadd.f32 %v2937_v28, %v2006_v8 }
 0x325   : > { %v2861_v46 = vpop.f32.mrf.mxu1  ;;  %v2939_v35 = vpop.f32.mrf.mxu0 }
 0x326   : > { %v2011_v24 = vadd.f32 %v2860_v61, %v5012_v2  ;;  %v2940_v53 = vadd.f32 %v2939_v35, %v2938_v31 }
 0x327   : > { %v2862_v9 = vpop.f32.mrf.mxu1  ;;  %v2941_v33 = vpop.f32.mrf.mxu0 }
 0x328   : > { %v2863_v49 = vadd.f32 %v2862_v9, %v2861_v46  ;;  %v5045_v29 = vadd.f32 %v2940_v53, %v2011_v24 }
 0x329   : > { %v2864_v19 = vpop.f32.mrf.mxu1  ;;  %v2942_v34 = vpop.f32.mrf.mxu0 }
 0x32a   : > { %5267 = vst [vmem:[#allocation10_spill] sm:$0xff] %v5045_v29  ;;  %v2016_v14 = vadd.f32 %v2863_v49, %v5012_v2  ;;  %v2943_v43 = vadd.f32 %v2942_v34, %v2941_v33 }
 0x32b   : > { %v2865_v21 = vpop.f32.mrf.mxu1  ;;  %v2944_v48 = vpop.f32.mrf.mxu0 }
 0x32c   : > { %v2866_v26 = vadd.f32 %v2865_v21, %v2864_v19  ;;  %v5048_v23 = vadd.f32 %v2943_v43, %v2016_v14 }
 0x32d   : > { %v2867_v20 = vpop.f32.mrf.mxu1  ;;  %v2945_v4 = vpop.f32.mrf.mxu0 }
 0x32e   : > { %5268 = vst [vmem:[#allocation11_spill] sm:$0xff] %v5048_v23  ;;  %v2021_v44 = vadd.f32 %v2866_v26, %v5012_v2  ;;  %v2946_v54 = vadd.f32 %v2945_v4, %v2944_v48 }
 0x32f   : > { %v2868_v47 = vpop.f32.mrf.mxu1  ;;  %v2947_v11 = vpop.f32.mrf.mxu0 }
 0x330   : > { %v2869_v42 = vadd.f32 %v2868_v47, %v2867_v20  ;;  %v5051_v37 = vadd.f32 %v2946_v54, %v2021_v44 }
 0x331   : > { %v2870_v5 = vpop.f32.mrf.mxu1  ;;  %v2948_v3 = vpop.f32.mrf.mxu0 }
 0x332   : > { %5269 = vst [vmem:[#allocation12_spill] sm:$0xff] %v5051_v37  ;;  %v2026_v51 = vadd.f32 %v2869_v42, %v5012_v2  ;;  %v2949_v15 = vadd.f32 %v2948_v3, %v2947_v11 }
 0x333   : > { %v2871_v10 = vpop.f32.mrf.mxu1 }
 0x334   : > { %v2872_v30 = vadd.f32 %v2871_v10, %v2870_v5  ;;  %v2950_v17 = vpop.f32.mrf.mxu0  ;;  %v5054_v52 = vadd.f32 %v2949_v15, %v2026_v51 }
 0x335   : > { %v2873_v39 = vpop.f32.mrf.mxu1 }
 0x336   : > { %5270 = vst [vmem:[#allocation13_spill] sm:$0xff] %v5054_v52  ;;  %v2031_v56 = vadd.f32 %v2872_v30, %v5012_v2  ;;  %v2951_v27 = vpop.f32.mrf.mxu0 }
 0x337   : > { %v2952_v12 = vadd.f32 %v2951_v27, %v2950_v17  ;;  %v2874_v6 = vpop.f32.mrf.mxu1 }
 0x338   : > { %v5057_v45 = vadd.f32 %v2874_v6, %v2873_v39  ;;  %v5059_v7 = vpop.f32.mrf.mxu0 }
 0x339   : > { %5272 = vst [vmem:[#allocation15_spill] sm:$0xff] %v5059_v7  ;;  %v5061_v16 = vadd.f32 %v2952_v12, %v2031_v56  ;;  %v2988_v57 = vpop.f32.mrf.mxu1 }
 0x33a   : > { %5271 = vst [vmem:[#allocation14_spill] sm:$0xff] %v5057_v45  ;;  %v5063_v59 = vpop.f32.mrf.mxu0 }
 0x33b   : > { %5273 = vst [vmem:[#allocation16_spill] sm:$0xff] %v5061_v16  ;;  %5274 = vst [vmem:[#allocation17_spill] sm:$0xff] %v5063_v59  ;;  %v2989_v58 = vpop.f32.mrf.mxu1 }
 0x33c   : > { %v3068_v25 = vpop.f32.mrf.mxu0 }
 0x33d   : > { %v2991_v62 = vpop.f32.mrf.mxu1 }
 0x33e   : > { %v3069_v32 = vpop.f32.mrf.mxu0 }
 0x33f   : > { %v2992_v18 = vpop.f32.mrf.mxu1 }
 0x340   : > { %v3071_v8 = vpop.f32.mrf.mxu0  ;;  %v2993_v2 = vadd.f32 %v2992_v18, %v2991_v62 }
 0x341   : > { %v2994_v55 = vpop.f32.mrf.mxu1 }
 0x342   : > { %v3072_v28 = vpop.f32.mrf.mxu0 }
 0x343   : > { %v2995_v36 = vpop.f32.mrf.mxu1 }
 0x344   : > { %v5065_v61 = vpop.f32.mrf.mxu0 }
 0x345   : > { %v2997_v31 = vpop.f32.mrf.mxu1 }
 0x346   : > { %v3075_v46 = vpop.f32.mrf.mxu0 }
 0x347   : > { %v2998_v24 = vpop.f32.mrf.mxu1 }
 0x348   : > { %v3077_v35 = vpop.f32.mrf.mxu0 }
 0x349   : > { %v3000_v53 = vpop.f32.mrf.mxu1 }
 0x34a   : > { %v3078_v9 = vpop.f32.mrf.mxu0 }
 0x34b   : > { %v3001_v49 = vpop.f32.mrf.mxu1 }
 0x34c   : > { %v5067_v33 = vpop.f32.mrf.mxu0 }
 0x34d   : > { %v3003_v19 = vpop.f32.mrf.mxu1 }
 0x34e   : > { %v5069_v14 = vpop.f32.mrf.mxu0 }
 0x34f   : > { %v3004_v34 = vpop.f32.mrf.mxu1 }
 0x350   : > { %v3083_v43 = vpop.f32.mrf.mxu0  ;;  %v3005_v62 = vadd.f32 %v3004_v34, %v3003_v19 }
 0x351   : > { %v5071_v21 = vpop.f32.mrf.mxu1 }
 0x352   : > { %v3084_v26 = vpop.f32.mrf.mxu0 }
 0x353   : > { %v5073_v48 = vpop.f32.mrf.mxu1 }
 0x354   : > { %v5075_v20 = vpop.f32.mrf.mxu0 }
 0x355   : > { %v3009_v44 = vpop.f32.mrf.mxu1 }
 0x356   : > { %v5077_v4 = vpop.f32.mrf.mxu0 }
 0x357   : > { %v3010_v54 = vpop.f32.mrf.mxu1 }
 0x358   : > { %v5079_v47 = vpop.f32.mrf.mxu0 }
 0x359   : > { %v5081_v42 = vpop.f32.mrf.mxu1 }
 0x35a   : > { %v5083_v11 = vpop.f32.mrf.mxu0 }
 0x35b   : > { %v5085_v5 = vpop.f32.mrf.mxu1 }
 0x35c   : > { %v5087_v51 = vpop.f32.mrf.mxu0 }
 0x35d   : > { %v3015_v3 = vpop.f32.mrf.mxu1 }
 0x35e   : > { %v5089_v15 = vpop.f32.mrf.mxu0 }
 0x35f   : > { %5275 = vst [vmem:[#allocation18_spill] sm:$0xff] %v5089_v15  ;;  %v3016_v10 = vpop.f32.mrf.mxu1 }
 0x360   : > { %v5091_v30 = vpop.f32.mrf.mxu0 }
 0x361   : > { %v5093_v17 = vpop.f32.mrf.mxu1 }
 0x362   : > { %5276 = vst [vmem:[#allocation19_spill] sm:$0xff] %v5093_v17  ;;  %v5095_v39 = vpop.f32.mrf.mxu0  ;;  %v3073_v17 = vadd.f32 %v3072_v28, %v3071_v8  ;;  %v3076_v8 = vadd.f32 %v3075_v46, %v5065_v61  ;;  %v3008_v61 = vadd.f32 %v5073_v48, %v5071_v21  ;;  %v3017_v46 = vadd.f32 %v3016_v10, %v3015_v3 }
 0x363   : > { %v5097_v56 = vpop.f32.mrf.mxu1  ;;  %v3088_v21 = vadd.f32 %v5077_v4, %v5075_v20 }
 0x364   : > { %5277 = vst [vmem:[#allocation20_spill] sm:$0xff] %v5097_v56  ;;  %v5099_v27 = vpop.f32.mrf.mxu0  ;;  %v2296_v48 = vadd.f32 %v3017_v46, %v5042_v38 }
 0x365   : > { %5278 = vst [vmem:[#allocation21_spill] sm:$0xff] %v5099_v27  ;;  %v5101_v12 = vpop.f32.mrf.mxu1 }
 0x366   : > { %v5103_v6 = vpop.f32.mrf.mxu0  ;;  %v5289_v4 = vld [vmem:[#allocation18_spill] sm:$0xff] }
 0x367   : > { %5279 = vst [vmem:[#allocation22_spill] sm:$0xff] %v5103_v6  ;;  %v5105_v16 = vpop.f32.mrf.mxu1  ;;  %v2990_v6 = vadd.f32 %v2989_v58, %v2988_v57  ;;  %v3079_v57 = vadd.f32 %v3078_v9, %v3077_v35 }
 0x368   : > { %v5107_v37 = vpop.f32.mrf.mxu0 }
 0x369   : > { %5280 = vst [vmem:[#allocation23_spill] sm:$0xff] %v5107_v37  ;;  %v5109_v52 = vpop.f32.mrf.mxu1  ;;  %v2256_v37 = vadd.f32 %v2993_v2, %v5018_v60  ;;  %v5290_v38 = vld [vmem:[#allocation19_spill] sm:$0xff] }
 0x36a   : > { %5281 = vst [vmem:[#allocation24_spill] sm:$0xff] %v5109_v52  ;;  %v5113_v59 = vpop.f32.mrf.mxu0  ;;  %v2999_v52 = vadd.f32 %v2998_v24, %v2997_v31  ;;  %v3082_v24 = vadd.f32 %v5069_v14, %v5067_v33  ;;  %v3014_v33 = vadd.f32 %v5085_v5, %v5081_v42  ;;  %v3094_v5 = vadd.f32 %v5289_v4, %v5087_v51 }
 0x36b   : > { %v5111_v29 = vpop.f32.mrf.mxu1  ;;  %5283 = vst [vmem:[#allocation26_spill] sm:$0xff] %v5113_v59  ;;  %v2251_v59 = vadd.f32 %v2990_v6, %v5015_v40  ;;  %v2401_v58 = vadd.f32 %v3073_v17, %v2256_v37  ;;  %v5291_v17 = vld [vmem:[#allocation20_spill] sm:$0xff] }
 0x36c   : > { %5282 = vst [vmem:[#allocation25_spill] sm:$0xff] %v5111_v29  ;;  %v5119_v27 = vpop.f32.mrf.mxu0  ;;  %v2291_v20 = vadd.f32 %v3014_v33, %v5039_v1  ;;  %v5304_v46 = vld [vmem:[#allocation21_spill] sm:$0xff] }
 0x36d   : > { %v5115_v7 = vpop.f32.mrf.mxu1  ;;  %5286 = vst [vmem:[#allocation29_spill] sm:$0xff] %v5119_v27 }
 0x36e   : > { %5284 = vst [vmem:[#allocation27_spill] sm:$0xff] %v5115_v7  ;;  %v5126_v15 = vpop.f32.mrf.mxu0  ;;  %v3070_v7 = vadd.f32 %v3069_v32, %v3068_v25  ;;  %v2276_v25 = vadd.f32 %v3005_v62, %v5030_v41  ;;  %v3085_v32 = vadd.f32 %v3084_v26, %v3083_v43  ;;  %v2281_v43 = vadd.f32 %v3008_v61, %v5033_v50 }
 0x36f   : > { %v5117_v45 = vpop.f32.mrf.mxu1 }
 0x370   : > { %5285 = vst [vmem:[#allocation28_spill] sm:$0xff] %v5117_v45  ;;  %v2996_v45 = vadd.f32 %v2995_v36, %v2994_v55  ;;  %v5134_v27 = vpop.f32.mrf.mxu0  ;;  %v2396_v40 = vadd.f32 %v3070_v7, %v2251_v59  ;;  %v3011_v36 = vadd.f32 %v3010_v54, %v3009_v44  ;;  %v3097_v44 = vadd.f32 %v5095_v39, %v5091_v30 }
 0x371   : > { %v5121_v23 = vpop.f32.mrf.mxu1  ;;  %v2426_v6 = vadd.f32 %v3088_v21, %v2281_v43 }
 0x372   : > { %5287 = vst [vmem:[#allocation30_spill] sm:$0xff] %v5121_v23  ;;  %v2266_v23 = vadd.f32 %v2999_v52, %v5024_v22  ;;  %v2261_v60 = vadd.f32 %v2996_v45, %v5021_v0  ;;  %v3108_v0 = vpop.f32.mrf.mxu0 }
 0x373   : > { %v5123_v56 = vpop.f32.mrf.mxu1  ;;  %v3109_v33 = vadd.f32 %v3108_v0, %v5134_v27 }
 0x374   : > { %5288 = vst [vmem:[#allocation31_spill] sm:$0xff] %v5123_v56  ;;  %v3002_v56 = vadd.f32 %v3001_v49, %v3000_v53  ;;  %v2411_v37 = vadd.f32 %v3079_v57, %v2266_v23  ;;  %v2406_v59 = vadd.f32 %v3076_v8, %v2261_v60  ;;  %v2421_v53 = vadd.f32 %v3085_v32, %v2276_v25  ;;  %v5151_v19 = vpop.f32.mrf.mxu0  ;;  %v5295_v60 = vld [vmem:[#allocation23_spill] sm:$0xff]  ;;  %v5296_v8 = vld [vmem:[#allocation26_spill] sm:$0xff]  ;;  %v5297_v25 = vld [vmem:[#allocation9_spill] sm:$0xff] }
 0x375   : > { %v5128_v29 = vpop.f32.mrf.mxu1  ;;  %v2286_v23 = vadd.f32 %v3011_v36, %v5036_v13  ;;  %v3103_v51 = vadd.f32 %v5296_v8, %v5295_v60  ;;  %v5298_v32 = vld [vmem:[#allocation14_spill] sm:$0xff]  ;;  %v5299_v36 = vld [vmem:[#allocation15_spill] sm:$0xff] }
 0x376   : > { %v2271_v52 = vadd.f32 %v3002_v56, %v5027_v63  ;;  %v3091_v63 = vadd.f32 %v5083_v11, %v5079_v47  ;;  %v3023_v47 = vadd.f32 %v5105_v16, %v5101_v12  ;;  %v3111_v3 = vpop.f32.mrf.mxu0  ;;  %v3020_v56 = vadd.f32 %v5291_v17, %v5290_v38  ;;  %v5292_v16 = vld [vmem:[#allocation27_spill] sm:$0xff] }
 0x377   : > { %v5131_v18 = vpop.f32.mrf.mxu1  ;;  %v5293_v12 = vld [vmem:[#allocation28_spill] sm:$0xff] }
 0x378   : > { %v2416_v34 = vadd.f32 %v3082_v24, %v2271_v52  ;;  %v2431_v50 = vadd.f32 %v3091_v63, %v2286_v23  ;;  %v3029_v62 = vadd.f32 %v5293_v12, %v5292_v16  ;;  %v5302_v52 = vld [vmem:[#allocation25_spill] sm:$0xff]  ;;  %v3112_v16 = vadd.f32 %v3111_v3, %v5151_v19 }
 0x379   : > { %v3244_v2 = vpop.f32.mrf.mxu1 }
 0x37a   : > { %v2546_v28 = vadd.f32 %v3244_v2, %v2401_v58  ;;  %v2441_v58 = vadd.f32 %v3097_v44, %v2296_v48  ;;  %v5294_v2 = vld [vmem:[#allocation11_spill] sm:$0xff]  ;;  %v5307_v48 = vld [vmem:[#allocation12_spill] sm:$0xff] }
 0x37b   : > { %v2540_v55 = vpop.f32.mrf.mxu1  ;;  %v2306_v1 = vadd.f32 %v3023_v47, %v5294_v2 }
 0x37c   : > { %v2620_v31 = vmax.f32 %v2546_v28, 0.0  ;;  %v2541_v22 = vadd.f32 %v2540_v55, %v2396_v40  ;;  %v2036_v55 = vadd.f32 %v5298_v32, %v5297_v25 }
 0x37d   : > { %v3247_v45 = vpop.f32.mrf.mxu1 }
 0x37e   : > { %2636 = vst [vmem:[%s4722_s17 + $0x8] sm:$0xff] %v2620_v31  ;;  %v2619_v7 = vmax.f32 %v2541_v22, 0.0  ;;  %v2556_v41 = vadd.f32 %v3247_v45, %v2411_v37  ;;  %v5300_v31 = vld [vmem:[#allocation17_spill] sm:$0xff]  ;;  %v5301_v37 = vld [vmem:[#allocation24_spill] sm:$0xff]  ;;  %v3113_v45 = vpop.f32.mrf.mxu0 }
 0x37f   : > { %v2550_v35 = vpop.f32.mrf.mxu1  ;;  %v2955_v22 = vadd.f32 %v5300_v31, %v5299_v36  ;;  %v3026_v24 = vadd.f32 %v5302_v52, %v5301_v37 }
 0x380   : > { %2635 = vst [vmem:[%s4722_s17] sm:$0xff] %v2619_v7  ;;  %v2622_v9 = vmax.f32 %v2556_v41, 0.0  ;;  %v2551_v49 = vadd.f32 %v2550_v35, %v2406_v59  ;;  %v2436_v7 = vadd.f32 %v3094_v5, %v2291_v20  ;;  %v5303_v41 = vld [vmem:[#allocation10_spill] sm:$0xff]  ;;  %v5310_v20 = vld [vmem:[#allocation31_spill] sm:$0xff] }
 0x381   : > { %v3250_v14 = vpop.f32.mrf.mxu1  ;;  %v2301_v59 = vadd.f32 %v3020_v56, %v5303_v41  ;;  %v5305_v35 = vld [vmem:[#allocation22_spill] sm:$0xff]  ;;  %v2311_v44 = vadd.f32 %v3026_v24, %v5307_v48 }
 0x382   : > { %2638 = vst [vmem:[%s4722_s17 + $0x18] sm:$0xff] %v2622_v9  ;;  %v2621_v13 = vmax.f32 %v2551_v49, 0.0  ;;  %v2566_v26 = vadd.f32 %v3250_v14, %v2421_v53  ;;  %v3100_v53 = vadd.f32 %v5305_v35, %v5304_v46  ;;  %v5306_v9 = vld [vmem:[#allocation13_spill] sm:$0xff] }
 0x383   : > { %v2560_v54 = vpop.f32.mrf.mxu1  ;;  %v2316_v49 = vadd.f32 %v3029_v62, %v5306_v9 }
 0x384   : > { %2637 = vst [vmem:[%s4722_s17 + $0x10] sm:$0xff] %v2621_v13  ;;  %v2624_v42 = vmax.f32 %v2566_v26, 0.0  ;;  %v2561_v11 = vadd.f32 %v2560_v54, %v2416_v34  ;;  %v3035_v34 = vadd.f32 %v5131_v18, %v5128_v29  ;;  %v2451_v13 = vadd.f32 %v3103_v51, %v2306_v1  ;;  %v5308_v54 = vld [vmem:[#allocation29_spill] sm:$0xff] }
 0x385   : > { %v3253_v10 = vpop.f32.mrf.mxu1  ;;  %v2181_v26 = vadd.f32 %v2955_v22, %v2036_v55  ;;  %v3106_v47 = vadd.f32 %v5126_v15, %v5308_v54  ;;  %v2446_v18 = vadd.f32 %v3100_v53, %v2301_v59  ;;  %v2461_v5 = vadd.f32 %v3109_v33, %v2316_v49 }
 0x386   : > { %2640 = vst [vmem:[%s4722_s17 + $0x28] sm:$0xff] %v2624_v42  ;;  %v2623_v30 = vmax.f32 %v2561_v11, 0.0  ;;  %v2576_v39 = vadd.f32 %v3253_v10, %v2431_v50  ;;  %v3114_v42 = vpop.f32.mrf.mxu0  ;;  %v5309_v50 = vld [vmem:[#allocation30_spill] sm:$0xff] }
 0x387   : > { %v2570_v57 = vpop.f32.mrf.mxu1  ;;  %v3032_v27 = vadd.f32 %v5310_v20, %v5309_v50  ;;  %v2326_v10 = vadd.f32 %v3035_v34, %v2181_v26  ;;  %v3115_v38 = vadd.f32 %v3114_v42, %v3113_v45 }
 0x388   : > { %2639 = vst [vmem:[%s4722_s17 + $0x20] sm:$0xff] %v2623_v30  ;;  %v2626_v28 = vmax.f32 %v2576_v39, 0.0  ;;  %v2571_v40 = vadd.f32 %v2570_v57, %v2426_v6  ;;  %v2456_v30 = vadd.f32 %v3106_v47, %v2311_v44  ;;  %v5311_v39 = vld [vmem:[#allocation16_spill] sm:$0xff] }
 0x389   : > { %v3256_v61 = vpop.f32.mrf.mxu1  ;;  %v2321_v6 = vadd.f32 %v3032_v27, %v5311_v39  ;;  %v2471_v1 = vadd.f32 %v3115_v38, %v2326_v10 }
 0x38a   : > { %2642 = vst [vmem:[%s4722_s17 + $0x38] sm:$0xff] %v2626_v28  ;;  %v2625_v23 = vmax.f32 %v2571_v40, 0.0  ;;  %v2586_v63 = vadd.f32 %v3256_v61, %v2441_v58 }
 0x38b   : > { %v2580_v14 = vpop.f32.mrf.mxu1  ;;  %v2466_v28 = vadd.f32 %v3112_v16, %v2321_v6 }
 0x38c   : > { %2641 = vst [vmem:[%s4722_s17 + $0x30] sm:$0xff] %v2625_v23  ;;  %v2628_v43 = vmax.f32 %v2586_v63, 0.0  ;;  %v2581_v21 = vadd.f32 %v2580_v14, %v2436_v7 }
 0x38d   : > { %v3259_v11 = vpop.f32.mrf.mxu1 }
 0x38e   : > { %2644 = vst [vmem:[%s4722_s17 + $0x48] sm:$0xff] %v2628_v43  ;;  %v2627_v0 = vmax.f32 %v2581_v21, 0.0  ;;  %v2596_v29 = vadd.f32 %v3259_v11, %v2451_v13 }
 0x38f   : > { %v2590_v4 = vpop.f32.mrf.mxu1 }
 0x390   : > { %2643 = vst [vmem:[%s4722_s17 + $0x40] sm:$0xff] %v2627_v0  ;;  %v2630_v17 = vmax.f32 %v2596_v29, 0.0  ;;  %v2591_v56 = vadd.f32 %v2590_v4, %v2446_v18 }
 0x391   : > { %v3262_v15 = vpop.f32.mrf.mxu1 }
 0x392   : > { %2646 = vst [vmem:[%s4722_s17 + $0x58] sm:$0xff] %v2630_v17  ;;  %v2629_v12 = vmax.f32 %v2591_v56, 0.0  ;;  %v2606_v62 = vadd.f32 %v3262_v15, %v2461_v5 }
 0x393   : > { %v2600_v57 = vpop.f32.mrf.mxu1 }
 0x394   : > { %2645 = vst [vmem:[%s4722_s17 + $0x50] sm:$0xff] %v2629_v12  ;;  %v2632_v58 = vmax.f32 %v2606_v62, 0.0  ;;  %v2601_v2 = vadd.f32 %v2600_v57, %v2456_v30 }
 0x395   : > { %v3265_v60 = vpop.f32.mrf.mxu1 }
 0x396   : > { %2648 = vst [vmem:[%s4722_s17 + $0x68] sm:$0xff] %v2632_v58  ;;  %v2631_v8 = vmax.f32 %v2601_v2, 0.0  ;;  %v2616_v51 = vadd.f32 %v3265_v60, %v2471_v1 }
 0x397   : > { %v2610_v19 = vpop.f32.mrf.mxu1 }
 0x398   : > { %2647 = vst [vmem:[%s4722_s17 + $0x60] sm:$0xff] %v2631_v8  ;;  %v2634_v3 = vmax.f32 %v2616_v51, 0.0  ;;  %v2611_v40 = vadd.f32 %v2610_v19, %v2466_v28 }
 0x39a   : > { %2650 = vst [vmem:[%s4722_s17 + $0x78] sm:$0xff] %v2634_v3  ;;  %v2633_v25 = vmax.f32 %v2611_v40, 0.0 }
 0x39c   : > { %2649 = vst [vmem:[%s4722_s17 + $0x70] sm:$0xff] %v2633_v25 }
 0x39d   : > { %3363 = shalt.err (!%p3360_p4)
}
 0x39e   : > { %s3364_s13 = scalar_lea.hbm %s5208_s6, 2048  ;;  %s3368_s10 = scalar_lea.hbm %s5261_s5, 8192 }
 0x39f   : > { %p3365_p7 = scmp.ne.s32.totalorder %s5208_s6, %s3364_s13  ;;  %p3369_p9 = scmp.lt.s32.totalorder %s5208_s6, %s5261_s5 }
 0x3a0   : > { %p3370_p10 = scmp.lt.s32.totalorder %s3368_s10, %s3364_s13 }
 0x3a1   : > { %p3366_p6 = pnand %p3365_p7, %p3493_p5 }
 0x3a2   : > { %p3371_p11 = por %p3370_p10, %p3369_p9 }
 0x3a3   : > { %p3367_p8 = pneg %p3366_p6 }
 0x3a5   : > { %p3372_p12 = pnand %p3371_p11, %p3367_p8 }
 0x3a7   : > { %3375 = shalt.err (!%p3372_p12)
}
 0x3a8   : > { %s3423_s25 = smov 128   ;;  %s3424_s16 = smov 8  }
 0x3a9   : > { %3271 = dma.vmem_to_hbm [thread:$0]  (%p3493_p5), %s5210_s23, 2048, %s5208_s6, %s5216_s22, %s3423_s25, %s3423_s25, %s3424_s16  }
 0x3aa PF: > { %p3283_p13 = scmp.ge.s32.totalorder %s3414_s21, 2  ;;  %s2680_s26 = sand.u32 1, %s3402_s18  }
 0x3ab   : > { %p5312_p0 = scmp.ne.s32.totalorder %s5264_s29, 0  ;;  %s2681_s30 = scalar_lea.sflag [#allocation5], %s2680_s26 }
 0x3ad   : > { %p3278_p1 = pnand %p3283_p13, %p5312_p0 }
 0x3af   : > { %p3279_p2 = pneg %p3278_p1 }
 0x3b1   : > { %3397 = dma.done.wait (%p3279_p2), %s2681_s30, 2048  }
 0x3b2   : > { %3399 = vsyncadd (%p3279_p2), %s2681_s30, 4294965248  ;;  %p16_p3 = scmp.ge.s32.totalorder %s3480_s24, 6   ;;  %s5313_s18 = smov %s3406_s19 }
 0x3b3   : > { %s5314_s19 = smov %s3410_s20  ;;  %s5315_s20 = smov %s3491_s27 }
 0x3b4   : > { %s5316_s21 = smov %s3480_s24  ;;  %18 = sbr.rel (!%p16_p3) target bundleno = 4 (0x4), region = 89 }
 0x3b9   :  { %2686 = vsyncpa [#allocation4], 1 }
 0x3ba   :  { %2688 = vsyncpa [#allocation4 + $0x1], 1 }
 0x3bb   :  { %2689 = vsyncpa [#allocation5], 1 }
 0x3bc   :  { %2691 = vsyncpa [#allocation5 + $0x1], 1 }

</bundles_post_ra>
